<compile_context>
chip_gen: v7x
topology: tpu7x:2x2x1
jax: 0.10.0
libtpu: 0.0.40
codegen_flags: <defaults>
</compile_context>

<pallas_src>
from functools import partial

import jax
import jax.numpy as jnp
from jax.experimental import pallas as pl
from jax.experimental.pallas import tpu as pltpu

BN_EPS = 1e-5


# ----------------------------------------------------------------------------
# Fused kernel
# ----------------------------------------------------------------------------
def _make_fused_kernel(H, W, Cd, Cs, bt, mxu_bf16, approx_sigmoid):
    HW = H * W
    L = W + 1          # interior lane offset inside the padded flattened row buffer

    def sigmoid(x):
        y = 1.0 + jnp.exp(-x)                       # exp -> EUP
        if approx_sigmoid:                          # EUP reciprocal, skips NR refinement
            return pl.reciprocal(y, approx=True)
        return 1.0 / y                              # exact (keeps the 5e-4 check tight)

    def dw_taps(pad_ref, w_list, mask_lo, mask_hi):
        """Depthwise 3x3 (+ folded BN1 + ReLU) on one padded input.

        `w_list` holds one or more (C, 10) weight arrays (9 taps + BN1 bias);
        branches that share the same padded input (left & right on the context)
        reuse every lane-shifted slice load.  Taps are grouped by dw so the two
        shared (1, HW) row-wrap column masks are applied once per group.
        """
        n = len(w_list)
        accs = [None] * n
        for dw in range(3):
            cols = [None] * n
            for dh in range(3):
                start = dh * W + dw                       # pure lane offset
                v = pad_ref[:, start:start + HW]          # one shared vld per tap
                for t in range(n):
                    k = 3 * dh + dw
                    c = v * w_list[t][:, k:k + 1]         # (C,HW) * (C,1) broadcast
                    cols[t] = c if cols[t] is None else cols[t] + c
            m = mask_lo if dw == 0 else (mask_hi if dw == 2 else None)
            for t in range(n):
                c = cols[t] if m is None else cols[t] * m
                accs[t] = c if accs[t] is None else accs[t] + c
        return [jnp.maximum(accs[t] + w_list[t][:, 9:10], 0.0)   # BN1 bias + ReLU
                for t in range(n)]

    def pointwise(y, pwb_ref):
        """1x1 conv (+ folded BN2 + ReLU): (Co,Ci) @ (Ci,HW) on the MXU."""
        ci = pwb_ref.shape[1] - 1
        pw = pwb_ref[:, :ci]
        b2 = pwb_ref[:, ci:ci + 1]
        if mxu_bf16:            # production channel counts: bf16 operands, f32 accum
            y = y.astype(jnp.bfloat16)
            pw = pw.astype(jnp.bfloat16)
        y2 = jax.lax.dot_general(pw, y, (((1,), (0,)), ((), ())),
                                 preferred_element_type=jnp.float32)
        return jnp.maximum(y2 + b2, 0.0)

    def kernel(d_ref, c_ref, colmask_ref,
               dt_dw, dt_pw, lf_dw, lf_pw, rt_dw, rt_pw, fn_dw, fn_pw,
               ffm1_ref, ffm2_ref,
               o_ref,
               pad_d, pad_c, pad_cat):
        # Hoisted once per grid step (grid-invariant constants).
        mask_lo = colmask_ref[0:1, :]     # zero at output column 0    (dw = 0 taps)
        mask_hi = colmask_ref[1:2, :]     # zero at output column W-1  (dw = 2 taps)
        dt_w = dt_dw[...]
        lf_w = lf_dw[...]
        rt_w = rt_dw[...]
        fn_w = fn_dw[...]
        ffm1 = ffm1_ref[...]              # (Cd+1, Cd): rows 0..Cd-1 = W1^T, row Cd = b1
        ffm2 = ffm2_ref[...]              # (Cd, Cd+1): cols 0..Cd-1 = W2,   col Cd = b2

        # Zero ONLY the halos (interior is fully overwritten for every element).
        # Done every step so it stays correct under a megacore-parallel grid.
        for pad in (pad_d, pad_c, pad_cat):
            z = jnp.zeros((pad.shape[0], L), pad.dtype)
            pad[:, :L] = z
            pad[:, L + HW:] = z

        for bi in range(bt):              # batch tile: amortizes per-step overhead
            pad_d[:, L:L + HW] = d_ref[bi]
            pad_c[:, L:L + HW] = c_ref[bi]

            (y_det,) = dw_taps(pad_d, [dt_w], mask_lo, mask_hi)
            detail_feat = pointwise(y_det, dt_pw)                     # (Cs, HW)

            # left + right fused: each context slice loaded once.
            y_l, y_r = dw_taps(pad_c, [lf_w, rt_w], mask_lo, mask_hi)
            left = pointwise(y_l, lf_pw)                              # (Cs, HW)
            right = pointwise(y_r, rt_pw)                             # (Cs, HW)

            # Gate + channel concat == two sublane-aligned interior stores
            # straight into the final conv's padded scratch.
            pad_cat[0:Cs, L:L + HW] = sigmoid(left) * detail_feat
            pad_cat[Cs:2 * Cs, L:L + HW] = right

            (y_cat,) = dw_taps(pad_cat, [fn_w], mask_lo, mask_hi)
            pre = pointwise(y_cat, fn_pw)                             # (Cd, HW)

            # FFM on VPU + XLU (no N=1 MXU matmuls on the serial tail):
            #   a = relu(W1 @ m + b1)   via sublane-reduce of (W1^T * m_col)
            #   s = sigmoid(W2 @ a + b2) via lane-reduce   of (W2   * a_row)
            m_col = jnp.sum(pre, axis=1, keepdims=True) * (1.0 / HW)          # (Cd,1)
            a_row = jnp.maximum(
                jnp.sum(ffm1[:Cd, :] * m_col, axis=0, keepdims=True)
                + ffm1[Cd:Cd + 1, :], 0.0)                                    # (1,Cd)
            s_col = sigmoid(
                jnp.sum(ffm2[:, :Cd] * a_row, axis=1, keepdims=True)
                + ffm2[:, Cd:Cd + 1])                                         # (Cd,1)
            o_ref[bi] = pre * (s_col + 1.0)        # == pre*sigmoid(..) + pre

    return kernel


# ----------------------------------------------------------------------------
# Host-side parameter folding / consolidation
# ----------------------------------------------------------------------------
def _bn_affine(bn):
    scale = bn["gamma"] * jax.lax.rsqrt(bn["var"] + BN_EPS)
    bias = bn["beta"] - bn["mean"] * scale
    return scale, bias


def _prep_dwconv(p):
    """dwb (Ci,10): 9 depthwise taps (BN1 scale folded) + BN1 bias.
       pwb (Co,Ci+1): pointwise weights (BN2 scale folded) + BN2 bias."""
    s1, b1 = _bn_affine(p["bn1"])
    s2, b2 = _bn_affine(p["bn2"])
    ci = p["dw"].shape[0]
    taps = (p["dw"] * s1[:, None, None]).reshape(ci, 9)
    dwb = jnp.concatenate([taps, b1.reshape(ci, 1)], axis=1)
    pwb = jnp.concatenate([p["pw"] * s2[:, None], b2.reshape(-1, 1)], axis=1)
    return dwb, pwb


def _prep_ffm(p):
    c = p["w1"].shape[0]
    ffm1 = jnp.concatenate([p["w1"].T, p["b1"].reshape(1, c)], axis=0)   # (C+1, C)
    ffm2 = jnp.concatenate([p["w2"], p["b2"].reshape(c, 1)], axis=1)     # (C, C+1)
    return ffm1, ffm2


def _const_spec(a):
    nd = a.ndim
    return pl.BlockSpec(a.shape, lambda b, nd=nd: (0,) * nd)


def _f32_tile_bytes(shape):
    """f32 VMEM footprint of `shape` with the last two dims padded to (8,128)."""
    shape = tuple(shape)
    if len(shape) == 1:
        shape = (1,) + shape
    *lead, r, c = shape
    n = 1
    for d in lead:
        n *= d
    return 4 * n * (-(-r // 8) * 8) * (-(-c // 128) * 128)


# ----------------------------------------------------------------------------
# Fused forward (single pallas_call)
# ----------------------------------------------------------------------------
@partial(jax.jit, static_argnames=("batch_tile", "mxu_bf16", "approx_sigmoid"))
def simbga_forward(detail_nchw, context_nchw, params,
                   batch_tile=None, mxu_bf16=None, approx_sigmoid=False):
    B, Cd, H, W = detail_nchw.shape
    Cs = context_nchw.shape[1]
    HW = H * W
    L = W + 1
    HP = HW + 2 * L

    if batch_tile is None:
        bt = 2 if (B % 2 == 0 and B > 1) else 1
    else:
        bt = int(batch_tile)
    if B % bt != 0:
        raise ValueError(f"batch_tile={bt} must divide batch={B}")

    if mxu_bf16 is None:
        # bf16 MXU operands only pay off (and only loosen accuracy meaningfully)
        # at production channel counts; keep f32 at toy sizes.
        mxu_bf16 = bool(min(Cd, Cs) >= 32)

    # Folded / consolidated constants.
    dt_dwb, dt_pwb = _prep_dwconv(params["detail"])
    lf_dwb, lf_pwb = _prep_dwconv(params["left"])
    rt_dwb, rt_pwb = _prep_dwconv(params["right"])
    fn_dwb, fn_pwb = _prep_dwconv(params["final"])
    ffm1, ffm2 = _prep_ffm(params["ffm"])
    col = jnp.arange(HW, dtype=jnp.int32) % W
    colmask = jnp.stack([(col != 0), (col != W - 1)]).astype(jnp.float32)   # (2, HW)

    consts = [colmask, dt_dwb, dt_pwb, lf_dwb, lf_pwb,
              rt_dwb, rt_pwb, fn_dwb, fn_pwb, ffm1, ffm2]

    d2 = detail_nchw.reshape(B, Cd, HW)      # free reshape of NCHW (no transpose)
    c2 = context_nchw.reshape(B, Cs, HW)

    # Explicit VMEM budget (double-buffered I/O + constants + padded scratches),
    # checked against v7x's 64 MiB physical VMEM.
    vmem_need = (
        2 * (_f32_tile_bytes((bt, Cd, HW)) + _f32_tile_bytes((bt, Cs, HW)))
        + 2 * _f32_tile_bytes((bt, Cd, HW))
        + 2 * sum(_f32_tile_bytes(a.shape) for a in consts)
        + _f32_tile_bytes((Cd, HP)) + _f32_tile_bytes((Cs, HP))
        + _f32_tile_bytes((2 * Cs, HP)))
    if vmem_need > 48 * 1024 * 1024:
        raise ValueError("per-step VMEM footprint too large for v7x; add an "
                         "H-tile grid axis with a two-pass FFM reduction")
    vmem_limit = int(min(max(2 * vmem_need, 8 * 1024 * 1024), 32 * 1024 * 1024))

    out = pl.pallas_call(
        _make_fused_kernel(H, W, Cd, Cs, bt, mxu_bf16, approx_sigmoid),
        out_shape=jax.ShapeDtypeStruct((B, Cd, HW), jnp.float32),
        grid=(B // bt,),
        in_specs=([pl.BlockSpec((bt, Cd, HW), lambda b: (b, 0, 0)),
                   pl.BlockSpec((bt, Cs, HW), lambda b: (b, 0, 0))]
                  + [_const_spec(a) for a in consts]),
        out_specs=pl.BlockSpec((bt, Cd, HW), lambda b: (b, 0, 0)),
        scratch_shapes=[pltpu.VMEM((Cd, HP), jnp.float32),
                        pltpu.VMEM((Cs, HP), jnp.float32),
                        pltpu.VMEM((2 * Cs, HP), jnp.float32)],
        compiler_params=pltpu.CompilerParams(
            dimension_semantics=("parallel",),
            vmem_limit_bytes=vmem_limit),
    )(d2, c2, *consts)
    return out.reshape(B, Cd, H, W)


# ----------------------------------------------------------------------------
# Deterministic synthetic parameters (inference-mode BN)
# ----------------------------------------------------------------------------
def _make_bn(key, c):
    k = jax.random.split(key, 4)
    return dict(gamma=1.0 + 0.1 * jax.random.normal(k[0], (c,), jnp.float32),
                beta=0.1 * jax.random.normal(k[1], (c,), jnp.float32),
                mean=0.1 * jax.random.normal(k[2], (c,), jnp.float32),
                var=0.5 + 0.5 * jnp.abs(jax.random.normal(k[3], (c,), jnp.float32)))


def make_dwconv_params(key, ci, co):
    k = jax.random.split(key, 4)
    return dict(dw=0.25 * jax.random.normal(k[0], (ci, 3, 3), jnp.float32),
                bn1=_make_bn(k[1], ci),
                pw=jax.random.normal(k[2], (co, ci), jnp.float32) / jnp.sqrt(ci),
                bn2=_make_bn(k[3], co))


def make_ffm_params(key, c):
    k = jax.random.split(key, 4)
    return dict(w1=jax.random.normal(k[0], (c, c), jnp.float32) / jnp.sqrt(c),
                b1=0.1 * jax.random.normal(k[1], (c,), jnp.float32),
                w2=jax.random.normal(k[2], (c, c), jnp.float32) / jnp.sqrt(c),
                b2=0.1 * jax.random.normal(k[3], (c,), jnp.float32))


# ----------------------------------------------------------------------------
# Pure-JAX (XLA) reference, NCHW, inference-mode BN
# ----------------------------------------------------------------------------
def _ref_dwconv(x, p):
    ci = p["dw"].shape[0]
    co = p["pw"].shape[0]
    y = jax.lax.conv_general_dilated(
        x, p["dw"].reshape(ci, 1, 3, 3), (1, 1), ((1, 1), (1, 1)),
        dimension_numbers=("NCHW", "OIHW", "NCHW"), feature_group_count=ci)
    s1, b1 = _bn_affine(p["bn1"])
    y = jnp.maximum(y * s1[None, :, None, None] + b1[None, :, None, None], 0.0)
    y = jax.lax.conv_general_dilated(
        y, p["pw"].reshape(co, ci, 1, 1), (1, 1), ((0, 0), (0, 0)),
        dimension_numbers=("NCHW", "OIHW", "NCHW"))
    s2, b2 = _bn_affine(p["bn2"])
    return jnp.maximum(y * s2[None, :, None, None] + b2[None, :, None, None], 0.0)


def simbga_reference(detail, context, params):
    df = _ref_dwconv(detail, params["detail"])
    lf = _ref_dwconv(context, params["left"])
    rf = _ref_dwconv(context, params["right"])
    cat = jnp.concatenate([jax.nn.sigmoid(lf) * df, rf], axis=1)
    z = _ref_dwconv(cat, params["final"])
    f = params["ffm"]
    m = jnp.mean(z, axis=(2, 3), keepdims=True)
    a = jnp.maximum(jnp.einsum("oc,bcij->boij", f["w1"], m)
                    + f["b1"][None, :, None, None], 0.0)
    s = jax.nn.sigmoid(jnp.einsum("oc,bcij->boij", f["w2"], a)
                       + f["b2"][None, :, None, None])
    return z * s + z


if __name__ == "__main__":
    B, Cd, Cs, H, W = 2, 4, 8, 16, 16
    key = jax.random.PRNGKey(0)
    kd, kc, k1, k2, k3, k4, k5 = jax.random.split(key, 7)

    detail = jax.random.normal(kd, (B, Cd, H, W), jnp.float32)
    context = jax.random.normal(kc, (B, Cs, H, W), jnp.float32)

    params = dict(
        detail=make_dwconv_params(k1, Cd, Cs),
        left=make_dwconv_params(k2, Cs, Cs),
        right=make_dwconv_params(k3, Cs, Cs),
        final=make_dwconv_params(k4, 2 * Cs, Cd),
        ffm=make_ffm_params(k5, Cd),
    )

    out = jax.block_until_ready(simbga_forward(detail, context, params))
    ref = simbga_reference(detail, context, params)
    err = float(jnp.max(jnp.abs(out - ref)))
    assert out.shape == (B, Cd, H, W), out.shape
    assert err < 5e-4, f"mismatch vs reference: {err}"
    print("KERNEL_OK")
</pallas_src>

<mosaic_0001>
module attributes {stable_mosaic.version = 11 : i64} {
  func.func @kernel(%arg0: i32, %arg1: memref<2x4x256xf32, #tpu.memory_space<vmem>>, %arg2: memref<2x8x256xf32, #tpu.memory_space<vmem>>, %arg3: memref<2x256xf32, #tpu.memory_space<vmem>>, %arg4: memref<4x10xf32, #tpu.memory_space<vmem>>, %arg5: memref<8x5xf32, #tpu.memory_space<vmem>>, %arg6: memref<8x10xf32, #tpu.memory_space<vmem>>, %arg7: memref<8x9xf32, #tpu.memory_space<vmem>>, %arg8: memref<8x10xf32, #tpu.memory_space<vmem>>, %arg9: memref<8x9xf32, #tpu.memory_space<vmem>>, %arg10: memref<16x10xf32, #tpu.memory_space<vmem>>, %arg11: memref<4x17xf32, #tpu.memory_space<vmem>>, %arg12: memref<5x4xf32, #tpu.memory_space<vmem>>, %arg13: memref<4x5xf32, #tpu.memory_space<vmem>>, %arg14: memref<2x4x256xf32, #tpu.memory_space<vmem>>, %arg15: memref<4x290xf32, #tpu.memory_space<vmem>>, %arg16: memref<8x290xf32, #tpu.memory_space<vmem>>, %arg17: memref<16x290xf32, #tpu.memory_space<vmem>>) attributes {dimension_semantics = [#tpu.dimension_semantics<parallel>], iteration_bounds = array<i64: 1>, scalar_prefetch = 0 : i64, scratch_operands = 3 : i64, tpu.core_type = #tpu.core_type<tc>, window_params = [{transform_indices = @transform_0, window_bounds = array<i64: 2, 4, 256>}, {transform_indices = @transform_1, window_bounds = array<i64: 2, 8, 256>}, {pipeline_mode = #tpu.pipeline_mode<synchronous>, transform_indices = @transform_2, window_bounds = array<i64: 2, 256>}, {pipeline_mode = #tpu.pipeline_mode<synchronous>, transform_indices = @transform_3, window_bounds = array<i64: 4, 10>}, {pipeline_mode = #tpu.pipeline_mode<synchronous>, transform_indices = @transform_4, window_bounds = array<i64: 8, 5>}, {pipeline_mode = #tpu.pipeline_mode<synchronous>, transform_indices = @transform_5, window_bounds = array<i64: 8, 10>}, {pipeline_mode = #tpu.pipeline_mode<synchronous>, transform_indices = @transform_6, window_bounds = array<i64: 8, 9>}, {pipeline_mode = #tpu.pipeline_mode<synchronous>, transform_indices = @transform_7, window_bounds = array<i64: 8, 10>}, {pipeline_mode = #tpu.pipeline_mode<synchronous>, transform_indices = @transform_8, window_bounds = array<i64: 8, 9>}, {pipeline_mode = #tpu.pipeline_mode<synchronous>, transform_indices = @transform_9, window_bounds = array<i64: 16, 10>}, {pipeline_mode = #tpu.pipeline_mode<synchronous>, transform_indices = @transform_10, window_bounds = array<i64: 4, 17>}, {pipeline_mode = #tpu.pipeline_mode<synchronous>, transform_indices = @transform_11, window_bounds = array<i64: 5, 4>}, {pipeline_mode = #tpu.pipeline_mode<synchronous>, transform_indices = @transform_12, window_bounds = array<i64: 4, 5>}, {transform_indices = @transform_13, window_bounds = array<i64: 2, 4, 256>}]} {
    %c0 = arith.constant 0 : index
    %c0_0 = arith.constant 0 : index
    %0 = vector.load %arg3[%c0, %c0_0] : memref<2x256xf32, #tpu.memory_space<vmem>>, vector<1x256xf32>
    %c1 = arith.constant 1 : index
    %c0_1 = arith.constant 0 : index
    %1 = vector.load %arg3[%c1, %c0_1] : memref<2x256xf32, #tpu.memory_space<vmem>>, vector<1x256xf32>
    %c0_2 = arith.constant 0 : index
    %c0_3 = arith.constant 0 : index
    %2 = vector.load %arg4[%c0_2, %c0_3] : memref<4x10xf32, #tpu.memory_space<vmem>>, vector<4x10xf32>
    %c0_4 = arith.constant 0 : index
    %c0_5 = arith.constant 0 : index
    %3 = vector.load %arg6[%c0_4, %c0_5] : memref<8x10xf32, #tpu.memory_space<vmem>>, vector<8x10xf32>
    %c0_6 = arith.constant 0 : index
    %c0_7 = arith.constant 0 : index
    %4 = vector.load %arg8[%c0_6, %c0_7] : memref<8x10xf32, #tpu.memory_space<vmem>>, vector<8x10xf32>
    %c0_8 = arith.constant 0 : index
    %c0_9 = arith.constant 0 : index
    %5 = vector.load %arg10[%c0_8, %c0_9] : memref<16x10xf32, #tpu.memory_space<vmem>>, vector<16x10xf32>
    %c0_10 = arith.constant 0 : index
    %c0_11 = arith.constant 0 : index
    %6 = vector.load %arg12[%c0_10, %c0_11] : memref<5x4xf32, #tpu.memory_space<vmem>>, vector<5x4xf32>
    %c0_12 = arith.constant 0 : index
    %c0_13 = arith.constant 0 : index
    %7 = vector.load %arg13[%c0_12, %c0_13] : memref<4x5xf32, #tpu.memory_space<vmem>>, vector<4x5xf32>
    %cst = arith.constant 0.000000e+00 : f32
    %8 = vector.broadcast %cst : f32 to vector<4x17xf32>
    %c0_14 = arith.constant 0 : index
    %c0_15 = arith.constant 0 : index
    %9 = vector.load %arg15[%c0_14, %c0_15] : memref<4x290xf32, #tpu.memory_space<vmem>>, vector<4x17xf32>
    tpu.vector_store %arg15[%c0_14, %c0_15], %8 {strides = array<i32>} : memref<4x290xf32, #tpu.memory_space<vmem>>, vector<4x17xf32>,
    %c0_16 = arith.constant 0 : index
    %c273 = arith.constant 273 : index
    %10 = vector.load %arg15[%c0_16, %c273] : memref<4x290xf32, #tpu.memory_space<vmem>>, vector<4x17xf32>
    tpu.vector_store %arg15[%c0_16, %c273], %8 {strides = array<i32>} : memref<4x290xf32, #tpu.memory_space<vmem>>, vector<4x17xf32>,
    %cst_17 = arith.constant 0.000000e+00 : f32
    %11 = vector.broadcast %cst_17 : f32 to vector<8x17xf32>
    %c0_18 = arith.constant 0 : index
    %c0_19 = arith.constant 0 : index
    %12 = vector.load %arg16[%c0_18, %c0_19] : memref<8x290xf32, #tpu.memory_space<vmem>>, vector<8x17xf32>
    tpu.vector_store %arg16[%c0_18, %c0_19], %11 {strides = array<i32>} : memref<8x290xf32, #tpu.memory_space<vmem>>, vector<8x17xf32>,
    %c0_20 = arith.constant 0 : index
    %c273_21 = arith.constant 273 : index
    %13 = vector.load %arg16[%c0_20, %c273_21] : memref<8x290xf32, #tpu.memory_space<vmem>>, vector<8x17xf32>
    tpu.vector_store %arg16[%c0_20, %c273_21], %11 {strides = array<i32>} : memref<8x290xf32, #tpu.memory_space<vmem>>, vector<8x17xf32>,
    %cst_22 = arith.constant 0.000000e+00 : f32
    %14 = vector.broadcast %cst_22 : f32 to vector<16x17xf32>
    %c0_23 = arith.constant 0 : index
    %c0_24 = arith.constant 0 : index
    %15 = vector.load %arg17[%c0_23, %c0_24] : memref<16x290xf32, #tpu.memory_space<vmem>>, vector<16x17xf32>
    tpu.vector_store %arg17[%c0_23, %c0_24], %14 {strides = array<i32>} : memref<16x290xf32, #tpu.memory_space<vmem>>, vector<16x17xf32>,
    %c0_25 = arith.constant 0 : index
    %c273_26 = arith.constant 273 : index
    %16 = vector.load %arg17[%c0_25, %c273_26] : memref<16x290xf32, #tpu.memory_space<vmem>>, vector<16x17xf32>
    tpu.vector_store %arg17[%c0_25, %c273_26], %14 {strides = array<i32>} : memref<16x290xf32, #tpu.memory_space<vmem>>, vector<16x17xf32>,
    %c0_27 = arith.constant 0 : index
    %c0_28 = arith.constant 0 : index
    %c0_29 = arith.constant 0 : index
    %17 = vector.load %arg1[%c0_27, %c0_28, %c0_29] : memref<2x4x256xf32, #tpu.memory_space<vmem>>, vector<1x4x256xf32>
    %18 = vector.shape_cast %17 : vector<1x4x256xf32> to vector<4x256xf32>
    %c0_30 = arith.constant 0 : index
    %c17 = arith.constant 17 : index
    %19 = vector.load %arg15[%c0_30, %c17] : memref<4x290xf32, #tpu.memory_space<vmem>>, vector<4x256xf32>
    tpu.vector_store %arg15[%c0_30, %c17], %18 {strides = array<i32>} : memref<4x290xf32, #tpu.memory_space<vmem>>, vector<4x256xf32>,
    %c0_31 = arith.constant 0 : index
    %c0_32 = arith.constant 0 : index
    %c0_33 = arith.constant 0 : index
    %20 = vector.load %arg2[%c0_31, %c0_32, %c0_33] : memref<2x8x256xf32, #tpu.memory_space<vmem>>, vector<1x8x256xf32>
    %21 = vector.shape_cast %20 : vector<1x8x256xf32> to vector<8x256xf32>
    %c0_34 = arith.constant 0 : index
    %c17_35 = arith.constant 17 : index
    %22 = vector.load %arg16[%c0_34, %c17_35] : memref<8x290xf32, #tpu.memory_space<vmem>>, vector<8x256xf32>
    tpu.vector_store %arg16[%c0_34, %c17_35], %21 {strides = array<i32>} : memref<8x290xf32, #tpu.memory_space<vmem>>, vector<8x256xf32>,
    %c0_36 = arith.constant 0 : index
    %c0_37 = arith.constant 0 : index
    %23 = vector.load %arg15[%c0_36, %c0_37] : memref<4x290xf32, #tpu.memory_space<vmem>>, vector<4x256xf32>
    %24 = vector.extract_strided_slice %2 {offsets = [0, 0], sizes = [4, 1], strides = [1, 1]} : vector<4x10xf32> to vector<4x1xf32>
    %25 = vector.broadcast %24 : vector<4x1xf32> to vector<4x256xf32>
    %26 = arith.mulf %23, %25 : vector<4x256xf32>
    %c0_38 = arith.constant 0 : index
    %c16 = arith.constant 16 : index
    %27 = vector.load %arg15[%c0_38, %c16] : memref<4x290xf32, #tpu.memory_space<vmem>>, vector<4x256xf32>
    %28 = vector.extract_strided_slice %2 {offsets = [0, 3], sizes = [4, 1], strides = [1, 1]} : vector<4x10xf32> to vector<4x1xf32>
    %29 = vector.broadcast %28 : vector<4x1xf32> to vector<4x256xf32>
    %30 = arith.mulf %27, %29 : vector<4x256xf32>
    %31 = arith.addf %26, %30 : vector<4x256xf32>
    %c0_39 = arith.constant 0 : index
    %c32 = arith.constant 32 : index
    %32 = vector.load %arg15[%c0_39, %c32] : memref<4x290xf32, #tpu.memory_space<vmem>>, vector<4x256xf32>
    %33 = vector.extract_strided_slice %2 {offsets = [0, 6], sizes = [4, 1], strides = [1, 1]} : vector<4x10xf32> to vector<4x1xf32>
    %34 = vector.broadcast %33 : vector<4x1xf32> to vector<4x256xf32>
    %35 = arith.mulf %32, %34 : vector<4x256xf32>
    %36 = arith.addf %31, %35 : vector<4x256xf32>
    %37 = vector.broadcast %0 : vector<1x256xf32> to vector<4x256xf32>
    %38 = arith.mulf %36, %37 : vector<4x256xf32>
    %c0_40 = arith.constant 0 : index
    %c1_41 = arith.constant 1 : index
    %39 = vector.load %arg15[%c0_40, %c1_41] : memref<4x290xf32, #tpu.memory_space<vmem>>, vector<4x256xf32>
    %40 = vector.extract_strided_slice %2 {offsets = [0, 1], sizes = [4, 1], strides = [1, 1]} : vector<4x10xf32> to vector<4x1xf32>
    %41 = vector.broadcast %40 : vector<4x1xf32> to vector<4x256xf32>
    %42 = arith.mulf %39, %41 : vector<4x256xf32>
    %c0_42 = arith.constant 0 : index
    %c17_43 = arith.constant 17 : index
    %43 = vector.load %arg15[%c0_42, %c17_43] : memref<4x290xf32, #tpu.memory_space<vmem>>, vector<4x256xf32>
    %44 = vector.extract_strided_slice %2 {offsets = [0, 4], sizes = [4, 1], strides = [1, 1]} : vector<4x10xf32> to vector<4x1xf32>
    %45 = vector.broadcast %44 : vector<4x1xf32> to vector<4x256xf32>
    %46 = arith.mulf %43, %45 : vector<4x256xf32>
    %47 = arith.addf %42, %46 : vector<4x256xf32>
    %c0_44 = arith.constant 0 : index
    %c33 = arith.constant 33 : index
    %48 = vector.load %arg15[%c0_44, %c33] : memref<4x290xf32, #tpu.memory_space<vmem>>, vector<4x256xf32>
    %49 = vector.extract_strided_slice %2 {offsets = [0, 7], sizes = [4, 1], strides = [1, 1]} : vector<4x10xf32> to vector<4x1xf32>
    %50 = vector.broadcast %49 : vector<4x1xf32> to vector<4x256xf32>
    %51 = arith.mulf %48, %50 : vector<4x256xf32>
    %52 = arith.addf %47, %51 : vector<4x256xf32>
    %53 = arith.addf %38, %52 : vector<4x256xf32>
    %c0_45 = arith.constant 0 : index
    %c2 = arith.constant 2 : index
    %54 = vector.load %arg15[%c0_45, %c2] : memref<4x290xf32, #tpu.memory_space<vmem>>, vector<4x256xf32>
    %55 = vector.extract_strided_slice %2 {offsets = [0, 2], sizes = [4, 1], strides = [1, 1]} : vector<4x10xf32> to vector<4x1xf32>
    %56 = vector.broadcast %55 : vector<4x1xf32> to vector<4x256xf32>
    %57 = arith.mulf %54, %56 : vector<4x256xf32>
    %c0_46 = arith.constant 0 : index
    %c18 = arith.constant 18 : index
    %58 = vector.load %arg15[%c0_46, %c18] : memref<4x290xf32, #tpu.memory_space<vmem>>, vector<4x256xf32>
    %59 = vector.extract_strided_slice %2 {offsets = [0, 5], sizes = [4, 1], strides = [1, 1]} : vector<4x10xf32> to vector<4x1xf32>
    %60 = vector.broadcast %59 : vector<4x1xf32> to vector<4x256xf32>
    %61 = arith.mulf %58, %60 : vector<4x256xf32>
    %62 = arith.addf %57, %61 : vector<4x256xf32>
    %c0_47 = arith.constant 0 : index
    %c34 = arith.constant 34 : index
    %63 = vector.load %arg15[%c0_47, %c34] : memref<4x290xf32, #tpu.memory_space<vmem>>, vector<4x256xf32>
    %64 = vector.extract_strided_slice %2 {offsets = [0, 8], sizes = [4, 1], strides = [1, 1]} : vector<4x10xf32> to vector<4x1xf32>
    %65 = vector.broadcast %64 : vector<4x1xf32> to vector<4x256xf32>
    %66 = arith.mulf %63, %65 : vector<4x256xf32>
    %67 = arith.addf %62, %66 : vector<4x256xf32>
    %68 = vector.broadcast %1 : vector<1x256xf32> to vector<4x256xf32>
    %69 = arith.mulf %67, %68 : vector<4x256xf32>
    %70 = arith.addf %53, %69 : vector<4x256xf32>
    %71 = vector.extract_strided_slice %2 {offsets = [0, 9], sizes = [4, 1], strides = [1, 1]} : vector<4x10xf32> to vector<4x1xf32>
    %72 = vector.broadcast %71 : vector<4x1xf32> to vector<4x256xf32>
    %73 = arith.addf %70, %72 : vector<4x256xf32>
    %cst_48 = arith.constant 0.000000e+00 : f32
    %74 = vector.broadcast %cst_48 : f32 to vector<4x256xf32>
    %75 = arith.maximumf %73, %74 : vector<4x256xf32>
    %c0_49 = arith.constant 0 : index
    %c0_50 = arith.constant 0 : index
    %76 = vector.load %arg5[%c0_49, %c0_50] : memref<8x5xf32, #tpu.memory_space<vmem>>, vector<8x4xf32>
    %c0_51 = arith.constant 0 : index
    %c4 = arith.constant 4 : index
    %77 = vector.load %arg5[%c0_51, %c4] : memref<8x5xf32, #tpu.memory_space<vmem>>, vector<8x1xf32>
    %cst_52 = arith.constant dense<0.000000e+00> : vector<8x256xf32>
    %78 = tpu.matmul %76, %75, %cst_52 {dimension_numbers = #tpu.dot_dimension_numbers<[1], [0], [0], [1], [0, 0, 1, 1], [], []>} : vector<8x4xf32>, vector<4x256xf32>, vector<8x256xf32> -> vector<8x256xf32>
    %79 = vector.broadcast %77 : vector<8x1xf32> to vector<8x256xf32>
    %80 = arith.addf %78, %79 : vector<8x256xf32>
    %cst_53 = arith.constant 0.000000e+00 : f32
    %81 = vector.broadcast %cst_53 : f32 to vector<8x256xf32>
    %82 = arith.maximumf %80, %81 : vector<8x256xf32>
    %c0_54 = arith.constant 0 : index
    %c0_55 = arith.constant 0 : index
    %83 = vector.load %arg16[%c0_54, %c0_55] : memref<8x290xf32, #tpu.memory_space<vmem>>, vector<8x256xf32>
    %84 = vector.extract_strided_slice %3 {offsets = [0, 0], sizes = [8, 1], strides = [1, 1]} : vector<8x10xf32> to vector<8x1xf32>
    %85 = vector.broadcast %84 : vector<8x1xf32> to vector<8x256xf32>
    %86 = arith.mulf %83, %85 : vector<8x256xf32>
    %87 = vector.extract_strided_slice %4 {offsets = [0, 0], sizes = [8, 1], strides = [1, 1]} : vector<8x10xf32> to vector<8x1xf32>
    %88 = vector.broadcast %87 : vector<8x1xf32> to vector<8x256xf32>
    %89 = arith.mulf %83, %88 : vector<8x256xf32>
    %c0_56 = arith.constant 0 : index
    %c16_57 = arith.constant 16 : index
    %90 = vector.load %arg16[%c0_56, %c16_57] : memref<8x290xf32, #tpu.memory_space<vmem>>, vector<8x256xf32>
    %91 = vector.extract_strided_slice %3 {offsets = [0, 3], sizes = [8, 1], strides = [1, 1]} : vector<8x10xf32> to vector<8x1xf32>
    %92 = vector.broadcast %91 : vector<8x1xf32> to vector<8x256xf32>
    %93 = arith.mulf %90, %92 : vector<8x256xf32>
    %94 = arith.addf %86, %93 : vector<8x256xf32>
    %95 = vector.extract_strided_slice %4 {offsets = [0, 3], sizes = [8, 1], strides = [1, 1]} : vector<8x10xf32> to vector<8x1xf32>
    %96 = vector.broadcast %95 : vector<8x1xf32> to vector<8x256xf32>
    %97 = arith.mulf %90, %96 : vector<8x256xf32>
    %98 = arith.addf %89, %97 : vector<8x256xf32>
    %c0_58 = arith.constant 0 : index
    %c32_59 = arith.constant 32 : index
    %99 = vector.load %arg16[%c0_58, %c32_59] : memref<8x290xf32, #tpu.memory_space<vmem>>, vector<8x256xf32>
    %100 = vector.extract_strided_slice %3 {offsets = [0, 6], sizes = [8, 1], strides = [1, 1]} : vector<8x10xf32> to vector<8x1xf32>
    %101 = vector.broadcast %100 : vector<8x1xf32> to vector<8x256xf32>
    %102 = arith.mulf %99, %101 : vector<8x256xf32>
    %103 = arith.addf %94, %102 : vector<8x256xf32>
    %104 = vector.extract_strided_slice %4 {offsets = [0, 6], sizes = [8, 1], strides = [1, 1]} : vector<8x10xf32> to vector<8x1xf32>
    %105 = vector.broadcast %104 : vector<8x1xf32> to vector<8x256xf32>
    %106 = arith.mulf %99, %105 : vector<8x256xf32>
    %107 = arith.addf %98, %106 : vector<8x256xf32>
    %108 = vector.broadcast %0 : vector<1x256xf32> to vector<8x256xf32>
    %109 = arith.mulf %103, %108 : vector<8x256xf32>
    %110 = vector.broadcast %0 : vector<1x256xf32> to vector<8x256xf32>
    %111 = arith.mulf %107, %110 : vector<8x256xf32>
    %c0_60 = arith.constant 0 : index
    %c1_61 = arith.constant 1 : index
    %112 = vector.load %arg16[%c0_60, %c1_61] : memref<8x290xf32, #tpu.memory_space<vmem>>, vector<8x256xf32>
    %113 = vector.extract_strided_slice %3 {offsets = [0, 1], sizes = [8, 1], strides = [1, 1]} : vector<8x10xf32> to vector<8x1xf32>
    %114 = vector.broadcast %113 : vector<8x1xf32> to vector<8x256xf32>
    %115 = arith.mulf %112, %114 : vector<8x256xf32>
    %116 = vector.extract_strided_slice %4 {offsets = [0, 1], sizes = [8, 1], strides = [1, 1]} : vector<8x10xf32> to vector<8x1xf32>
    %117 = vector.broadcast %116 : vector<8x1xf32> to vector<8x256xf32>
    %118 = arith.mulf %112, %117 : vector<8x256xf32>
    %c0_62 = arith.constant 0 : index
    %c17_63 = arith.constant 17 : index
    %119 = vector.load %arg16[%c0_62, %c17_63] : memref<8x290xf32, #tpu.memory_space<vmem>>, vector<8x256xf32>
    %120 = vector.extract_strided_slice %3 {offsets = [0, 4], sizes = [8, 1], strides = [1, 1]} : vector<8x10xf32> to vector<8x1xf32>
    %121 = vector.broadcast %120 : vector<8x1xf32> to vector<8x256xf32>
    %122 = arith.mulf %119, %121 : vector<8x256xf32>
    %123 = arith.addf %115, %122 : vector<8x256xf32>
    %124 = vector.extract_strided_slice %4 {offsets = [0, 4], sizes = [8, 1], strides = [1, 1]} : vector<8x10xf32> to vector<8x1xf32>
    %125 = vector.broadcast %124 : vector<8x1xf32> to vector<8x256xf32>
    %126 = arith.mulf %119, %125 : vector<8x256xf32>
    %127 = arith.addf %118, %126 : vector<8x256xf32>
    %c0_64 = arith.constant 0 : index
    %c33_65 = arith.constant 33 : index
    %128 = vector.load %arg16[%c0_64, %c33_65] : memref<8x290xf32, #tpu.memory_space<vmem>>, vector<8x256xf32>
    %129 = vector.extract_strided_slice %3 {offsets = [0, 7], sizes = [8, 1], strides = [1, 1]} : vector<8x10xf32> to vector<8x1xf32>
    %130 = vector.broadcast %129 : vector<8x1xf32> to vector<8x256xf32>
    %131 = arith.mulf %128, %130 : vector<8x256xf32>
    %132 = arith.addf %123, %131 : vector<8x256xf32>
    %133 = vector.extract_strided_slice %4 {offsets = [0, 7], sizes = [8, 1], strides = [1, 1]} : vector<8x10xf32> to vector<8x1xf32>
    %134 = vector.broadcast %133 : vector<8x1xf32> to vector<8x256xf32>
    %135 = arith.mulf %128, %134 : vector<8x256xf32>
    %136 = arith.addf %127, %135 : vector<8x256xf32>
    %137 = arith.addf %109, %132 : vector<8x256xf32>
    %138 = arith.addf %111, %136 : vector<8x256xf32>
    %c0_66 = arith.constant 0 : index
    %c2_67 = arith.constant 2 : index
    %139 = vector.load %arg16[%c0_66, %c2_67] : memref<8x290xf32, #tpu.memory_space<vmem>>, vector<8x256xf32>
    %140 = vector.extract_strided_slice %3 {offsets = [0, 2], sizes = [8, 1], strides = [1, 1]} : vector<8x10xf32> to vector<8x1xf32>
    %141 = vector.broadcast %140 : vector<8x1xf32> to vector<8x256xf32>
    %142 = arith.mulf %139, %141 : vector<8x256xf32>
    %143 = vector.extract_strided_slice %4 {offsets = [0, 2], sizes = [8, 1], strides = [1, 1]} : vector<8x10xf32> to vector<8x1xf32>
    %144 = vector.broadcast %143 : vector<8x1xf32> to vector<8x256xf32>
    %145 = arith.mulf %139, %144 : vector<8x256xf32>
    %c0_68 = arith.constant 0 : index
    %c18_69 = arith.constant 18 : index
    %146 = vector.load %arg16[%c0_68, %c18_69] : memref<8x290xf32, #tpu.memory_space<vmem>>, vector<8x256xf32>
    %147 = vector.extract_strided_slice %3 {offsets = [0, 5], sizes = [8, 1], strides = [1, 1]} : vector<8x10xf32> to vector<8x1xf32>
    %148 = vector.broadcast %147 : vector<8x1xf32> to vector<8x256xf32>
    %149 = arith.mulf %146, %148 : vector<8x256xf32>
    %150 = arith.addf %142, %149 : vector<8x256xf32>
    %151 = vector.extract_strided_slice %4 {offsets = [0, 5], sizes = [8, 1], strides = [1, 1]} : vector<8x10xf32> to vector<8x1xf32>
    %152 = vector.broadcast %151 : vector<8x1xf32> to vector<8x256xf32>
    %153 = arith.mulf %146, %152 : vector<8x256xf32>
    %154 = arith.addf %145, %153 : vector<8x256xf32>
    %c0_70 = arith.constant 0 : index
    %c34_71 = arith.constant 34 : index
    %155 = vector.load %arg16[%c0_70, %c34_71] : memref<8x290xf32, #tpu.memory_space<vmem>>, vector<8x256xf32>
    %156 = vector.extract_strided_slice %3 {offsets = [0, 8], sizes = [8, 1], strides = [1, 1]} : vector<8x10xf32> to vector<8x1xf32>
    %157 = vector.broadcast %156 : vector<8x1xf32> to vector<8x256xf32>
    %158 = arith.mulf %155, %157 : vector<8x256xf32>
    %159 = arith.addf %150, %158 : vector<8x256xf32>
    %160 = vector.extract_strided_slice %4 {offsets = [0, 8], sizes = [8, 1], strides = [1, 1]} : vector<8x10xf32> to vector<8x1xf32>
    %161 = vector.broadcast %160 : vector<8x1xf32> to vector<8x256xf32>
    %162 = arith.mulf %155, %161 : vector<8x256xf32>
    %163 = arith.addf %154, %162 : vector<8x256xf32>
    %164 = vector.broadcast %1 : vector<1x256xf32> to vector<8x256xf32>
    %165 = arith.mulf %159, %164 : vector<8x256xf32>
    %166 = arith.addf %137, %165 : vector<8x256xf32>
    %167 = vector.broadcast %1 : vector<1x256xf32> to vector<8x256xf32>
    %168 = arith.mulf %163, %167 : vector<8x256xf32>
    %169 = arith.addf %138, %168 : vector<8x256xf32>
    %170 = vector.extract_strided_slice %3 {offsets = [0, 9], sizes = [8, 1], strides = [1, 1]} : vector<8x10xf32> to vector<8x1xf32>
    %171 = vector.broadcast %170 : vector<8x1xf32> to vector<8x256xf32>
    %172 = arith.addf %166, %171 : vector<8x256xf32>
    %cst_72 = arith.constant 0.000000e+00 : f32
    %173 = vector.broadcast %cst_72 : f32 to vector<8x256xf32>
    %174 = arith.maximumf %172, %173 : vector<8x256xf32>
    %175 = vector.extract_strided_slice %4 {offsets = [0, 9], sizes = [8, 1], strides = [1, 1]} : vector<8x10xf32> to vector<8x1xf32>
    %176 = vector.broadcast %175 : vector<8x1xf32> to vector<8x256xf32>
    %177 = arith.addf %169, %176 : vector<8x256xf32>
    %cst_73 = arith.constant 0.000000e+00 : f32
    %178 = vector.broadcast %cst_73 : f32 to vector<8x256xf32>
    %179 = arith.maximumf %177, %178 : vector<8x256xf32>
    %c0_74 = arith.constant 0 : index
    %c0_75 = arith.constant 0 : index
    %180 = vector.load %arg7[%c0_74, %c0_75] : memref<8x9xf32, #tpu.memory_space<vmem>>, vector<8x8xf32>
    %c0_76 = arith.constant 0 : index
    %c8 = arith.constant 8 : index
    %181 = vector.load %arg7[%c0_76, %c8] : memref<8x9xf32, #tpu.memory_space<vmem>>, vector<8x1xf32>
    %cst_77 = arith.constant dense<0.000000e+00> : vector<8x256xf32>
    %182 = tpu.matmul %180, %174, %cst_77 {dimension_numbers = #tpu.dot_dimension_numbers<[1], [0], [0], [1], [0, 0, 1, 1], [], []>} : vector<8x8xf32>, vector<8x256xf32>, vector<8x256xf32> -> vector<8x256xf32>
    %183 = vector.broadcast %181 : vector<8x1xf32> to vector<8x256xf32>
    %184 = arith.addf %182, %183 : vector<8x256xf32>
    %cst_78 = arith.constant 0.000000e+00 : f32
    %185 = vector.broadcast %cst_78 : f32 to vector<8x256xf32>
    %186 = arith.maximumf %184, %185 : vector<8x256xf32>
    %c0_79 = arith.constant 0 : index
    %c0_80 = arith.constant 0 : index
    %187 = vector.load %arg9[%c0_79, %c0_80] : memref<8x9xf32, #tpu.memory_space<vmem>>, vector<8x8xf32>
    %c0_81 = arith.constant 0 : index
    %c8_82 = arith.constant 8 : index
    %188 = vector.load %arg9[%c0_81, %c8_82] : memref<8x9xf32, #tpu.memory_space<vmem>>, vector<8x1xf32>
    %cst_83 = arith.constant dense<0.000000e+00> : vector<8x256xf32>
    %189 = tpu.matmul %187, %179, %cst_83 {dimension_numbers = #tpu.dot_dimension_numbers<[1], [0], [0], [1], [0, 0, 1, 1], [], []>} : vector<8x8xf32>, vector<8x256xf32>, vector<8x256xf32> -> vector<8x256xf32>
    %190 = vector.broadcast %188 : vector<8x1xf32> to vector<8x256xf32>
    %191 = arith.addf %189, %190 : vector<8x256xf32>
    %cst_84 = arith.constant 0.000000e+00 : f32
    %192 = vector.broadcast %cst_84 : f32 to vector<8x256xf32>
    %193 = arith.maximumf %191, %192 : vector<8x256xf32>
    %cst_85 = arith.constant 0.000000e+00 : f32
    %194 = vector.broadcast %cst_85 : f32 to vector<8x256xf32>
    %195 = arith.subf %194, %186 : vector<8x256xf32>
    %196 = math.exp %195 : vector<8x256xf32>
    %cst_86 = arith.constant 1.000000e+00 : f32
    %197 = vector.broadcast %cst_86 : f32 to vector<8x256xf32>
    %198 = arith.addf %197, %196 : vector<8x256xf32>
    %cst_87 = arith.constant 1.000000e+00 : f32
    %199 = vector.broadcast %cst_87 : f32 to vector<8x256xf32>
    %200 = arith.divf %199, %198 : vector<8x256xf32>
    %201 = arith.mulf %200, %82 : vector<8x256xf32>
    %c0_88 = arith.constant 0 : index
    %c17_89 = arith.constant 17 : index
    %202 = vector.load %arg17[%c0_88, %c17_89] : memref<16x290xf32, #tpu.memory_space<vmem>>, vector<8x256xf32>
    tpu.vector_store %arg17[%c0_88, %c17_89], %201 {strides = array<i32>} : memref<16x290xf32, #tpu.memory_space<vmem>>, vector<8x256xf32>,
    %c8_90 = arith.constant 8 : index
    %c17_91 = arith.constant 17 : index
    %203 = vector.load %arg17[%c8_90, %c17_91] : memref<16x290xf32, #tpu.memory_space<vmem>>, vector<8x256xf32>
    tpu.vector_store %arg17[%c8_90, %c17_91], %193 {strides = array<i32>} : memref<16x290xf32, #tpu.memory_space<vmem>>, vector<8x256xf32>,
    %c0_92 = arith.constant 0 : index
    %c0_93 = arith.constant 0 : index
    %204 = vector.load %arg17[%c0_92, %c0_93] : memref<16x290xf32, #tpu.memory_space<vmem>>, vector<16x256xf32>
    %205 = vector.extract_strided_slice %5 {offsets = [0, 0], sizes = [16, 1], strides = [1, 1]} : vector<16x10xf32> to vector<16x1xf32>
    %206 = vector.broadcast %205 : vector<16x1xf32> to vector<16x256xf32>
    %207 = arith.mulf %204, %206 : vector<16x256xf32>
    %c0_94 = arith.constant 0 : index
    %c16_95 = arith.constant 16 : index
    %208 = vector.load %arg17[%c0_94, %c16_95] : memref<16x290xf32, #tpu.memory_space<vmem>>, vector<16x256xf32>
    %209 = vector.extract_strided_slice %5 {offsets = [0, 3], sizes = [16, 1], strides = [1, 1]} : vector<16x10xf32> to vector<16x1xf32>
    %210 = vector.broadcast %209 : vector<16x1xf32> to vector<16x256xf32>
    %211 = arith.mulf %208, %210 : vector<16x256xf32>
    %212 = arith.addf %207, %211 : vector<16x256xf32>
    %c0_96 = arith.constant 0 : index
    %c32_97 = arith.constant 32 : index
    %213 = vector.load %arg17[%c0_96, %c32_97] : memref<16x290xf32, #tpu.memory_space<vmem>>, vector<16x256xf32>
    %214 = vector.extract_strided_slice %5 {offsets = [0, 6], sizes = [16, 1], strides = [1, 1]} : vector<16x10xf32> to vector<16x1xf32>
    %215 = vector.broadcast %214 : vector<16x1xf32> to vector<16x256xf32>
    %216 = arith.mulf %213, %215 : vector<16x256xf32>
    %217 = arith.addf %212, %216 : vector<16x256xf32>
    %218 = vector.broadcast %0 : vector<1x256xf32> to vector<16x256xf32>
    %219 = arith.mulf %217, %218 : vector<16x256xf32>
    %c0_98 = arith.constant 0 : index
    %c1_99 = arith.constant 1 : index
    %220 = vector.load %arg17[%c0_98, %c1_99] : memref<16x290xf32, #tpu.memory_space<vmem>>, vector<16x256xf32>
    %221 = vector.extract_strided_slice %5 {offsets = [0, 1], sizes = [16, 1], strides = [1, 1]} : vector<16x10xf32> to vector<16x1xf32>
    %222 = vector.broadcast %221 : vector<16x1xf32> to vector<16x256xf32>
    %223 = arith.mulf %220, %222 : vector<16x256xf32>
    %c0_100 = arith.constant 0 : index
    %c17_101 = arith.constant 17 : index
    %224 = vector.load %arg17[%c0_100, %c17_101] : memref<16x290xf32, #tpu.memory_space<vmem>>, vector<16x256xf32>
    %225 = vector.extract_strided_slice %5 {offsets = [0, 4], sizes = [16, 1], strides = [1, 1]} : vector<16x10xf32> to vector<16x1xf32>
    %226 = vector.broadcast %225 : vector<16x1xf32> to vector<16x256xf32>
    %227 = arith.mulf %224, %226 : vector<16x256xf32>
    %228 = arith.addf %223, %227 : vector<16x256xf32>
    %c0_102 = arith.constant 0 : index
    %c33_103 = arith.constant 33 : index
    %229 = vector.load %arg17[%c0_102, %c33_103] : memref<16x290xf32, #tpu.memory_space<vmem>>, vector<16x256xf32>
    %230 = vector.extract_strided_slice %5 {offsets = [0, 7], sizes = [16, 1], strides = [1, 1]} : vector<16x10xf32> to vector<16x1xf32>
    %231 = vector.broadcast %230 : vector<16x1xf32> to vector<16x256xf32>
    %232 = arith.mulf %229, %231 : vector<16x256xf32>
    %233 = arith.addf %228, %232 : vector<16x256xf32>
    %234 = arith.addf %219, %233 : vector<16x256xf32>
    %c0_104 = arith.constant 0 : index
    %c2_105 = arith.constant 2 : index
    %235 = vector.load %arg17[%c0_104, %c2_105] : memref<16x290xf32, #tpu.memory_space<vmem>>, vector<16x256xf32>
    %236 = vector.extract_strided_slice %5 {offsets = [0, 2], sizes = [16, 1], strides = [1, 1]} : vector<16x10xf32> to vector<16x1xf32>
    %237 = vector.broadcast %236 : vector<16x1xf32> to vector<16x256xf32>
    %238 = arith.mulf %235, %237 : vector<16x256xf32>
    %c0_106 = arith.constant 0 : index
    %c18_107 = arith.constant 18 : index
    %239 = vector.load %arg17[%c0_106, %c18_107] : memref<16x290xf32, #tpu.memory_space<vmem>>, vector<16x256xf32>
    %240 = vector.extract_strided_slice %5 {offsets = [0, 5], sizes = [16, 1], strides = [1, 1]} : vector<16x10xf32> to vector<16x1xf32>
    %241 = vector.broadcast %240 : vector<16x1xf32> to vector<16x256xf32>
    %242 = arith.mulf %239, %241 : vector<16x256xf32>
    %243 = arith.addf %238, %242 : vector<16x256xf32>
    %c0_108 = arith.constant 0 : index
    %c34_109 = arith.constant 34 : index
    %244 = vector.load %arg17[%c0_108, %c34_109] : memref<16x290xf32, #tpu.memory_space<vmem>>, vector<16x256xf32>
    %245 = vector.extract_strided_slice %5 {offsets = [0, 8], sizes = [16, 1], strides = [1, 1]} : vector<16x10xf32> to vector<16x1xf32>
    %246 = vector.broadcast %245 : vector<16x1xf32> to vector<16x256xf32>
    %247 = arith.mulf %244, %246 : vector<16x256xf32>
    %248 = arith.addf %243, %247 : vector<16x256xf32>
    %249 = vector.broadcast %1 : vector<1x256xf32> to vector<16x256xf32>
    %250 = arith.mulf %248, %249 : vector<16x256xf32>
    %251 = arith.addf %234, %250 : vector<16x256xf32>
    %252 = vector.extract_strided_slice %5 {offsets = [0, 9], sizes = [16, 1], strides = [1, 1]} : vector<16x10xf32> to vector<16x1xf32>
    %253 = vector.broadcast %252 : vector<16x1xf32> to vector<16x256xf32>
    %254 = arith.addf %251, %253 : vector<16x256xf32>
    %cst_110 = arith.constant 0.000000e+00 : f32
    %255 = vector.broadcast %cst_110 : f32 to vector<16x256xf32>
    %256 = arith.maximumf %254, %255 : vector<16x256xf32>
    %c0_111 = arith.constant 0 : index
    %c0_112 = arith.constant 0 : index
    %257 = vector.load %arg11[%c0_111, %c0_112] : memref<4x17xf32, #tpu.memory_space<vmem>>, vector<4x16xf32>
    %c0_113 = arith.constant 0 : index
    %c16_114 = arith.constant 16 : index
    %258 = vector.load %arg11[%c0_113, %c16_114] : memref<4x17xf32, #tpu.memory_space<vmem>>, vector<4x1xf32>
    %cst_115 = arith.constant dense<0.000000e+00> : vector<4x256xf32>
    %259 = tpu.matmul %257, %256, %cst_115 {dimension_numbers = #tpu.dot_dimension_numbers<[1], [0], [0], [1], [0, 0, 1, 1], [], []>} : vector<4x16xf32>, vector<16x256xf32>, vector<4x256xf32> -> vector<4x256xf32>
    %260 = vector.broadcast %258 : vector<4x1xf32> to vector<4x256xf32>
    %261 = arith.addf %259, %260 : vector<4x256xf32>
    %cst_116 = arith.constant 0.000000e+00 : f32
    %262 = vector.broadcast %cst_116 : f32 to vector<4x256xf32>
    %263 = arith.maximumf %261, %262 : vector<4x256xf32>
    %cst_117 = arith.constant dense<0.000000e+00> : vector<4xf32>
    %264 = vector.multi_reduction <add>, %263, %cst_117 [1] : vector<4x256xf32> to vector<4xf32>
    %265 = vector.shape_cast %264 : vector<4xf32> to vector<4x1xf32>
    %cst_118 = arith.constant 3.906250e-03 : f32
    %266 = vector.broadcast %cst_118 : f32 to vector<4x1xf32>
    %267 = arith.mulf %265, %266 : vector<4x1xf32>
    %268 = vector.extract_strided_slice %6 {offsets = [0, 0], sizes = [4, 4], strides = [1, 1]} : vector<5x4xf32> to vector<4x4xf32>
    %269 = vector.broadcast %267 : vector<4x1xf32> to vector<4x4xf32>
    %270 = arith.mulf %268, %269 : vector<4x4xf32>
    %cst_119 = arith.constant dense<0.000000e+00> : vector<4xf32>
    %271 = vector.multi_reduction <add>, %270, %cst_119 [0] : vector<4x4xf32> to vector<4xf32>
    %272 = vector.shape_cast %271 : vector<4xf32> to vector<1x4xf32>
    %273 = vector.extract_strided_slice %6 {offsets = [4, 0], sizes = [1, 4], strides = [1, 1]} : vector<5x4xf32> to vector<1x4xf32>
    %274 = arith.addf %272, %273 : vector<1x4xf32>
    %cst_120 = arith.constant 0.000000e+00 : f32
    %275 = vector.broadcast %cst_120 : f32 to vector<1x4xf32>
    %276 = arith.maximumf %274, %275 : vector<1x4xf32>
    %277 = vector.extract_strided_slice %7 {offsets = [0, 0], sizes = [4, 4], strides = [1, 1]} : vector<4x5xf32> to vector<4x4xf32>
    %278 = vector.broadcast %276 : vector<1x4xf32> to vector<4x4xf32>
    %279 = arith.mulf %277, %278 : vector<4x4xf32>
    %cst_121 = arith.constant dense<0.000000e+00> : vector<4xf32>
    %280 = vector.multi_reduction <add>, %279, %cst_121 [1] : vector<4x4xf32> to vector<4xf32>
    %281 = vector.shape_cast %280 : vector<4xf32> to vector<4x1xf32>
    %282 = vector.extract_strided_slice %7 {offsets = [0, 4], sizes = [4, 1], strides = [1, 1]} : vector<4x5xf32> to vector<4x1xf32>
    %283 = arith.addf %281, %282 : vector<4x1xf32>
    %cst_122 = arith.constant 0.000000e+00 : f32
    %284 = vector.broadcast %cst_122 : f32 to vector<4x1xf32>
    %285 = arith.subf %284, %283 : vector<4x1xf32>
    %286 = math.exp %285 : vector<4x1xf32>
    %cst_123 = arith.constant 1.000000e+00 : f32
    %287 = vector.broadcast %cst_123 : f32 to vector<4x1xf32>
    %288 = arith.addf %287, %286 : vector<4x1xf32>
    %cst_124 = arith.constant 1.000000e+00 : f32
    %289 = vector.broadcast %cst_124 : f32 to vector<4x1xf32>
    %290 = arith.divf %289, %288 : vector<4x1xf32>
    %cst_125 = arith.constant 1.000000e+00 : f32
    %291 = vector.broadcast %cst_125 : f32 to vector<4x1xf32>
    %292 = arith.addf %290, %291 : vector<4x1xf32>
    %293 = vector.broadcast %292 : vector<4x1xf32> to vector<4x256xf32>
    %294 = arith.mulf %263, %293 : vector<4x256xf32>
    %c0_126 = arith.constant 0 : index
    %c0_127 = arith.constant 0 : index
    %c0_128 = arith.constant 0 : index
    %295 = vector.load %arg14[%c0_126, %c0_127, %c0_128] : memref<2x4x256xf32, #tpu.memory_space<vmem>>, vector<1x4x256xf32>
    %296 = vector.shape_cast %295 : vector<1x4x256xf32> to vector<4x256xf32>
    %297 = vector.shape_cast %294 : vector<4x256xf32> to vector<1x4x256xf32>
    tpu.vector_store %arg14[%c0_126, %c0_127, %c0_128], %297 {strides = array<i32>} : memref<2x4x256xf32, #tpu.memory_space<vmem>>, vector<1x4x256xf32>,
    %c1_129 = arith.constant 1 : index
    %c0_130 = arith.constant 0 : index
    %c0_131 = arith.constant 0 : index
    %298 = vector.load %arg1[%c1_129, %c0_130, %c0_131] : memref<2x4x256xf32, #tpu.memory_space<vmem>>, vector<1x4x256xf32>
    %299 = vector.shape_cast %298 : vector<1x4x256xf32> to vector<4x256xf32>
    %c0_132 = arith.constant 0 : index
    %c17_133 = arith.constant 17 : index
    %300 = vector.load %arg15[%c0_132, %c17_133] : memref<4x290xf32, #tpu.memory_space<vmem>>, vector<4x256xf32>
    tpu.vector_store %arg15[%c0_132, %c17_133], %299 {strides = array<i32>} : memref<4x290xf32, #tpu.memory_space<vmem>>, vector<4x256xf32>,
    %c1_134 = arith.constant 1 : index
    %c0_135 = arith.constant 0 : index
    %c0_136 = arith.constant 0 : index
    %301 = vector.load %arg2[%c1_134, %c0_135, %c0_136] : memref<2x8x256xf32, #tpu.memory_space<vmem>>, vector<1x8x256xf32>
    %302 = vector.shape_cast %301 : vector<1x8x256xf32> to vector<8x256xf32>
    %c0_137 = arith.constant 0 : index
    %c17_138 = arith.constant 17 : index
    %303 = vector.load %arg16[%c0_137, %c17_138] : memref<8x290xf32, #tpu.memory_space<vmem>>, vector<8x256xf32>
    tpu.vector_store %arg16[%c0_137, %c17_138], %302 {strides = array<i32>} : memref<8x290xf32, #tpu.memory_space<vmem>>, vector<8x256xf32>,
    %c0_139 = arith.constant 0 : index
    %c0_140 = arith.constant 0 : index
    %304 = vector.load %arg15[%c0_139, %c0_140] : memref<4x290xf32, #tpu.memory_space<vmem>>, vector<4x256xf32>
    %305 = vector.extract_strided_slice %2 {offsets = [0, 0], sizes = [4, 1], strides = [1, 1]} : vector<4x10xf32> to vector<4x1xf32>
    %306 = vector.broadcast %305 : vector<4x1xf32> to vector<4x256xf32>
    %307 = arith.mulf %304, %306 : vector<4x256xf32>
    %c0_141 = arith.constant 0 : index
    %c16_142 = arith.constant 16 : index
    %308 = vector.load %arg15[%c0_141, %c16_142] : memref<4x290xf32, #tpu.memory_space<vmem>>, vector<4x256xf32>
    %309 = vector.extract_strided_slice %2 {offsets = [0, 3], sizes = [4, 1], strides = [1, 1]} : vector<4x10xf32> to vector<4x1xf32>
    %310 = vector.broadcast %309 : vector<4x1xf32> to vector<4x256xf32>
    %311 = arith.mulf %308, %310 : vector<4x256xf32>
    %312 = arith.addf %307, %311 : vector<4x256xf32>
    %c0_143 = arith.constant 0 : index
    %c32_144 = arith.constant 32 : index
    %313 = vector.load %arg15[%c0_143, %c32_144] : memref<4x290xf32, #tpu.memory_space<vmem>>, vector<4x256xf32>
    %314 = vector.extract_strided_slice %2 {offsets = [0, 6], sizes = [4, 1], strides = [1, 1]} : vector<4x10xf32> to vector<4x1xf32>
    %315 = vector.broadcast %314 : vector<4x1xf32> to vector<4x256xf32>
    %316 = arith.mulf %313, %315 : vector<4x256xf32>
    %317 = arith.addf %312, %316 : vector<4x256xf32>
    %318 = vector.broadcast %0 : vector<1x256xf32> to vector<4x256xf32>
    %319 = arith.mulf %317, %318 : vector<4x256xf32>
    %c0_145 = arith.constant 0 : index
    %c1_146 = arith.constant 1 : index
    %320 = vector.load %arg15[%c0_145, %c1_146] : memref<4x290xf32, #tpu.memory_space<vmem>>, vector<4x256xf32>
    %321 = vector.extract_strided_slice %2 {offsets = [0, 1], sizes = [4, 1], strides = [1, 1]} : vector<4x10xf32> to vector<4x1xf32>
    %322 = vector.broadcast %321 : vector<4x1xf32> to vector<4x256xf32>
    %323 = arith.mulf %320, %322 : vector<4x256xf32>
    %c0_147 = arith.constant 0 : index
    %c17_148 = arith.constant 17 : index
    %324 = vector.load %arg15[%c0_147, %c17_148] : memref<4x290xf32, #tpu.memory_space<vmem>>, vector<4x256xf32>
    %325 = vector.extract_strided_slice %2 {offsets = [0, 4], sizes = [4, 1], strides = [1, 1]} : vector<4x10xf32> to vector<4x1xf32>
    %326 = vector.broadcast %325 : vector<4x1xf32> to vector<4x256xf32>
    %327 = arith.mulf %324, %326 : vector<4x256xf32>
    %328 = arith.addf %323, %327 : vector<4x256xf32>
    %c0_149 = arith.constant 0 : index
    %c33_150 = arith.constant 33 : index
    %329 = vector.load %arg15[%c0_149, %c33_150] : memref<4x290xf32, #tpu.memory_space<vmem>>, vector<4x256xf32>
    %330 = vector.extract_strided_slice %2 {offsets = [0, 7], sizes = [4, 1], strides = [1, 1]} : vector<4x10xf32> to vector<4x1xf32>
    %331 = vector.broadcast %330 : vector<4x1xf32> to vector<4x256xf32>
    %332 = arith.mulf %329, %331 : vector<4x256xf32>
    %333 = arith.addf %328, %332 : vector<4x256xf32>
    %334 = arith.addf %319, %333 : vector<4x256xf32>
    %c0_151 = arith.constant 0 : index
    %c2_152 = arith.constant 2 : index
    %335 = vector.load %arg15[%c0_151, %c2_152] : memref<4x290xf32, #tpu.memory_space<vmem>>, vector<4x256xf32>
    %336 = vector.extract_strided_slice %2 {offsets = [0, 2], sizes = [4, 1], strides = [1, 1]} : vector<4x10xf32> to vector<4x1xf32>
    %337 = vector.broadcast %336 : vector<4x1xf32> to vector<4x256xf32>
    %338 = arith.mulf %335, %337 : vector<4x256xf32>
    %c0_153 = arith.constant 0 : index
    %c18_154 = arith.constant 18 : index
    %339 = vector.load %arg15[%c0_153, %c18_154] : memref<4x290xf32, #tpu.memory_space<vmem>>, vector<4x256xf32>
    %340 = vector.extract_strided_slice %2 {offsets = [0, 5], sizes = [4, 1], strides = [1, 1]} : vector<4x10xf32> to vector<4x1xf32>
    %341 = vector.broadcast %340 : vector<4x1xf32> to vector<4x256xf32>
    %342 = arith.mulf %339, %341 : vector<4x256xf32>
    %343 = arith.addf %338, %342 : vector<4x256xf32>
    %c0_155 = arith.constant 0 : index
    %c34_156 = arith.constant 34 : index
    %344 = vector.load %arg15[%c0_155, %c34_156] : memref<4x290xf32, #tpu.memory_space<vmem>>, vector<4x256xf32>
    %345 = vector.extract_strided_slice %2 {offsets = [0, 8], sizes = [4, 1], strides = [1, 1]} : vector<4x10xf32> to vector<4x1xf32>
    %346 = vector.broadcast %345 : vector<4x1xf32> to vector<4x256xf32>
    %347 = arith.mulf %344, %346 : vector<4x256xf32>
    %348 = arith.addf %343, %347 : vector<4x256xf32>
    %349 = vector.broadcast %1 : vector<1x256xf32> to vector<4x256xf32>
    %350 = arith.mulf %348, %349 : vector<4x256xf32>
    %351 = arith.addf %334, %350 : vector<4x256xf32>
    %352 = vector.extract_strided_slice %2 {offsets = [0, 9], sizes = [4, 1], strides = [1, 1]} : vector<4x10xf32> to vector<4x1xf32>
    %353 = vector.broadcast %352 : vector<4x1xf32> to vector<4x256xf32>
    %354 = arith.addf %351, %353 : vector<4x256xf32>
    %cst_157 = arith.constant 0.000000e+00 : f32
    %355 = vector.broadcast %cst_157 : f32 to vector<4x256xf32>
    %356 = arith.maximumf %354, %355 : vector<4x256xf32>
    %c0_158 = arith.constant 0 : index
    %c0_159 = arith.constant 0 : index
    %357 = vector.load %arg5[%c0_158, %c0_159] : memref<8x5xf32, #tpu.memory_space<vmem>>, vector<8x4xf32>
    %c0_160 = arith.constant 0 : index
    %c4_161 = arith.constant 4 : index
    %358 = vector.load %arg5[%c0_160, %c4_161] : memref<8x5xf32, #tpu.memory_space<vmem>>, vector<8x1xf32>
    %cst_162 = arith.constant dense<0.000000e+00> : vector<8x256xf32>
    %359 = tpu.matmul %357, %356, %cst_162 {dimension_numbers = #tpu.dot_dimension_numbers<[1], [0], [0], [1], [0, 0, 1, 1], [], []>} : vector<8x4xf32>, vector<4x256xf32>, vector<8x256xf32> -> vector<8x256xf32>
    %360 = vector.broadcast %358 : vector<8x1xf32> to vector<8x256xf32>
    %361 = arith.addf %359, %360 : vector<8x256xf32>
    %cst_163 = arith.constant 0.000000e+00 : f32
    %362 = vector.broadcast %cst_163 : f32 to vector<8x256xf32>
    %363 = arith.maximumf %361, %362 : vector<8x256xf32>
    %c0_164 = arith.constant 0 : index
    %c0_165 = arith.constant 0 : index
    %364 = vector.load %arg16[%c0_164, %c0_165] : memref<8x290xf32, #tpu.memory_space<vmem>>, vector<8x256xf32>
    %365 = vector.extract_strided_slice %3 {offsets = [0, 0], sizes = [8, 1], strides = [1, 1]} : vector<8x10xf32> to vector<8x1xf32>
    %366 = vector.broadcast %365 : vector<8x1xf32> to vector<8x256xf32>
    %367 = arith.mulf %364, %366 : vector<8x256xf32>
    %368 = vector.extract_strided_slice %4 {offsets = [0, 0], sizes = [8, 1], strides = [1, 1]} : vector<8x10xf32> to vector<8x1xf32>
    %369 = vector.broadcast %368 : vector<8x1xf32> to vector<8x256xf32>
    %370 = arith.mulf %364, %369 : vector<8x256xf32>
    %c0_166 = arith.constant 0 : index
    %c16_167 = arith.constant 16 : index
    %371 = vector.load %arg16[%c0_166, %c16_167] : memref<8x290xf32, #tpu.memory_space<vmem>>, vector<8x256xf32>
    %372 = vector.extract_strided_slice %3 {offsets = [0, 3], sizes = [8, 1], strides = [1, 1]} : vector<8x10xf32> to vector<8x1xf32>
    %373 = vector.broadcast %372 : vector<8x1xf32> to vector<8x256xf32>
    %374 = arith.mulf %371, %373 : vector<8x256xf32>
    %375 = arith.addf %367, %374 : vector<8x256xf32>
    %376 = vector.extract_strided_slice %4 {offsets = [0, 3], sizes = [8, 1], strides = [1, 1]} : vector<8x10xf32> to vector<8x1xf32>
    %377 = vector.broadcast %376 : vector<8x1xf32> to vector<8x256xf32>
    %378 = arith.mulf %371, %377 : vector<8x256xf32>
    %379 = arith.addf %370, %378 : vector<8x256xf32>
    %c0_168 = arith.constant 0 : index
    %c32_169 = arith.constant 32 : index
    %380 = vector.load %arg16[%c0_168, %c32_169] : memref<8x290xf32, #tpu.memory_space<vmem>>, vector<8x256xf32>
    %381 = vector.extract_strided_slice %3 {offsets = [0, 6], sizes = [8, 1], strides = [1, 1]} : vector<8x10xf32> to vector<8x1xf32>
    %382 = vector.broadcast %381 : vector<8x1xf32> to vector<8x256xf32>
    %383 = arith.mulf %380, %382 : vector<8x256xf32>
    %384 = arith.addf %375, %383 : vector<8x256xf32>
    %385 = vector.extract_strided_slice %4 {offsets = [0, 6], sizes = [8, 1], strides = [1, 1]} : vector<8x10xf32> to vector<8x1xf32>
    %386 = vector.broadcast %385 : vector<8x1xf32> to vector<8x256xf32>
    %387 = arith.mulf %380, %386 : vector<8x256xf32>
    %388 = arith.addf %379, %387 : vector<8x256xf32>
    %389 = vector.broadcast %0 : vector<1x256xf32> to vector<8x256xf32>
    %390 = arith.mulf %384, %389 : vector<8x256xf32>
    %391 = vector.broadcast %0 : vector<1x256xf32> to vector<8x256xf32>
    %392 = arith.mulf %388, %391 : vector<8x256xf32>
    %c0_170 = arith.constant 0 : index
    %c1_171 = arith.constant 1 : index
    %393 = vector.load %arg16[%c0_170, %c1_171] : memref<8x290xf32, #tpu.memory_space<vmem>>, vector<8x256xf32>
    %394 = vector.extract_strided_slice %3 {offsets = [0, 1], sizes = [8, 1], strides = [1, 1]} : vector<8x10xf32> to vector<8x1xf32>
    %395 = vector.broadcast %394 : vector<8x1xf32> to vector<8x256xf32>
    %396 = arith.mulf %393, %395 : vector<8x256xf32>
    %397 = vector.extract_strided_slice %4 {offsets = [0, 1], sizes = [8, 1], strides = [1, 1]} : vector<8x10xf32> to vector<8x1xf32>
    %398 = vector.broadcast %397 : vector<8x1xf32> to vector<8x256xf32>
    %399 = arith.mulf %393, %398 : vector<8x256xf32>
    %c0_172 = arith.constant 0 : index
    %c17_173 = arith.constant 17 : index
    %400 = vector.load %arg16[%c0_172, %c17_173] : memref<8x290xf32, #tpu.memory_space<vmem>>, vector<8x256xf32>
    %401 = vector.extract_strided_slice %3 {offsets = [0, 4], sizes = [8, 1], strides = [1, 1]} : vector<8x10xf32> to vector<8x1xf32>
    %402 = vector.broadcast %401 : vector<8x1xf32> to vector<8x256xf32>
    %403 = arith.mulf %400, %402 : vector<8x256xf32>
    %404 = arith.addf %396, %403 : vector<8x256xf32>
    %405 = vector.extract_strided_slice %4 {offsets = [0, 4], sizes = [8, 1], strides = [1, 1]} : vector<8x10xf32> to vector<8x1xf32>
    %406 = vector.broadcast %405 : vector<8x1xf32> to vector<8x256xf32>
    %407 = arith.mulf %400, %406 : vector<8x256xf32>
    %408 = arith.addf %399, %407 : vector<8x256xf32>
    %c0_174 = arith.constant 0 : index
    %c33_175 = arith.constant 33 : index
    %409 = vector.load %arg16[%c0_174, %c33_175] : memref<8x290xf32, #tpu.memory_space<vmem>>, vector<8x256xf32>
    %410 = vector.extract_strided_slice %3 {offsets = [0, 7], sizes = [8, 1], strides = [1, 1]} : vector<8x10xf32> to vector<8x1xf32>
    %411 = vector.broadcast %410 : vector<8x1xf32> to vector<8x256xf32>
    %412 = arith.mulf %409, %411 : vector<8x256xf32>
    %413 = arith.addf %404, %412 : vector<8x256xf32>
    %414 = vector.extract_strided_slice %4 {offsets = [0, 7], sizes = [8, 1], strides = [1, 1]} : vector<8x10xf32> to vector<8x1xf32>
    %415 = vector.broadcast %414 : vector<8x1xf32> to vector<8x256xf32>
    %416 = arith.mulf %409, %415 : vector<8x256xf32>
    %417 = arith.addf %408, %416 : vector<8x256xf32>
    %418 = arith.addf %390, %413 : vector<8x256xf32>
    %419 = arith.addf %392, %417 : vector<8x256xf32>
    %c0_176 = arith.constant 0 : index
    %c2_177 = arith.constant 2 : index
    %420 = vector.load %arg16[%c0_176, %c2_177] : memref<8x290xf32, #tpu.memory_space<vmem>>, vector<8x256xf32>
    %421 = vector.extract_strided_slice %3 {offsets = [0, 2], sizes = [8, 1], strides = [1, 1]} : vector<8x10xf32> to vector<8x1xf32>
    %422 = vector.broadcast %421 : vector<8x1xf32> to vector<8x256xf32>
    %423 = arith.mulf %420, %422 : vector<8x256xf32>
    %424 = vector.extract_strided_slice %4 {offsets = [0, 2], sizes = [8, 1], strides = [1, 1]} : vector<8x10xf32> to vector<8x1xf32>
    %425 = vector.broadcast %424 : vector<8x1xf32> to vector<8x256xf32>
    %426 = arith.mulf %420, %425 : vector<8x256xf32>
    %c0_178 = arith.constant 0 : index
    %c18_179 = arith.constant 18 : index
    %427 = vector.load %arg16[%c0_178, %c18_179] : memref<8x290xf32, #tpu.memory_space<vmem>>, vector<8x256xf32>
    %428 = vector.extract_strided_slice %3 {offsets = [0, 5], sizes = [8, 1], strides = [1, 1]} : vector<8x10xf32> to vector<8x1xf32>
    %429 = vector.broadcast %428 : vector<8x1xf32> to vector<8x256xf32>
    %430 = arith.mulf %427, %429 : vector<8x256xf32>
    %431 = arith.addf %423, %430 : vector<8x256xf32>
    %432 = vector.extract_strided_slice %4 {offsets = [0, 5], sizes = [8, 1], strides = [1, 1]} : vector<8x10xf32> to vector<8x1xf32>
    %433 = vector.broadcast %432 : vector<8x1xf32> to vector<8x256xf32>
    %434 = arith.mulf %427, %433 : vector<8x256xf32>
    %435 = arith.addf %426, %434 : vector<8x256xf32>
    %c0_180 = arith.constant 0 : index
    %c34_181 = arith.constant 34 : index
    %436 = vector.load %arg16[%c0_180, %c34_181] : memref<8x290xf32, #tpu.memory_space<vmem>>, vector<8x256xf32>
    %437 = vector.extract_strided_slice %3 {offsets = [0, 8], sizes = [8, 1], strides = [1, 1]} : vector<8x10xf32> to vector<8x1xf32>
    %438 = vector.broadcast %437 : vector<8x1xf32> to vector<8x256xf32>
    %439 = arith.mulf %436, %438 : vector<8x256xf32>
    %440 = arith.addf %431, %439 : vector<8x256xf32>
    %441 = vector.extract_strided_slice %4 {offsets = [0, 8], sizes = [8, 1], strides = [1, 1]} : vector<8x10xf32> to vector<8x1xf32>
    %442 = vector.broadcast %441 : vector<8x1xf32> to vector<8x256xf32>
    %443 = arith.mulf %436, %442 : vector<8x256xf32>
    %444 = arith.addf %435, %443 : vector<8x256xf32>
    %445 = vector.broadcast %1 : vector<1x256xf32> to vector<8x256xf32>
    %446 = arith.mulf %440, %445 : vector<8x256xf32>
    %447 = arith.addf %418, %446 : vector<8x256xf32>
    %448 = vector.broadcast %1 : vector<1x256xf32> to vector<8x256xf32>
    %449 = arith.mulf %444, %448 : vector<8x256xf32>
    %450 = arith.addf %419, %449 : vector<8x256xf32>
    %451 = vector.extract_strided_slice %3 {offsets = [0, 9], sizes = [8, 1], strides = [1, 1]} : vector<8x10xf32> to vector<8x1xf32>
    %452 = vector.broadcast %451 : vector<8x1xf32> to vector<8x256xf32>
    %453 = arith.addf %447, %452 : vector<8x256xf32>
    %cst_182 = arith.constant 0.000000e+00 : f32
    %454 = vector.broadcast %cst_182 : f32 to vector<8x256xf32>
    %455 = arith.maximumf %453, %454 : vector<8x256xf32>
    %456 = vector.extract_strided_slice %4 {offsets = [0, 9], sizes = [8, 1], strides = [1, 1]} : vector<8x10xf32> to vector<8x1xf32>
    %457 = vector.broadcast %456 : vector<8x1xf32> to vector<8x256xf32>
    %458 = arith.addf %450, %457 : vector<8x256xf32>
    %cst_183 = arith.constant 0.000000e+00 : f32
    %459 = vector.broadcast %cst_183 : f32 to vector<8x256xf32>
    %460 = arith.maximumf %458, %459 : vector<8x256xf32>
    %c0_184 = arith.constant 0 : index
    %c0_185 = arith.constant 0 : index
    %461 = vector.load %arg7[%c0_184, %c0_185] : memref<8x9xf32, #tpu.memory_space<vmem>>, vector<8x8xf32>
    %c0_186 = arith.constant 0 : index
    %c8_187 = arith.constant 8 : index
    %462 = vector.load %arg7[%c0_186, %c8_187] : memref<8x9xf32, #tpu.memory_space<vmem>>, vector<8x1xf32>
    %cst_188 = arith.constant dense<0.000000e+00> : vector<8x256xf32>
    %463 = tpu.matmul %461, %455, %cst_188 {dimension_numbers = #tpu.dot_dimension_numbers<[1], [0], [0], [1], [0, 0, 1, 1], [], []>} : vector<8x8xf32>, vector<8x256xf32>, vector<8x256xf32> -> vector<8x256xf32>
    %464 = vector.broadcast %462 : vector<8x1xf32> to vector<8x256xf32>
    %465 = arith.addf %463, %464 : vector<8x256xf32>
    %cst_189 = arith.constant 0.000000e+00 : f32
    %466 = vector.broadcast %cst_189 : f32 to vector<8x256xf32>
    %467 = arith.maximumf %465, %466 : vector<8x256xf32>
    %c0_190 = arith.constant 0 : index
    %c0_191 = arith.constant 0 : index
    %468 = vector.load %arg9[%c0_190, %c0_191] : memref<8x9xf32, #tpu.memory_space<vmem>>, vector<8x8xf32>
    %c0_192 = arith.constant 0 : index
    %c8_193 = arith.constant 8 : index
    %469 = vector.load %arg9[%c0_192, %c8_193] : memref<8x9xf32, #tpu.memory_space<vmem>>, vector<8x1xf32>
    %cst_194 = arith.constant dense<0.000000e+00> : vector<8x256xf32>
    %470 = tpu.matmul %468, %460, %cst_194 {dimension_numbers = #tpu.dot_dimension_numbers<[1], [0], [0], [1], [0, 0, 1, 1], [], []>} : vector<8x8xf32>, vector<8x256xf32>, vector<8x256xf32> -> vector<8x256xf32>
    %471 = vector.broadcast %469 : vector<8x1xf32> to vector<8x256xf32>
    %472 = arith.addf %470, %471 : vector<8x256xf32>
    %cst_195 = arith.constant 0.000000e+00 : f32
    %473 = vector.broadcast %cst_195 : f32 to vector<8x256xf32>
    %474 = arith.maximumf %472, %473 : vector<8x256xf32>
    %cst_196 = arith.constant 0.000000e+00 : f32
    %475 = vector.broadcast %cst_196 : f32 to vector<8x256xf32>
    %476 = arith.subf %475, %467 : vector<8x256xf32>
    %477 = math.exp %476 : vector<8x256xf32>
    %cst_197 = arith.constant 1.000000e+00 : f32
    %478 = vector.broadcast %cst_197 : f32 to vector<8x256xf32>
    %479 = arith.addf %478, %477 : vector<8x256xf32>
    %cst_198 = arith.constant 1.000000e+00 : f32
    %480 = vector.broadcast %cst_198 : f32 to vector<8x256xf32>
    %481 = arith.divf %480, %479 : vector<8x256xf32>
    %482 = arith.mulf %481, %363 : vector<8x256xf32>
    %c0_199 = arith.constant 0 : index
    %c17_200 = arith.constant 17 : index
    %483 = vector.load %arg17[%c0_199, %c17_200] : memref<16x290xf32, #tpu.memory_space<vmem>>, vector<8x256xf32>
    tpu.vector_store %arg17[%c0_199, %c17_200], %482 {strides = array<i32>} : memref<16x290xf32, #tpu.memory_space<vmem>>, vector<8x256xf32>,
    %c8_201 = arith.constant 8 : index
    %c17_202 = arith.constant 17 : index
    %484 = vector.load %arg17[%c8_201, %c17_202] : memref<16x290xf32, #tpu.memory_space<vmem>>, vector<8x256xf32>
    tpu.vector_store %arg17[%c8_201, %c17_202], %474 {strides = array<i32>} : memref<16x290xf32, #tpu.memory_space<vmem>>, vector<8x256xf32>,
    %c0_203 = arith.constant 0 : index
    %c0_204 = arith.constant 0 : index
    %485 = vector.load %arg17[%c0_203, %c0_204] : memref<16x290xf32, #tpu.memory_space<vmem>>, vector<16x256xf32>
    %486 = vector.extract_strided_slice %5 {offsets = [0, 0], sizes = [16, 1], strides = [1, 1]} : vector<16x10xf32> to vector<16x1xf32>
    %487 = vector.broadcast %486 : vector<16x1xf32> to vector<16x256xf32>
    %488 = arith.mulf %485, %487 : vector<16x256xf32>
    %c0_205 = arith.constant 0 : index
    %c16_206 = arith.constant 16 : index
    %489 = vector.load %arg17[%c0_205, %c16_206] : memref<16x290xf32, #tpu.memory_space<vmem>>, vector<16x256xf32>
    %490 = vector.extract_strided_slice %5 {offsets = [0, 3], sizes = [16, 1], strides = [1, 1]} : vector<16x10xf32> to vector<16x1xf32>
    %491 = vector.broadcast %490 : vector<16x1xf32> to vector<16x256xf32>
    %492 = arith.mulf %489, %491 : vector<16x256xf32>
    %493 = arith.addf %488, %492 : vector<16x256xf32>
    %c0_207 = arith.constant 0 : index
    %c32_208 = arith.constant 32 : index
    %494 = vector.load %arg17[%c0_207, %c32_208] : memref<16x290xf32, #tpu.memory_space<vmem>>, vector<16x256xf32>
    %495 = vector.extract_strided_slice %5 {offsets = [0, 6], sizes = [16, 1], strides = [1, 1]} : vector<16x10xf32> to vector<16x1xf32>
    %496 = vector.broadcast %495 : vector<16x1xf32> to vector<16x256xf32>
    %497 = arith.mulf %494, %496 : vector<16x256xf32>
    %498 = arith.addf %493, %497 : vector<16x256xf32>
    %499 = vector.broadcast %0 : vector<1x256xf32> to vector<16x256xf32>
    %500 = arith.mulf %498, %499 : vector<16x256xf32>
    %c0_209 = arith.constant 0 : index
    %c1_210 = arith.constant 1 : index
    %501 = vector.load %arg17[%c0_209, %c1_210] : memref<16x290xf32, #tpu.memory_space<vmem>>, vector<16x256xf32>
    %502 = vector.extract_strided_slice %5 {offsets = [0, 1], sizes = [16, 1], strides = [1, 1]} : vector<16x10xf32> to vector<16x1xf32>
    %503 = vector.broadcast %502 : vector<16x1xf32> to vector<16x256xf32>
    %504 = arith.mulf %501, %503 : vector<16x256xf32>
    %c0_211 = arith.constant 0 : index
    %c17_212 = arith.constant 17 : index
    %505 = vector.load %arg17[%c0_211, %c17_212] : memref<16x290xf32, #tpu.memory_space<vmem>>, vector<16x256xf32>
    %506 = vector.extract_strided_slice %5 {offsets = [0, 4], sizes = [16, 1], strides = [1, 1]} : vector<16x10xf32> to vector<16x1xf32>
    %507 = vector.broadcast %506 : vector<16x1xf32> to vector<16x256xf32>
    %508 = arith.mulf %505, %507 : vector<16x256xf32>
    %509 = arith.addf %504, %508 : vector<16x256xf32>
    %c0_213 = arith.constant 0 : index
    %c33_214 = arith.constant 33 : index
    %510 = vector.load %arg17[%c0_213, %c33_214] : memref<16x290xf32, #tpu.memory_space<vmem>>, vector<16x256xf32>
    %511 = vector.extract_strided_slice %5 {offsets = [0, 7], sizes = [16, 1], strides = [1, 1]} : vector<16x10xf32> to vector<16x1xf32>
    %512 = vector.broadcast %511 : vector<16x1xf32> to vector<16x256xf32>
    %513 = arith.mulf %510, %512 : vector<16x256xf32>
    %514 = arith.addf %509, %513 : vector<16x256xf32>
    %515 = arith.addf %500, %514 : vector<16x256xf32>
    %c0_215 = arith.constant 0 : index
    %c2_216 = arith.constant 2 : index
    %516 = vector.load %arg17[%c0_215, %c2_216] : memref<16x290xf32, #tpu.memory_space<vmem>>, vector<16x256xf32>
    %517 = vector.extract_strided_slice %5 {offsets = [0, 2], sizes = [16, 1], strides = [1, 1]} : vector<16x10xf32> to vector<16x1xf32>
    %518 = vector.broadcast %517 : vector<16x1xf32> to vector<16x256xf32>
    %519 = arith.mulf %516, %518 : vector<16x256xf32>
    %c0_217 = arith.constant 0 : index
    %c18_218 = arith.constant 18 : index
    %520 = vector.load %arg17[%c0_217, %c18_218] : memref<16x290xf32, #tpu.memory_space<vmem>>, vector<16x256xf32>
    %521 = vector.extract_strided_slice %5 {offsets = [0, 5], sizes = [16, 1], strides = [1, 1]} : vector<16x10xf32> to vector<16x1xf32>
    %522 = vector.broadcast %521 : vector<16x1xf32> to vector<16x256xf32>
    %523 = arith.mulf %520, %522 : vector<16x256xf32>
    %524 = arith.addf %519, %523 : vector<16x256xf32>
    %c0_219 = arith.constant 0 : index
    %c34_220 = arith.constant 34 : index
    %525 = vector.load %arg17[%c0_219, %c34_220] : memref<16x290xf32, #tpu.memory_space<vmem>>, vector<16x256xf32>
    %526 = vector.extract_strided_slice %5 {offsets = [0, 8], sizes = [16, 1], strides = [1, 1]} : vector<16x10xf32> to vector<16x1xf32>
    %527 = vector.broadcast %526 : vector<16x1xf32> to vector<16x256xf32>
    %528 = arith.mulf %525, %527 : vector<16x256xf32>
    %529 = arith.addf %524, %528 : vector<16x256xf32>
    %530 = vector.broadcast %1 : vector<1x256xf32> to vector<16x256xf32>
    %531 = arith.mulf %529, %530 : vector<16x256xf32>
    %532 = arith.addf %515, %531 : vector<16x256xf32>
    %533 = vector.extract_strided_slice %5 {offsets = [0, 9], sizes = [16, 1], strides = [1, 1]} : vector<16x10xf32> to vector<16x1xf32>
    %534 = vector.broadcast %533 : vector<16x1xf32> to vector<16x256xf32>
    %535 = arith.addf %532, %534 : vector<16x256xf32>
    %cst_221 = arith.constant 0.000000e+00 : f32
    %536 = vector.broadcast %cst_221 : f32 to vector<16x256xf32>
    %537 = arith.maximumf %535, %536 : vector<16x256xf32>
    %c0_222 = arith.constant 0 : index
    %c0_223 = arith.constant 0 : index
    %538 = vector.load %arg11[%c0_222, %c0_223] : memref<4x17xf32, #tpu.memory_space<vmem>>, vector<4x16xf32>
    %c0_224 = arith.constant 0 : index
    %c16_225 = arith.constant 16 : index
    %539 = vector.load %arg11[%c0_224, %c16_225] : memref<4x17xf32, #tpu.memory_space<vmem>>, vector<4x1xf32>
    %cst_226 = arith.constant dense<0.000000e+00> : vector<4x256xf32>
    %540 = tpu.matmul %538, %537, %cst_226 {dimension_numbers = #tpu.dot_dimension_numbers<[1], [0], [0], [1], [0, 0, 1, 1], [], []>} : vector<4x16xf32>, vector<16x256xf32>, vector<4x256xf32> -> vector<4x256xf32>
    %541 = vector.broadcast %539 : vector<4x1xf32> to vector<4x256xf32>
    %542 = arith.addf %540, %541 : vector<4x256xf32>
    %cst_227 = arith.constant 0.000000e+00 : f32
    %543 = vector.broadcast %cst_227 : f32 to vector<4x256xf32>
    %544 = arith.maximumf %542, %543 : vector<4x256xf32>
    %cst_228 = arith.constant dense<0.000000e+00> : vector<4xf32>
    %545 = vector.multi_reduction <add>, %544, %cst_228 [1] : vector<4x256xf32> to vector<4xf32>
    %546 = vector.shape_cast %545 : vector<4xf32> to vector<4x1xf32>
    %cst_229 = arith.constant 3.906250e-03 : f32
    %547 = vector.broadcast %cst_229 : f32 to vector<4x1xf32>
    %548 = arith.mulf %546, %547 : vector<4x1xf32>
    %549 = vector.extract_strided_slice %6 {offsets = [0, 0], sizes = [4, 4], strides = [1, 1]} : vector<5x4xf32> to vector<4x4xf32>
    %550 = vector.broadcast %548 : vector<4x1xf32> to vector<4x4xf32>
    %551 = arith.mulf %549, %550 : vector<4x4xf32>
    %cst_230 = arith.constant dense<0.000000e+00> : vector<4xf32>
    %552 = vector.multi_reduction <add>, %551, %cst_230 [0] : vector<4x4xf32> to vector<4xf32>
    %553 = vector.shape_cast %552 : vector<4xf32> to vector<1x4xf32>
    %554 = vector.extract_strided_slice %6 {offsets = [4, 0], sizes = [1, 4], strides = [1, 1]} : vector<5x4xf32> to vector<1x4xf32>
    %555 = arith.addf %553, %554 : vector<1x4xf32>
    %cst_231 = arith.constant 0.000000e+00 : f32
    %556 = vector.broadcast %cst_231 : f32 to vector<1x4xf32>
    %557 = arith.maximumf %555, %556 : vector<1x4xf32>
    %558 = vector.extract_strided_slice %7 {offsets = [0, 0], sizes = [4, 4], strides = [1, 1]} : vector<4x5xf32> to vector<4x4xf32>
    %559 = vector.broadcast %557 : vector<1x4xf32> to vector<4x4xf32>
    %560 = arith.mulf %558, %559 : vector<4x4xf32>
    %cst_232 = arith.constant dense<0.000000e+00> : vector<4xf32>
    %561 = vector.multi_reduction <add>, %560, %cst_232 [1] : vector<4x4xf32> to vector<4xf32>
    %562 = vector.shape_cast %561 : vector<4xf32> to vector<4x1xf32>
    %563 = vector.extract_strided_slice %7 {offsets = [0, 4], sizes = [4, 1], strides = [1, 1]} : vector<4x5xf32> to vector<4x1xf32>
    %564 = arith.addf %562, %563 : vector<4x1xf32>
    %cst_233 = arith.constant 0.000000e+00 : f32
    %565 = vector.broadcast %cst_233 : f32 to vector<4x1xf32>
    %566 = arith.subf %565, %564 : vector<4x1xf32>
    %567 = math.exp %566 : vector<4x1xf32>
    %cst_234 = arith.constant 1.000000e+00 : f32
    %568 = vector.broadcast %cst_234 : f32 to vector<4x1xf32>
    %569 = arith.addf %568, %567 : vector<4x1xf32>
    %cst_235 = arith.constant 1.000000e+00 : f32
    %570 = vector.broadcast %cst_235 : f32 to vector<4x1xf32>
    %571 = arith.divf %570, %569 : vector<4x1xf32>
    %cst_236 = arith.constant 1.000000e+00 : f32
    %572 = vector.broadcast %cst_236 : f32 to vector<4x1xf32>
    %573 = arith.addf %571, %572 : vector<4x1xf32>
    %574 = vector.broadcast %573 : vector<4x1xf32> to vector<4x256xf32>
    %575 = arith.mulf %544, %574 : vector<4x256xf32>
    %c1_237 = arith.constant 1 : index
    %c0_238 = arith.constant 0 : index
    %c0_239 = arith.constant 0 : index
    %576 = vector.load %arg14[%c1_237, %c0_238, %c0_239] : memref<2x4x256xf32, #tpu.memory_space<vmem>>, vector<1x4x256xf32>
    %577 = vector.shape_cast %576 : vector<1x4x256xf32> to vector<4x256xf32>
    %578 = vector.shape_cast %575 : vector<4x256xf32> to vector<1x4x256xf32>
    tpu.vector_store %arg14[%c1_237, %c0_238, %c0_239], %578 {strides = array<i32>} : memref<2x4x256xf32, #tpu.memory_space<vmem>>, vector<1x4x256xf32>,
    return
  }
  func.func @transform_0(%arg0: i32) -> (i32, i32, i32) {
    %c0_i32 = arith.constant 0 : i32
    %c0_i32_0 = arith.constant 0 : i32
    %c0_i32_1 = arith.constant 0 : i32
    return %arg0, %c0_i32, %c0_i32_0 : i32, i32, i32
  }
  func.func @transform_1(%arg0: i32) -> (i32, i32, i32) {
    %c0_i32 = arith.constant 0 : i32
    %c0_i32_0 = arith.constant 0 : i32
    %c0_i32_1 = arith.constant 0 : i32
    return %arg0, %c0_i32, %c0_i32_0 : i32, i32, i32
  }
  func.func @transform_2(%arg0: i32) -> (i32, i32) {
    %c0_i32 = arith.constant 0 : i32
    %c0_i32_0 = arith.constant 0 : i32
    %c0_i32_1 = arith.constant 0 : i32
    return %c0_i32, %c0_i32_0 : i32, i32
  }
  func.func @transform_3(%arg0: i32) -> (i32, i32) {
    %c0_i32 = arith.constant 0 : i32
    %c0_i32_0 = arith.constant 0 : i32
    %c0_i32_1 = arith.constant 0 : i32
    return %c0_i32, %c0_i32_0 : i32, i32
  }
  func.func @transform_4(%arg0: i32) -> (i32, i32) {
    %c0_i32 = arith.constant 0 : i32
    %c0_i32_0 = arith.constant 0 : i32
    %c0_i32_1 = arith.constant 0 : i32
    return %c0_i32, %c0_i32_0 : i32, i32
  }
  func.func @transform_5(%arg0: i32) -> (i32, i32) {
    %c0_i32 = arith.constant 0 : i32
    %c0_i32_0 = arith.constant 0 : i32
    %c0_i32_1 = arith.constant 0 : i32
    return %c0_i32, %c0_i32_0 : i32, i32
  }
  func.func @transform_6(%arg0: i32) -> (i32, i32) {
    %c0_i32 = arith.constant 0 : i32
    %c0_i32_0 = arith.constant 0 : i32
    %c0_i32_1 = arith.constant 0 : i32
    return %c0_i32, %c0_i32_0 : i32, i32
  }
  func.func @transform_7(%arg0: i32) -> (i32, i32) {
    %c0_i32 = arith.constant 0 : i32
    %c0_i32_0 = arith.constant 0 : i32
    %c0_i32_1 = arith.constant 0 : i32
    return %c0_i32, %c0_i32_0 : i32, i32
  }
  func.func @transform_8(%arg0: i32) -> (i32, i32) {
    %c0_i32 = arith.constant 0 : i32
    %c0_i32_0 = arith.constant 0 : i32
    %c0_i32_1 = arith.constant 0 : i32
    return %c0_i32, %c0_i32_0 : i32, i32
  }
  func.func @transform_9(%arg0: i32) -> (i32, i32) {
    %c0_i32 = arith.constant 0 : i32
    %c0_i32_0 = arith.constant 0 : i32
    %c0_i32_1 = arith.constant 0 : i32
    return %c0_i32, %c0_i32_0 : i32, i32
  }
  func.func @transform_10(%arg0: i32) -> (i32, i32) {
    %c0_i32 = arith.constant 0 : i32
    %c0_i32_0 = arith.constant 0 : i32
    %c0_i32_1 = arith.constant 0 : i32
    return %c0_i32, %c0_i32_0 : i32, i32
  }
  func.func @transform_11(%arg0: i32) -> (i32, i32) {
    %c0_i32 = arith.constant 0 : i32
    %c0_i32_0 = arith.constant 0 : i32
    %c0_i32_1 = arith.constant 0 : i32
    return %c0_i32, %c0_i32_0 : i32, i32
  }
  func.func @transform_12(%arg0: i32) -> (i32, i32) {
    %c0_i32 = arith.constant 0 : i32
    %c0_i32_0 = arith.constant 0 : i32
    %c0_i32_1 = arith.constant 0 : i32
    return %c0_i32, %c0_i32_0 : i32, i32
  }
  func.func @transform_13(%arg0: i32) -> (i32, i32, i32) {
    %c0_i32 = arith.constant 0 : i32
    %c0_i32_0 = arith.constant 0 : i32
    %c0_i32_1 = arith.constant 0 : i32
    return %arg0, %c0_i32, %c0_i32_0 : i32, i32, i32
  }
}

</mosaic_0001>

<bundles_post_ra>
// kernel: simbga_forward.1
= control target key start
LH: loop header
LB: loop body
LE: loop exit
PB: predicated region body
PF: predicated region fallthrough
CT: control target
= control target key end

     0   :  { %v4801_v0 = vmov 4   ;;  %v103_v3 = vlaneseq  ;;  %s2990_s29 = smov 17   ;;  %vm58_vm0 = vcmask 138240   ;;  %vm60_vm1 = vcmask 277640   ;;  %s3002_s23 = smov 96   ;;  %s4769_s5 = inlined_call_operand.vmem [shape: f32[8,10], index: 5, kind: input, shape index: {}]   ;;  %s4770_s1 = inlined_call_operand.vmem [shape: f32[2,8,256], index: 1, kind: input, shape index: {}]   ;;  %s4771_s3 = inlined_call_operand.vmem [shape: f32[4,10], index: 3, kind: input, shape index: {}]   ;;  %s4772_s2 = inlined_call_operand.vmem [shape: f32[2,256], index: 2, kind: input, shape index: {}]   ;;  %s4773_s0 = inlined_call_operand.vmem [shape: f32[2,4,256], index: 0, kind: input, shape index: {}]   ;;  %s4774_s7 = inlined_call_operand.vmem [shape: f32[8,10], index: 7, kind: input, shape index: {}]   ;;  %s4775_s9 = inlined_call_operand.vmem [shape: f32[16,10], index: 9, kind: input, shape index: {}]   ;;  %s4776_s6 = inlined_call_operand.vmem [shape: f32[8,9], index: 6, kind: input, shape index: {}]   ;;  %s4777_s4 = inlined_call_operand.vmem [shape: f32[8,5], index: 4, kind: input, shape index: {}]   ;;  %s4778_s8 = inlined_call_operand.vmem [shape: f32[8,9], index: 8, kind: input, shape index: {}]   ;;  %s4779_s10 = inlined_call_operand.vmem [shape: f32[4,17], index: 10, kind: input, shape index: {}]   ;;  %s4780_s11 = inlined_call_operand.vmem [shape: f32[5,4], index: 11, kind: input, shape index: {}]   ;;  %s4781_s12 = inlined_call_operand.vmem [shape: f32[4,5], index: 12, kind: input, shape index: {}]   ;;  %s4782_s13 = inlined_call_operand.vmem [shape: f32[2,4,256], index: 13, kind: output, shape index: {}]  }
   0x1   :  { %2908 = vset.pattern.permute.xlu1 %v4801_v0  ;;  %v3082_v1 = vld [vmem:[%s4769_s5] sm:$0xff]  ;;  %2911 = vset.pattern.permute.xlu0 %v4801_v0  ;;  %v80_v4 = vld [vmem:[%s4770_s1 + $0x8] sm:$0xff]  ;;  %v4785_v7 = vmov 0.0   ;;  %v4799_v8 = vmov 5   ;;  %v4797_v14 = vmov 8   ;;  %vm54_vm2 = vcmask 134144  }
   0x2   :  { %v79_v2 = vld [vmem:[%s4770_s1] sm:$0xff]  ;;  %586 = vperm.xlu1 %2908, %v3082_v1   ;;  %v3093_v5 = vshrl.u32 %v103_v3, 7  ;;  %954 = vmatprep.mubr.f32.mxu1 %v4785_v7  ;;  %59 = vst.msk [vmem:[#allocation3] sm:$0xff] %vm58_vm0, %v4785_v7  ;;  %62 = vst.msk [vmem:[#allocation4] sm:$0xff] %vm58_vm0, %v4785_v7  ;;  %vm56_vm3 = vcmask 273544   ;;  %v4788_v16 = vmov 7  }
   0x3   :  { %83 = vrot.lane.b32.xlu0 %v79_v2, %s2990_s29  ;;  %v44_v6 = vld [vmem:[%s4772_s2] ss:$2 sm:$0x3]  ;;  %449 = vmatprep.mubr.f32.mxu0 %v4785_v7  ;;  %63 = vst.msk [vmem:[#allocation4 + $0x18] sm:$0xff] %vm58_vm0, %v4785_v7  ;;  %v4793_v19 = vmov 6   ;;  %v4795_v21 = vmov 3  }
   0x4   :  { %4874 = vst [vmem:[#allocation5_spill] sm:$0xff] %v3093_v5  ;;  %v167_v9 = vsub.s32 0, %v3093_v5  ;;  %v171_v10 = vsub.s32 1, %v3093_v5  ;;  %61 = vst.msk [vmem:[#allocation3 + $0x10] sm:$0xff] %vm60_vm1, %v4785_v7  ;;  %v3117_v11 = vld [vmem:[%s4771_s3] sm:$0xf] }
   0x5   :  { %64 = vst.msk [vmem:[#allocation4 + $0x10] sm:$0xff] %vm60_vm1, %v4785_v7  ;;  %65 = vst.msk [vmem:[#allocation4 + $0x28] sm:$0xff] %vm60_vm1, %v4785_v7  ;;  %v66_v15 = vld [vmem:[%s4773_s0] sm:$0xff]  ;;  %v4791_v22 = vmov 2   ;;  %v4787_v23 = vmov 1   ;;  %v4789_v25 = vmov 0  }
   0x6   :  { %2909 = vset.pattern.permute.xlu1 %v4799_v8  ;;  %v3119_v12 = vrot.slane %v44_v6, %v167_v9  ;;  %v3121_v13 = vrot.slane %v44_v6, %v171_v10  ;;  %55 = vst.msk [vmem:[#allocation2] sm:$0xf] %vm54_vm2, %v4785_v7  ;;  %v3142_v17 = vld [vmem:[%s4774_s7] sm:$0xff]  ;;  %s2996_s7 = smov 2   ;;  %vm91_vm4 = vcmask 1047688   ;;  %vm74_vm5 = vcmask 1043592  }
   0x7   :  { %85 = vrot.lane.b32.xlu0 %v80_v4, %s2990_s29  ;;  %726 = vperm.xlu1 %2909, %v3082_v1   ;;  %57 = vst.msk [vmem:[#allocation2 + $0x8] sm:$0xf] %vm56_vm3, %v4785_v7  ;;  %v2864_v18 = vld [vmem:[%s4772_s2 + $0x1] ss:$2 sm:$0x3]  ;;  %s3001_s2 = smov 112  }
   0x8   :  { %4875 = vst [vmem:[#allocation6_spill] sm:$0xff] %v3119_v12  ;;  %4876 = vst [vmem:[#allocation7_spill] sm:$0xff] %v3121_v13  ;;  %v329_v20 = vrot.slane %v2864_v18, %v167_v9  ;;  %v333_v24 = vrot.slane %v2864_v18, %v171_v10  ;;  %vm75_vm6 = vcmask 1047556   ;;  %v3003_v62 = vmov 839922192   ;;  %s3005_s24 = smov 127  }
   0x9   :  { %vm3216_vm7 = vmor %vm75_vm6, %vm74_vm5  ;;  %v101_v63 = vunpack.c.l.s4 %v3003_v62  ;;  %v4783_v62 = vmov 9   ;;  %vm134_vm8 = vcmask 916480   ;;  %vm160_vm9 = vcmask 785408   ;;  %s3006_s25 = smov 126  }
   0xa   :  { %v334_v26 = vcombine.low %v329_v20, %v333_v24  ;;  %vm132_vm10 = vcmask 1043456   ;;  %vm338_vm11 = vcmask 15360   ;;  %vm254_vm12 = vcmask 1039360  }
   0xb   :  { %192 = vperm.xlu0 %2911, %v3117_v11   ;;  %2910 = vset.pattern.permute.xlu1 %v4797_v14  ;;  %v102_v2 = vunpack.c.0.s8 %v101_v63  ;;  %vm353_vm13 = vcmask 1031168   ;;  %vm887_vm14 = vcmask 64512   ;;  %vm378_vm15 = vcmask 31744  }
   0xc   :  { %774 = vperm.xlu1 %2910, %v3082_v1   ;;  %vm1508_vm1 = vcmask 130048  }
   0xd   :  { %v3269_v9 = vsub.s32 %v102_v2, %v3093_v5 }
   0xf   :  { %2914 = vset.pattern.permute.xlu0 %v4797_v14 }
  0x10   :  { %299 = vperm.xlu0 %2914, %v3117_v11   ;;  %68 = vrot.lane.b32.xlu1 %v66_v15, %s2990_s29 }
  0x11   :  { %2912 = vset.pattern.permute.xlu1 %v4799_v8 }
  0x14   :  { %2915 = vset.pattern.permute.xlu0 %v4788_v16  ;;  %272 = vperm.xlu1 %2912, %v3117_v11  }
  0x15   :  { %634 = vperm.xlu0 %2915, %v3082_v1  }
  0x18   :  { %2913 = vset.pattern.permute.xlu1 %v4788_v16 }
  0x19   :  { %658 = vperm.xlu0 %2915, %v3142_v17   ;;  %219 = vperm.xlu1 %2913, %v3117_v11  }
  0x1d   :  { %2920 = vset.pattern.permute.xlu0 %v4793_v19  ;;  %2916 = vset.pattern.permute.xlu1 %v4801_v0 }
  0x1e   :  { %522 = vperm.xlu0 %2920, %v3082_v1   ;;  %610 = vperm.xlu1 %2916, %v3142_v17  }
  0x22   :  { %821 = vrot.lane.b32.xlu0 %v329_v20, %s2996_s7  ;;  %2917 = vset.pattern.permute.xlu1 %v4799_v8 }
  0x23   :  { %2923 = vset.pattern.permute.xlu0 %v4795_v21  ;;  %750 = vperm.xlu1 %2917, %v3142_v17  }
  0x26   :  { %112 = vperm.xlu0 %2923, %v3117_v11  }
  0x27   :  { %2918 = vset.pattern.permute.xlu1 %v4797_v14 }
  0x28   :  { %798 = vperm.xlu1 %2918, %v3142_v17  }
  0x2a   :  { %500 = vperm.xlu0 %2923, %v3142_v17  }
  0x2c   :  { %2919 = vset.pattern.permute.xlu1 %v4795_v21 }
  0x2d   :  { %478 = vperm.xlu1 %2919, %v3082_v1  }
  0x2e   :  { %2926 = vset.pattern.permute.xlu0 %v4791_v22 }
  0x2f   :  { %259 = vperm.xlu0 %2926, %v3117_v11  }
  0x31   :  { %2921 = vset.pattern.permute.xlu1 %v4787_v23 }
  0x32   :  { %572 = vperm.xlu1 %2921, %v3082_v1  }
  0x33   :  { %719 = vperm.xlu0 %2926, %v3142_v17  }
  0x36   :  { %2922 = vset.pattern.permute.xlu1 %v4791_v22 }
  0x37   :  { %712 = vperm.xlu1 %2922, %v3082_v1   ;;  %2930 = vset.pattern.permute.xlu0 %v4789_v25 }
  0x3b   :  { %823 = vrot.lane.b32.xlu1 %v333_v24, %s2996_s7 }
  0x3c   :  { %2924 = vset.pattern.permute.xlu1 %v4793_v19 }
  0x3f   :  { %139 = vperm.xlu1 %2924, %v3117_v11  }
  0x43   :  { %2925 = vset.pattern.permute.xlu1 %v4787_v23 }
  0x44   :  { %179 = vperm.xlu1 %2925, %v3117_v11  }
  0x48   :  { %2927 = vset.pattern.permute.xlu1 %v4793_v19 }
  0x49   :  { %544 = vperm.xlu1 %2927, %v3142_v17  }
  0x4d   :  { %2928 = vset.pattern.permute.xlu1 %v4787_v23 }
  0x4e   :  { %579 = vperm.xlu1 %2928, %v3142_v17  }
  0x52   :  { %335 = vrot.lane.b32.xlu1 %v334_v26, %s2996_s7 }
  0x53   :  { %2929 = vset.pattern.permute.xlu1 %v4789_v25 }
  0x75   :  { %v84_v27 = vpop.permute.xlu0 %83 }
  0x76   :  { %92 = vst.msk [vmem:[#allocation3] sm:$0xff] %vm91_vm4, %v84_v27 }
  0x79   :  { %v86_v28 = vpop.permute.xlu0 %85 }
  0x7a   :  { %94 = vst.msk [vmem:[#allocation3 + $0x10] sm:$0xff] %vm58_vm0, %v86_v28  ;;  %v3188_v30 = vsel %vm58_vm0, %v84_v27, %v86_v28 }
  0x7d   :  { %v3206_v38 = vld [vmem:[#allocation3] sm:$0xff] }
  0x81   :  { %v3185_v29 = vld [vmem:[#allocation3 + $0x10] sm:$0xff]  ;;  %v3190_v31 = vpop.permute.xlu1 %586 }
  0x82   :  { %v590_v32 = vmul.f32 %v3190_v31, %v3188_v30  ;;  %v591_v33 = vmul.f32 %v3190_v31, %v3185_v29  ;;  %v589_v40 = vmul.f32 %v3190_v31, %v3206_v38 }
  0x84   :  { %597 = vrot.lane.b32.xlu0 %v590_v32, %s3001_s2  ;;  %599 = vrot.lane.b32.xlu1 %v591_v33, %s3001_s2 }
  0x86   :  { %v3198_v34 = vpop.permute.xlu1 %726 }
  0x87   :  { %v730_v35 = vmul.f32 %v3198_v34, %v3188_v30  ;;  %v731_v36 = vmul.f32 %v3198_v34, %v3185_v29  ;;  %v729_v41 = vmul.f32 %v3198_v34, %v3206_v38 }
  0x89   :  { %737 = vrot.lane.b32.xlu0 %v730_v35, %s3001_s2  ;;  %739 = vrot.lane.b32.xlu1 %v731_v36, %s3001_s2 }
  0x8a   :  { %v193_v37 = vpop.permute.xlu0 %192 }
  0x8b   :  { %v3208_v39 = vpop.permute.xlu1 %774  ;;  %v3292_v32 = vrot.slane %v193_v37, %v3269_v9 }
  0x8c   :  { %v778_v52 = vmul.f32 %v3208_v39, %v3188_v30  ;;  %v779_v53 = vmul.f32 %v3208_v39, %v3185_v29  ;;  %v777_v55 = vmul.f32 %v3208_v39, %v3206_v38 }
  0x8d   :  { %595 = vrot.lane.b32.xlu0 %v589_v40, %s3001_s2  ;;  %735 = vrot.lane.b32.xlu1 %v729_v41, %s3001_s2 }
  0x8f   :  { %v300_v42 = vpop.permute.xlu0 %299  ;;  %v69_v43 = vpop.permute.xlu1 %68 }
  0x90   :  { %v70_v45 = vrot.slane %v69_v43, 4  ;;  %v3303_v40 = vrot.slane %v300_v42, %v3269_v9 }
  0x92   :  { %v71_v46 = vsel %vm58_vm0, %v70_v45, %v69_v43  ;;  %78 = vst.msk [vmem:[#allocation2 + $0x8] sm:$0xf] %vm54_vm2, %v70_v45 }
  0x93   :  { %77 = vst.msk [vmem:[#allocation2] sm:$0xff] %vm3216_vm7, %v71_v46  ;;  %v273_v48 = vpop.permute.xlu1 %272 }
  0x94   :  { %v3224_v47 = vpop.permute.xlu0 %634  ;;  %v3280_v24 = vrot.slane %v273_v48, %v3269_v9 }
  0x95   :  { %v638_v49 = vmul.f32 %v3224_v47, %v3188_v30  ;;  %v639_v50 = vmul.f32 %v3224_v47, %v3185_v29  ;;  %v637_v54 = vmul.f32 %v3224_v47, %v3206_v38 }
  0x97   :  { %645 = vrot.lane.b32.xlu0 %v638_v49, %s3002_s23  ;;  %647 = vrot.lane.b32.xlu1 %v639_v50, %s3002_s23 }
  0x98   :  { %v220_v51 = vpop.permute.xlu1 %219  ;;  %v3264_v6 = vpop.permute.xlu0 %658 }
  0x99   :  { %4881 = vst [vmem:[#allocation10_spill] sm:$0xff] %v3264_v6  ;;  %v662_v10 = vmul.f32 %v3264_v6, %v3188_v30  ;;  %v663_v15 = vmul.f32 %v3264_v6, %v3185_v29  ;;  %v3285_v26 = vrot.slane %v220_v51, %v3269_v9  ;;  %v3300_v36 = vld [vmem:[#allocation2 + $0x8] sm:$0xf] }
  0x9a   :  { %v3277_v20 = vld [vmem:[#allocation2] sm:$0xff]  ;;  %v203_v41 = vmul.f32 %v3292_v32, %v3300_v36  ;;  %v283_v42 = vmul.f32 %v3280_v24, %v3300_v36  ;;  %v310_v50 = vmul.f32 %v3303_v40, %v3300_v36 }
  0x9b   :  { %785 = vrot.lane.b32.xlu0 %v778_v52, %s3002_s23  ;;  %787 = vrot.lane.b32.xlu1 %v779_v53, %s3002_s23  ;;  %v282_v27 = vmul.f32 %v3280_v24, %v3277_v20  ;;  %v229_v33 = vmul.f32 %v3285_v26, %v3277_v20  ;;  %v202_v35 = vmul.f32 %v3292_v32, %v3277_v20 }
  0x9c   :  { %v309_v37 = vmul.f32 %v3303_v40, %v3277_v20  ;;  %v230_v46 = vmul.f32 %v3285_v26, %v3300_v36  ;;  %v661_v52 = vmul.f32 %v3264_v6, %v3206_v38 }
  0x9d   :  { %v3242_v56 = vpop.permute.xlu1 %610 }
  0x9e   :  { %4879 = vst [vmem:[#allocation8_spill] sm:$0xff] %v3242_v56  ;;  %v615_v57 = vmul.f32 %v3242_v56, %v3185_v29  ;;  %v614_v58 = vmul.f32 %v3242_v56, %v3188_v30  ;;  %v613_v3 = vmul.f32 %v3242_v56, %v3206_v38 }
  0x9f   :  { %643 = vrot.lane.b32.xlu0 %v637_v54, %s3002_s23  ;;  %783 = vrot.lane.b32.xlu1 %v777_v55, %s3002_s23  ;;  %v3339_v54 = vpop.permute.xlu0 %522 }
  0xa0   :  { %4885 = vst [vmem:[#allocation14_spill] sm:$0xff] %v3339_v54  ;;  %v526_v63 = vmul.f32 %v3339_v54, %v3188_v30 }
  0xa2   :  { %v3252_v59 = vpop.permute.xlu1 %750 }
  0xa3   :  { %623 = vrot.lane.b32.xlu0 %v615_v57, %s3001_s2  ;;  %621 = vrot.lane.b32.xlu1 %v614_v58, %s3001_s2  ;;  %4880 = vst [vmem:[#allocation9_spill] sm:$0xff] %v3252_v59  ;;  %v755_v60 = vmul.f32 %v3252_v59, %v3185_v29  ;;  %v754_v61 = vmul.f32 %v3252_v59, %v3188_v30  ;;  %v3349_v58 = vpop.permute.xlu0 %821 }
  0xa4   :  { %v753_v4 = vmul.f32 %v3252_v59, %v3206_v38  ;;  %v527_v57 = vmul.f32 %v3339_v54, %v3185_v29 }
  0xa7   :  { %763 = vrot.lane.b32.xlu0 %v755_v60, %s3001_s2  ;;  %761 = vrot.lane.b32.xlu1 %v754_v61, %s3001_s2  ;;  %v3275_v18 = vpop.permute.xlu1 %798  ;;  %v113_v2 = vpop.permute.xlu0 %112 }
  0xa8   :  { %4882 = vst [vmem:[#allocation11_spill] sm:$0xff] %v3275_v18  ;;  %v802_v28 = vmul.f32 %v3275_v18, %v3188_v30  ;;  %v803_v43 = vmul.f32 %v3275_v18, %v3185_v29  ;;  %v801_v48 = vmul.f32 %v3275_v18, %v3206_v38 }
  0xab   :  { %619 = vrot.lane.b32.xlu1 %v613_v3, %s3001_s2  ;;  %759 = vrot.lane.b32.xlu0 %v753_v4, %s3001_s2  ;;  %v3363_v4 = vrot.slane %v113_v2, %v3269_v9 }
  0xac   :  { %v3317_v45 = vpop.permute.xlu1 %478 }
  0xad   :  { %4883 = vst [vmem:[#allocation12_spill] sm:$0xff] %v3317_v45  ;;  %v482_v51 = vmul.f32 %v3317_v45, %v3188_v30  ;;  %v481_v53 = vmul.f32 %v3317_v45, %v3206_v38  ;;  %v483_v61 = vmul.f32 %v3317_v45, %v3185_v29  ;;  %4887 = vst [vmem:[#allocation16_spill] sm:$0xff] %v3363_v4 }
  0xaf   :  { %669 = vrot.lane.b32.xlu1 %v662_v10, %s3002_s23  ;;  %671 = vrot.lane.b32.xlu0 %v663_v15, %s3002_s23  ;;  %v525_v10 = vmul.f32 %v3339_v54, %v3206_v38 }
  0xb1   :  { %v3327_v49 = vpop.permute.xlu1 %572 }
  0xb2   :  { %4884 = vst [vmem:[#allocation13_spill] sm:$0xff] %v3327_v49  ;;  %v575_v16 = vmul.f32 %v3327_v49, %v3206_v38 }
  0xb3   :  { %286 = vrot.lane.b32.xlu0 %v282_v27, %s3001_s2  ;;  %809 = vrot.lane.b32.xlu1 %v802_v28, %s3002_s23  ;;  %v122_v27 = vmul.f32 %v3277_v20, %v3363_v4  ;;  %v110_v28 = vld [vmem:[#allocation2 + $0x8] sm:$0xf] }
  0xb6   :  { %v3341_v55 = vpop.permute.xlu1 %712 }
  0xb7   :  { %233 = vrot.lane.b32.xlu0 %v229_v33, %s3002_s23  ;;  %206 = vrot.lane.b32.xlu1 %v202_v35, %s3001_s2  ;;  %4886 = vst [vmem:[#allocation15_spill] sm:$0xff] %v3341_v55  ;;  %v3376_v35 = vpop.permute.xlu0 %500 }
  0xba   :  { %v3351_v60 = vpop.permute.xlu1 %823 }
  0xbb   :  { %313 = vrot.lane.b32.xlu0 %v309_v37, %s3002_s23  ;;  %208 = vrot.lane.b32.xlu1 %v203_v41, %s3001_s2  ;;  %v123_v37 = vmul.f32 %v3363_v4, %v110_v28  ;;  %v504_v41 = vmul.f32 %v3376_v35, %v3188_v30 }
  0xbe   :  { %v140_v3 = vpop.permute.xlu1 %139 }
  0xbf   :  { %811 = vrot.lane.b32.xlu0 %v803_v43, %s3002_s23  ;;  %288 = vrot.lane.b32.xlu1 %v283_v42, %s3001_s2  ;;  %v3368_v15 = vrot.slane %v140_v3, %v3269_v9 }
  0xc1   :  { %4888 = vst [vmem:[#allocation17_spill] sm:$0xff] %v3368_v15  ;;  %v150_v33 = vmul.f32 %v3368_v15, %v110_v28 }
  0xc3   :  { %235 = vrot.lane.b32.xlu1 %v230_v46, %s3002_s23  ;;  %807 = vrot.lane.b32.xlu0 %v801_v48, %s3002_s23  ;;  %v3383_v43 = vpop.permute.xlu1 %179  ;;  %v3393_v46 = vpop.permute.xlu0 %259 }
  0xc7   :  { %315 = vrot.lane.b32.xlu1 %v310_v50, %s3002_s23  ;;  %489 = vrot.lane.b32.xlu0 %v482_v51, %s3001_s2  ;;  %v3400_v51 = vpop.permute.xlu0 %719 }
  0xc8   :  { %v3390_v42 = vpop.permute.xlu1 %544  ;;  %4891 = vst [vmem:[#allocation20_spill] sm:$0xff] %v3400_v51 }
  0xc9   :  { %4889 = vst [vmem:[#allocation18_spill] sm:$0xff] %v3390_v42 }
  0xcb   :  { %667 = vrot.lane.b32.xlu1 %v661_v52, %s3002_s23  ;;  %487 = vrot.lane.b32.xlu0 %v481_v53, %s3001_s2 }
  0xcd   :  { %v3395_v48 = vpop.permute.xlu1 %579 }
  0xce   :  { %4890 = vst [vmem:[#allocation19_spill] sm:$0xff] %v3395_v48 }
  0xcf   :  { %462 = vperm.xlu1 %2929, %v3082_v1   ;;  %535 = vrot.lane.b32.xlu0 %v527_v57, %s3002_s23 }
  0xd1   :  { %v3398_v50 = vpop.permute.xlu1 %335 }
  0xd3   :  { %491 = vrot.lane.b32.xlu1 %v483_v61, %s3001_s2  ;;  %98 = vperm.xlu0 %2930, %v3117_v11  }
  0xd4   :  { %2932 = vset.pattern.permute.xlu1 %v4783_v62 }
  0xd7   :  { %533 = vrot.lane.b32.xlu1 %v526_v63, %s3002_s23  ;;  %469 = vperm.xlu0 %2930, %v3142_v17  }
  0xdb   :  { %531 = vrot.lane.b32.xlu1 %v525_v10, %s3002_s23  ;;  %2931 = vset.pattern.permute.xlu0 %v4783_v62 }
  0xdc   :  { %866 = vperm.xlu0 %2931, %v3082_v1   ;;  %v149_v1 = vmul.f32 %v3277_v20, %v3368_v15 }
  0xdf   :  { %126 = vrot.lane.b32.xlu1 %v122_v27, %s3001_s2 }
  0xe0   :  { %155 = vrot.lane.b32.xlu0 %v150_v33, %s3002_s23  ;;  %v576_v33 = vmul.f32 %v3327_v49, %v3188_v30 }
  0xe3   :  { %128 = vrot.lane.b32.xlu1 %v123_v37, %s3001_s2 }
  0xe4   :  { %511 = vrot.lane.b32.xlu0 %v504_v41, %s3001_s2 }
  0xe7   :  { %153 = vrot.lane.b32.xlu1 %v149_v1, %s3002_s23 }
  0xeb   :  { %358 = vperm.xlu1 %2932, %v3117_v11   ;;  %v577_v11 = vmul.f32 %v3327_v49, %v3185_v29  ;;  %v3461_v49 = vrot.slane %v3393_v46, %v3269_v9 }
  0xef   :  { %2933 = vset.pattern.permute.xlu1 %v4801_v0 }
  0xf6   :  { %v598_v52 = vpop.permute.xlu0 %597  ;;  %v600_v53 = vpop.permute.xlu1 %599 }
  0xf7   :  { %v608_v3 = vadd.f32 %v600_v53, %v577_v11  ;;  %v602_v10 = vsel %vm134_vm8, %v598_v52, %v600_v53  ;;  %v717_v53 = vmul.f32 %v3341_v55, %v3185_v29 }
  0xf8   :  { %v607_v1 = vadd.f32 %v602_v10, %v576_v33 }
  0xfb   :  { %v3402_v57 = vpop.permute.xlu0 %737  ;;  %v740_v61 = vpop.permute.xlu1 %739 }
  0xff   :  { %v596_v63 = vpop.permute.xlu0 %595  ;;  %v3404_v2 = vpop.permute.xlu1 %735 }
 0x100   :  { %v601_v23 = vsel %vm134_vm8, %v596_v63, %v598_v52 }
 0x101   :  { %v606_v25 = vadd.f32 %v601_v23, %v575_v16  ;;  %v503_v23 = vmul.f32 %v3376_v35, %v3206_v38 }
 0x109   :  { %v646_v27 = vpop.permute.xlu0 %645  ;;  %v648_v28 = vpop.permute.xlu1 %647 }
 0x10a   :  { %v656_v37 = vadd.f32 %v648_v28, %v608_v3  ;;  %v650_v41 = vsel %vm160_vm9, %v646_v27, %v648_v28  ;;  %v748_v3 = vadd.f32 %v740_v61, %v717_v53 }
 0x10b   :  { %v655_v11 = vadd.f32 %v650_v41, %v607_v1 }
 0x10c   :  { %688 = vrot.lane.b32.xlu1 %v656_v37, %s3005_s24 }
 0x10d   :  { %v786_v62 = vpop.permute.xlu0 %785  ;;  %v788_v7 = vpop.permute.xlu1 %787 }
 0x10e   :  { %v796_v37 = vadd.f32 %v788_v7, %v748_v3  ;;  %v790_v0 = vsel %vm160_vm9, %v786_v62, %v788_v7  ;;  %v741_v7 = vsel %vm134_vm8, %v3404_v2, %v3402_v57 }
 0x110   :  { %686 = vrot.lane.b32.xlu1 %v655_v11, %s3005_s24  ;;  %v831_v63 = vmul.f32 %v3351_v60, %v796_v37  ;;  %v3449_v37 = vrot.slane %v3383_v43, %v3269_v9 }
 0x111   :  { %v644_v28 = vpop.permute.xlu0 %643  ;;  %v784_v10 = vpop.permute.xlu1 %783 }
 0x112   :  { %v649_v33 = vsel %vm160_vm9, %v644_v28, %v646_v27  ;;  %v190_v5 = vmul.f32 %v3449_v37, %v3300_v36 }
 0x113   :  { %v654_v22 = vadd.f32 %v649_v33, %v606_v25 }
 0x115   :  { %v3420_v19 = vpop.permute.xlu0 %623  ;;  %684 = vrot.lane.b32.xlu0 %v654_v22, %s3005_s24  ;;  %v3423_v52 = vpop.permute.xlu1 %621  ;;  %v549_v22 = vmul.f32 %v3390_v42, %v3185_v29 }
 0x119   :  { %v3426_v41 = vpop.permute.xlu0 %763  ;;  %839 = vrot.lane.b32.xlu0 %v831_v63, %s3006_s25  ;;  %v3429_v16 = vpop.permute.xlu1 %761 }
 0x11d   :  { %509 = vrot.lane.b32.xlu0 %v503_v23, %s3001_s2  ;;  %v3434_v25 = vpop.permute.xlu1 %619  ;;  %v3436_v27 = vpop.permute.xlu0 %759  ;;  %v742_v23 = vsel %vm134_vm8, %v3402_v57, %v740_v61  ;;  %v715_v61 = vmul.f32 %v3341_v55, %v3206_v38 }
 0x121   :  { %557 = vrot.lane.b32.xlu0 %v549_v22, %s3002_s23  ;;  %v3441_v1 = vpop.permute.xlu1 %669  ;;  %v3443_v11 = vpop.permute.xlu0 %671  ;;  %v716_v22 = vmul.f32 %v3341_v55, %v3188_v30  ;;  %v789_v55 = vsel %vm160_vm9, %v784_v10, %v786_v62 }
 0x123   :  { %v747_v4 = vadd.f32 %v742_v23, %v716_v22 }
 0x125   :  { %v3445_v53 = vpop.permute.xlu1 %809  ;;  %v287_v28 = vpop.permute.xlu0 %286  ;;  %v795_v18 = vadd.f32 %v790_v0, %v747_v4  ;;  %v746_v0 = vadd.f32 %v741_v7, %v715_v61 }
 0x126   :  { %v290_v54 = vrot.slane %v287_v28, 4 }
 0x127   :  { %v794_v2 = vadd.f32 %v789_v55, %v746_v0 }
 0x129   :  { %v207_v3 = vpop.permute.xlu1 %206  ;;  %v234_v14 = vpop.permute.xlu0 %233 }
 0x12a   :  { %v210_v21 = vrot.slane %v207_v3, 4  ;;  %v237_v23 = vrot.slane %v234_v14, 4 }
 0x12d   :  { %v209_v33 = vpop.permute.xlu1 %208  ;;  %v314_v56 = vpop.permute.xlu0 %313 }
 0x12e   :  { %v211_v63 = vrot.slane %v209_v33, 4  ;;  %v217_v45 = vadd.f32 %v209_v33, %v190_v5  ;;  %v3476_v5 = vsel %vm338_vm11, %v3349_v58, %v3351_v60  ;;  %v317_v10 = vrot.slane %v314_v56, 4 }
 0x130   :  { %v212_v15 = vsel %vm132_vm10, %v210_v21, %v211_v63  ;;  %v189_v21 = vmul.f32 %v3449_v37, %v3277_v20 }
 0x131   :  { %v289_v8 = vpop.permute.xlu1 %288  ;;  %v213_v63 = vsel %vm134_vm8, %v207_v3, %v212_v15  ;;  %v269_v15 = vmul.f32 %v3461_v49, %v3277_v20 }
 0x132   :  { %v291_v43 = vrot.slane %v289_v8, 4  ;;  %v216_v4 = vadd.f32 %v213_v63, %v189_v21  ;;  %v505_v63 = vmul.f32 %v3376_v35, %v3185_v29 }
 0x134   :  { %v292_v46 = vsel %vm132_vm10, %v290_v54, %v291_v43  ;;  %v3486_v43 = vrot.slane %v3398_v50, 4 }
 0x135   :  { %v236_v6 = vpop.permute.xlu1 %235  ;;  %v293_v62 = vsel %vm134_vm8, %v287_v28, %v292_v46  ;;  %v812_v46 = vpop.permute.xlu0 %811 }
 0x136   :  { %v238_v22 = vrot.slane %v236_v6, 4  ;;  %v244_v59 = vadd.f32 %v236_v6, %v217_v45  ;;  %v830_v6 = vmul.f32 %v3476_v5, %v795_v18  ;;  %v296_v61 = vadd.f32 %v293_v62, %v269_v15 }
 0x137   :  { %v3496_v55 = vsel %vm338_vm11, %v3486_v43, %v3398_v50  ;;  %v582_v50 = vmul.f32 %v3395_v48, %v3206_v38 }
 0x138   :  { %249 = vrot.lane.b32.xlu1 %v244_v59, %s3005_s24  ;;  %v239_v57 = vsel %vm132_vm10, %v237_v23, %v238_v22  ;;  %4892 = vst [vmem:[#allocation21_spill] sm:$0xff] %v3496_v55  ;;  %v724_v23 = vmul.f32 %v3400_v51, %v3185_v29 }
 0x139   :  { %v316_v54 = vpop.permute.xlu1 %315  ;;  %v240_v45 = vsel %vm160_vm9, %v234_v14, %v239_v57  ;;  %v829_v14 = vmul.f32 %v3349_v58, %v794_v2  ;;  %v270_v57 = vmul.f32 %v3461_v49, %v3300_v36  ;;  %v547_v2 = vmul.f32 %v3390_v42, %v3206_v38 }
 0x13a   :  { %v318_v3 = vrot.slane %v316_v54, 4  ;;  %v243_v33 = vadd.f32 %v240_v45, %v216_v4  ;;  %v772_v0 = vadd.f32 %v3426_v41, %v724_v23  ;;  %v626_v36 = vsel %vm134_vm8, %v3423_v52, %v3420_v19 }
 0x13c   :  { %v319_v59 = vsel %vm132_vm10, %v317_v10, %v318_v3  ;;  %837 = vrot.lane.b32.xlu1 %v830_v6, %s3006_s25  ;;  %247 = vrot.lane.b32.xlu0 %v243_v33, %s3005_s24  ;;  %v820_v15 = vadd.f32 %v812_v46, %v772_v0  ;;  %v297_v6 = vadd.f32 %v289_v8, %v270_v57  ;;  %v4893_v10 = vmov 4   ;;  %v3539_v33 = vld [vmem:[%s4775_s9] sm:$0xff] }
 0x13d   :  { %v320_v18 = vsel %vm160_vm9, %v314_v56, %v319_v59  ;;  %v668_v21 = vpop.permute.xlu1 %667  ;;  %v625_v56 = vsel %vm134_vm8, %v3434_v25, %v3423_v52  ;;  %v548_v25 = vmul.f32 %v3390_v42, %v3188_v30  ;;  %v583_v8 = vmul.f32 %v3395_v48, %v3188_v30  ;;  %v3585_v0 = vld [vmem:[%s4777_s4] sm:$0xff] }
 0x13e   :  { %v323_v7 = vadd.f32 %v320_v18, %v296_v61  ;;  %v673_v22 = vsel %vm160_vm9, %v668_v21, %v3441_v1  ;;  %v630_v4 = vadd.f32 %v625_v56, %v582_v50  ;;  %v324_v62 = vadd.f32 %v316_v54, %v297_v6  ;;  %v808_v21 = vpop.permute.xlu0 %807 }
 0x13f   :  { %v674_v3 = vsel %vm160_vm9, %v3441_v1, %v3443_v11  ;;  %v631_v59 = vadd.f32 %v626_v36, %v583_v8  ;;  %v766_v52 = vsel %vm134_vm8, %v3429_v16, %v3426_v41  ;;  %v584_v61 = vmul.f32 %v3395_v48, %v3185_v29  ;;  %v3557_v41 = vld [vmem:[%s4775_s9 + $0x8] sm:$0xff] }
 0x140   :  { %835 = vrot.lane.b32.xlu1 %v829_v14, %s3006_s25  ;;  %v342_v28 = vmul.f32 %v3496_v55, %v323_v7  ;;  %v678_v45 = vadd.f32 %v673_v22, %v630_v4  ;;  %v343_v54 = vmul.f32 %v3486_v43, %v324_v62  ;;  %v723_v18 = vmul.f32 %v3400_v51, %v3188_v30  ;;  %v2873_v4 = vld [vmem:[%s4770_s1 + $0x18] sm:$0xff] }
 0x141   :  { %v679_v14 = vadd.f32 %v674_v3, %v631_v59  ;;  %v814_v1 = vsel %vm160_vm9, %v3445_v53, %v812_v46  ;;  %v632_v7 = vadd.f32 %v3420_v19, %v584_v61  ;;  %v765_v29 = vsel %vm134_vm8, %v3436_v27, %v3429_v16  ;;  %v3573_v16 = vld [vmem:[%s4776_s6] sm:$0xff]  ;;  %v2872_v59 = vld [vmem:[%s4770_s1 + $0x10] sm:$0xff] }
 0x142   :  { %346 = vrot.lane.b32.xlu0 %v342_v28, %s3006_s25  ;;  %v771_v28 = vadd.f32 %v766_v52, %v723_v18  ;;  %v4894_v19 = vmov 5   ;;  %v813_v50 = vsel %vm160_vm9, %v808_v21, %v3445_v53  ;;  %v4896_v57 = vmov 3   ;;  %v490_v62 = vpop.permute.xlu0 %489  ;;  %v2871_v18 = vld [vmem:[%s4773_s0 + $0x8] sm:$0xff] }
 0x143   :  { %v680_v56 = vadd.f32 %v3443_v11, %v632_v7  ;;  %v4895_v11 = vmov 8   ;;  %v4898_v6 = vmov 2  }
 0x144   :  { %513 = vrot.lane.b32.xlu1 %v505_v63, %s3001_s2  ;;  %v722_v63 = vmul.f32 %v3400_v51, %v3206_v38  ;;  %v819_v23 = vadd.f32 %v814_v1, %v771_v28 }
 0x146   :  { %874 = vperm.xlu0 %2931, %v3142_v17   ;;  %v849_v17 = vmul.f32 %v3351_v60, %v820_v15  ;;  %v770_v46 = vadd.f32 %v765_v29, %v722_v63  ;;  %v848_v27 = vmul.f32 %v3476_v5, %v819_v23  ;;  %v4897_v15 = vmov 6   ;;  %v488_v8 = vpop.permute.xlu0 %487 }
 0x147   :  { %v4904_v29 = vmov 1  }
 0x148   :  { %555 = vrot.lane.b32.xlu1 %v548_v25, %s3002_s23  ;;  %v818_v22 = vadd.f32 %v813_v50, %v770_v46  ;;  %v3596_v25 = vld [vmem:[%s4778_s8] sm:$0xff] }
 0x14a   :  { %699 = vrot.lane.b32.xlu0 %v678_v45, %s3005_s24  ;;  %v847_v53 = vmul.f32 %v3349_v58, %v818_v22  ;;  %v536_v3 = vpop.permute.xlu0 %535 }
 0x14b   :  { %2935 = vset.pattern.permute.xlu0 %v4893_v10 }
 0x14c   :  { %553 = vrot.lane.b32.xlu1 %v547_v2, %s3002_s23  ;;  %v4900_v2 = vmov 0  }
 0x14e   :  { %857 = vrot.lane.b32.xlu0 %v849_v17, %s3006_s25  ;;  %v3606_v45 = vpop.permute.xlu1 %462  ;;  %v4901_v17 = vmov 7  }
 0x14f   :  { %4899 = vst [vmem:[#allocation22_spill] sm:$0xff] %v3606_v45 }
 0x150   :  { %348 = vrot.lane.b32.xlu1 %v343_v54, %s3006_s25 }
 0x152   :  { %1215 = vperm.xlu0 %2935, %v3539_v33   ;;  %v492_v36 = vpop.permute.xlu1 %491  ;;  %v99_v61 = vpop.permute.xlu0 %98 }
 0x153   :  { %v494_v46 = vsel %vm134_vm8, %v490_v62, %v492_v36 }
 0x154   :  { %701 = vrot.lane.b32.xlu1 %v679_v14, %s3005_s24 }
 0x156   :  { %2938 = vset.pattern.permute.xlu0 %v4894_v19  ;;  %v534_v54 = vpop.permute.xlu1 %533  ;;  %v3628_v1 = vpop.permute.xlu0 %469 }
 0x157   :  { %1359 = vperm.xlu0 %2938, %v3557_v41   ;;  %4902 = vst [vmem:[#allocation23_spill] sm:$0xff] %v3628_v1  ;;  %v538_v22 = vsel %vm160_vm9, %v534_v54, %v536_v3 }
 0x158   :  { %703 = vrot.lane.b32.xlu1 %v680_v56, %s3005_s24 }
 0x15a   :  { %v532_v52 = vpop.permute.xlu1 %531 }
 0x15b   :  { %2939 = vset.pattern.permute.xlu0 %v4895_v11  ;;  %v3632_v28 = vpop.permute.xlu0 %866 }
 0x15c   :  { %855 = vrot.lane.b32.xlu1 %v848_v27, %s3006_s25  ;;  %884 = vperm.xlu0 %2939, %v3573_v16   ;;  %4903 = vst [vmem:[#allocation24_spill] sm:$0xff] %v3632_v28  ;;  %v466_v27 = vmul.f32 %v3606_v45, %v3188_v30 }
 0x15e   :  { %v3626_v14 = vpop.permute.xlu1 %126 }
 0x15f   :  { %v156_v63 = vpop.permute.xlu0 %155 }
 0x160   :  { %853 = vrot.lane.b32.xlu1 %v847_v53, %s3006_s25  ;;  %1403 = vperm.xlu0 %2939, %v3539_v33   ;;  %v498_v53 = vadd.f32 %v494_v46, %v466_v27 }
 0x162   :  { %v129_v7 = vpop.permute.xlu1 %128 }
 0x163   :  { %v3642_v23 = vpop.permute.xlu0 %511 }
 0x164   :  { %373 = vperm.xlu1 %2933, %v3585_v0   ;;  %1647 = vrot.lane.b32.xlu0 %v2873_v4, %s2990_s29  ;;  %v465_v4 = vmul.f32 %v3206_v38, %v3606_v45 }
 0x165   :  { %2942 = vset.pattern.permute.xlu0 %v4896_v57 }
 0x166   :  { %v3635_v21 = vpop.permute.xlu1 %153 }
 0x168   :  { %2934 = vset.pattern.permute.xlu1 %v4895_v11  ;;  %1109 = vperm.xlu0 %2942, %v3539_v33  }
 0x169   :  { %966 = vperm.xlu1 %2934, %v3596_v25  }
 0x16a   :  { %v3639_v56 = vpop.permute.xlu1 %358 }
 0x16c   :  { %2945 = vset.pattern.permute.xlu0 %v4897_v15 }
 0x16d   :  { %2936 = vset.pattern.permute.xlu1 %v4893_v10  ;;  %1157 = vperm.xlu0 %2945, %v3557_v41  }
 0x16e   :  { %1219 = vperm.xlu1 %2936, %v3557_v41  }
 0x171   :  { %2947 = vset.pattern.permute.xlu0 %v4898_v6 }
 0x172   :  { %2937 = vset.pattern.permute.xlu1 %v4894_v19  ;;  %1341 = vperm.xlu0 %2947, %v3539_v33  }
 0x173   :  { %1355 = vperm.xlu1 %2937, %v3539_v33  }
 0x176   :  { %2950 = vset.pattern.permute.xlu0 %v4900_v2 }
 0x177   :  { %2940 = vset.pattern.permute.xlu1 %v4901_v17  ;;  %v493_v17 = vsel %vm134_vm8, %v488_v8, %v490_v62 }
 0x178   :  { %1263 = vperm.xlu1 %2940, %v3539_v33   ;;  %v497_v36 = vadd.f32 %v493_v17, %v465_v4  ;;  %v131_v4 = vrot.slane %v129_v7, 4 }
 0x17c   :  { %1267 = vperm.xlu1 %2940, %v3557_v41  }
 0x17e   :  { %v689_v19 = vpop.permute.xlu1 %688 }
 0x180   :  { %2941 = vset.pattern.permute.xlu1 %v4895_v11 }
 0x181   :  { %1407 = vperm.xlu1 %2941, %v3557_v41  }
 0x185   :  { %1645 = vrot.lane.b32.xlu1 %v2872_v59, %s2990_s29  ;;  %v537_v59 = vsel %vm160_vm9, %v532_v52, %v534_v54 }
 0x186   :  { %2943 = vset.pattern.permute.xlu1 %v4896_v57  ;;  %v687_v57 = vpop.permute.xlu1 %686  ;;  %v541_v51 = vadd.f32 %v537_v59, %v497_v36  ;;  %v130_v36 = vrot.slane %v3626_v14, 4 }
 0x187   :  { %v685_v50 = vpop.permute.xlu0 %684 }
 0x188   :  { %v690_v45 = vsel %vm254_vm12, %v685_v50, %v687_v57 }
 0x189   :  { %1632 = vrot.lane.b32.xlu1 %v2871_v18, %s2990_s29 }
 0x18d   :  { %1113 = vperm.xlu1 %2943, %v3557_v41  }
 0x191   :  { %2944 = vset.pattern.permute.xlu1 %v4897_v15  ;;  %v542_v15 = vadd.f32 %v538_v22, %v498_v53  ;;  %v567_v53 = vmul.f32 %v541_v51, %v3119_v12  ;;  %v3666_v51 = vrot.slane %v99_v61, %v3269_v9 }
 0x192   :  { %1153 = vperm.xlu1 %2944, %v3539_v33  }
 0x193   :  { %v694_v8 = vadd.f32 %v690_v45, %v567_v53  ;;  %4905 = vst [vmem:[#allocation25_spill] sm:$0xff] %v3666_v51  ;;  %v158_v45 = vrot.slane %v156_v63, 4  ;;  %v108_v53 = vmul.f32 %v3277_v20, %v3666_v51  ;;  %v4906_v63 = vmov 0.0  }
 0x196   :  { %2946 = vset.pattern.permute.xlu1 %v4904_v29  ;;  %v691_v29 = vsel %vm254_vm12, %v687_v57, %v689_v19 }
 0x197   :  { %1201 = vperm.xlu1 %2946, %v3539_v33  }
 0x19b   :  { %1205 = vperm.xlu1 %2946, %v3557_v41  }
 0x19f   :  { %2948 = vset.pattern.permute.xlu1 %v4898_v6  ;;  %v840_v6 = vpop.permute.xlu0 %839 }
 0x1a0   :  { %1345 = vperm.xlu1 %2948, %v3557_v41  }
 0x1a3   :  { %v510_v3 = vpop.permute.xlu0 %509 }
 0x1a4   :  { %2949 = vset.pattern.permute.xlu1 %v4900_v2  ;;  %v568_v2 = vmul.f32 %v542_v15, %v3121_v13 }
 0x1a6   :  { %v695_v27 = vadd.f32 %v691_v29, %v568_v2  ;;  %v157_v29 = vrot.slane %v3635_v21, 4 }
 0x1a7   :  { %v558_v17 = vpop.permute.xlu0 %557 }
 0x1aa   :  { %v250_v18 = vpop.permute.xlu1 %249 }
 0x1ae   :  { %v838_v46 = vpop.permute.xlu1 %837  ;;  %v248_v7 = vpop.permute.xlu0 %247 }
 0x1af   :  { %v842_v22 = vsel %vm353_vm13, %v838_v46, %v840_v6  ;;  %v133_v6 = vsel %vm132_vm10, %v130_v36, %v131_v4 }
 0x1b0   :  { %v846_v62 = vadd.f32 %v842_v22, %v695_v27  ;;  %v135_v27 = vsel %vm134_vm8, %v3626_v14, %v133_v6  ;;  %v3681_v14 = vcombine.low %v3119_v12, %v3121_v13 }
 0x1b2   :  { %v836_v54 = vpop.permute.xlu1 %835  ;;  %v870_v52 = vadd.f32 %v3632_v28, %v846_v62  ;;  %v251_v62 = vrot.slane %v248_v7, 4  ;;  %4907 = vst [vmem:[#allocation26_spill] sm:$0xff] %v3681_v14 }
 0x1b3   :  { %v841_v19 = vsel %vm353_vm13, %v836_v54, %v838_v46  ;;  %v159_v46 = vsel %vm132_vm10, %v157_v29, %v158_v45  ;;  %v252_v54 = vrot.slane %v250_v18, 4  ;;  %v473_v18 = vmul.f32 %v3628_v1, %v3188_v30 }
 0x1b4   :  { %v845_v59 = vadd.f32 %v841_v19, %v694_v8  ;;  %v872_v15 = vmax.f32 %v870_v52, 0.0  ;;  %v161_v61 = vsel %vm160_vm9, %v3635_v21, %v159_v46  ;;  %v137_v8 = vadd.f32 %v135_v27, %v108_v53  ;;  %v347_v20 = vpop.permute.xlu0 %346 }
 0x1b5   :  { %v253_v19 = vsel %vm132_vm10, %v251_v62, %v252_v54  ;;  %v350_v36 = vrot.slane %v347_v20, 4  ;;  %v3697_v53 = vrot.slane %v3639_v56, %v3269_v9  ;;  %v472_v30 = vmul.f32 %v3206_v38, %v3628_v1 }
 0x1b6   :  { %890 = vmatprep.subr.mxu1 %v872_v15  ;;  %v514_v50 = vpop.permute.xlu1 %513  ;;  %v869_v57 = vadd.f32 %v3632_v28, %v845_v59  ;;  %v163_v4 = vadd.f32 %v161_v61, %v137_v8  ;;  %v255_v59 = vsel %vm254_vm12, %v248_v7, %v253_v19 }
 0x1b7   :  { %v516_v21 = vsel %vm134_vm8, %v3642_v23, %v514_v50  ;;  %4909 = vst [vmem:[#allocation28_spill] sm:$0xff] %v3697_v53  ;;  %v515_v50 = vsel %vm134_vm8, %v510_v3, %v3642_v23 }
 0x1b8   :  { %v871_v2 = vmax.f32 %v869_v57, 0.0  ;;  %v520_v46 = vadd.f32 %v516_v21, %v473_v18 }
 0x1ba   :  { %891 = vmatpush1.msra.mxu1 %v871_v2  ;;  %v556_v22 = vpop.permute.xlu1 %555 }
 0x1bb   :  { %2868 = vmatmul.mubr.msk.f32.vlgmr.msra.gmra.mrb[0].mxu1 %vm887_vm14, %v3573_v16  ;;  %v175_v16 = vmul.f32 %v3681_v14, %v163_v4  ;;  %v560_v45 = vsel %vm160_vm9, %v556_v22, %v558_v17  ;;  %v519_v4 = vadd.f32 %v515_v50, %v472_v30 }
 0x1bc   :  { %1575 = vmatprep.mubr.f32.mxu1 %v4906_v63  ;;  %v564_v17 = vadd.f32 %v560_v45, %v520_v46 }
 0x1bd   :  { %v257_v57 = vadd.f32 %v255_v59, %v175_v16 }
 0x1be   :  { %v554_v52 = vpop.permute.xlu1 %553  ;;  %v570_v56 = vmul.f32 %v564_v17, %v3121_v13 }
 0x1bf   :  { %v559_v61 = vsel %vm160_vm9, %v554_v52, %v556_v22 }
 0x1c0   :  { %v563_v9 = vadd.f32 %v559_v61, %v519_v4 }
 0x1c2   :  { %v349_v15 = vpop.permute.xlu1 %348  ;;  %v569_v52 = vmul.f32 %v563_v9, %v3119_v12 }
 0x1c3   :  { %v351_v29 = vrot.slane %v349_v15, 4 }
 0x1c5   :  { %v352_v6 = vsel %vm132_vm10, %v350_v36, %v351_v29  ;;  %v3692_v2 = vpop.permute.xlu0 %874 }
 0x1c6   :  { %4908 = vst [vmem:[#allocation27_spill] sm:$0xff] %v3692_v2  ;;  %v702_v7 = vpop.permute.xlu1 %701  ;;  %v354_v27 = vsel %vm353_vm13, %v347_v20, %v352_v6 }
 0x1c7   :  { %v356_v62 = vadd.f32 %v354_v27, %v257_v57 }
 0x1c9   :  { %v700_v8 = vpop.permute.xlu0 %699  ;;  %v368_v54 = vadd.f32 %v3697_v53, %v356_v62 }
 0x1ca   :  { %v704_v19 = vpop.permute.xlu1 %703  ;;  %v705_v38 = vsel %vm254_vm12, %v700_v8, %v702_v7 }
 0x1cb   :  { %v706_v20 = vsel %vm254_vm12, %v702_v7, %v704_v19  ;;  %v369_v59 = vmax.f32 %v368_v54, 0.0  ;;  %v709_v29 = vadd.f32 %v705_v38, %v569_v52 }
 0x1cc   :  { %v710_v3 = vadd.f32 %v706_v20, %v570_v56 }
 0x1cd   :  { %v858_v15 = vpop.permute.xlu0 %857  ;;  %v377_v23 = vcombine.high %v369_v59, %v369_v59 }
 0x1ce   :  { %v856_v16 = vpop.permute.xlu1 %855 }
 0x1cf   :  { %v860_v22 = vsel %vm353_vm13, %v856_v16, %v858_v15  ;;  %2865 = vmatprep.subr.msk.mxu0 %vm132_vm10, %v377_v23 }
 0x1d0   :  { %v864_v36 = vadd.f32 %v860_v22, %v710_v3  ;;  %2866 = vmatpush1.msk.msra.mxu0 %vm132_vm10, %v369_v59 }
 0x1d1   :  { %2867 = vmatmul.mubr.msk.f32.vlgmr.msra.gmra.mrb[0].mxu0 %vm378_vm15, %v3585_v0  ;;  %v3714_v21 = vpop.permute.xlu0 %1215 }
 0x1d2   :  { %4910 = vst [vmem:[#allocation29_spill] sm:$0xff] %v3714_v21  ;;  %v854_v18 = vpop.permute.xlu1 %853  ;;  %v878_v57 = vadd.f32 %v3692_v2, %v864_v36  ;;  %1035 = vmatprep.mubr.f32.mxu0 %v4906_v63 }
 0x1d3   :  { %v859_v45 = vsel %vm353_vm13, %v854_v18, %v856_v16 }
 0x1d4   :  { %v863_v6 = vadd.f32 %v859_v45, %v709_v29  ;;  %v880_v46 = vmax.f32 %v878_v57, 0.0 }
 0x1d6   :  { %v877_v7 = vadd.f32 %v3692_v2, %v863_v6  ;;  %971 = vmatprep.subr.mxu0 %v880_v46  ;;  %v3720_v27 = vpop.permute.xlu0 %1359 }
 0x1d8   :  { %v879_v50 = vmax.f32 %v877_v7, 0.0 }
 0x1da   :  { %972 = vmatpush1.msra.mxu0 %v879_v50 }
 0x1db   :  { %v3722_v0 = vpop.permute.xlu0 %884  ;;  %2869 = vmatmul.mubr.msk.f32.vlgmr.msra.gmra.mrb[2].mxu0 %vm887_vm14, %v3596_v25 }
 0x1dc   :  { %1862 = vmatprep.mubr.f32.mxu0 %v4906_v63 }
 0x1df   :  { %v3727_v62 = vpop.permute.xlu0 %1403 }
 0x1e0   :  { %4911 = vst [vmem:[#allocation30_spill] sm:$0xff] %v3727_v62 }
 0x1e3   :  { %v1648_v30 = vpop.permute.xlu0 %1647  ;;  %v3729_v17 = vpop.permute.xlu1 %373 }
 0x1e4   :  { %1655 = vst.msk [vmem:[#allocation3 + $0x10] sm:$0xff] %vm58_vm0, %v1648_v30 }
 0x1e8   :  { %v3732_v61 = vpop.permute.xlu1 %966 }
 0x1eb   :  { %v3734_v8 = vld [vmem:[#allocation3 + $0x10] sm:$0xff] }
 0x1ec   :  { %v1962_v54 = vmul.f32 %v3734_v8, %v3190_v31  ;;  %v2078_v25 = vmul.f32 %v3734_v8, %v3198_v34  ;;  %v2002_v18 = vmul.f32 %v3734_v8, %v3224_v47 }
 0x1ed   :  { %v3738_v4 = vpop.permute.xlu1 %1219 }
 0x1ee   :  { %1970 = vrot.lane.b32.xlu0 %v1962_v54, %s3001_s2 }
 0x1f2   :  { %2086 = vrot.lane.b32.xlu0 %v2078_v25, %s3001_s2  ;;  %v3744_v19 = vpop.permute.xlu1 %1355  ;;  %v4915_v25 = vld [vmem:[#allocation8_spill] sm:$0xff] }
 0x1f3   :  { %4912 = vst [vmem:[#allocation31_spill] sm:$0xff] %v3744_v19 }
 0x1f7   :  { %v3746_v20 = vpop.permute.xlu1 %1263 }
 0x1f8   :  { %4913 = vst [vmem:[#allocation32_spill] sm:$0xff] %v3746_v20 }
 0x1fb   :  { %v3748_v59 = vpop.permute.xlu1 %1267 }
 0x200   :  { %v3750_v9 = vpop.permute.xlu1 %1407 }
 0x201   :  { %4914 = vst [vmem:[#allocation33_spill] sm:$0xff] %v3750_v9 }
 0x204   :  { %v1646_v56 = vpop.permute.xlu1 %1645 }
 0x205   :  { %v3753_v15 = vsel %vm58_vm0, %v1646_v56, %v1648_v30  ;;  %1653 = vst.msk [vmem:[#allocation3] sm:$0xff] %vm91_vm4, %v1646_v56  ;;  %v1982_v56 = vmul.f32 %v3734_v8, %v4915_v25 }
 0x206   :  { %1654 = vst [vmem:[#allocation3 + $0x8] sm:$0xff] %v3753_v15  ;;  %v1961_v23 = vmul.f32 %v3753_v15, %v3190_v31  ;;  %v2077_v38 = vmul.f32 %v3753_v15, %v3198_v34  ;;  %v2001_v57 = vmul.f32 %v3753_v15, %v3224_v47 }
 0x208   :  { %v1633_v3 = vpop.permute.xlu1 %1632  ;;  %1968 = vrot.lane.b32.xlu1 %v1961_v23, %s3001_s2  ;;  %v4916_v23 = vld [vmem:[#allocation9_spill] sm:$0xff] }
 0x209   :  { %v1634_v16 = vrot.slane %v1633_v3, 4 }
 0x20b   :  { %v1635_v22 = vsel %vm58_vm0, %v1634_v16, %v1633_v3  ;;  %1639 = vst.msk [vmem:[#allocation2 + $0x8] sm:$0xf] %vm54_vm2, %v1634_v16  ;;  %v2098_v3 = vmul.f32 %v3734_v8, %v4916_v23 }
 0x20c   :  { %v3764_v52 = vld [vmem:[#allocation3] sm:$0xff]  ;;  %1638 = vst.msk [vmem:[#allocation2] sm:$0xff] %vm3216_vm7, %v1635_v22  ;;  %2084 = vrot.lane.b32.xlu1 %v2077_v38, %s3001_s2  ;;  %v4917_v22 = vld [vmem:[#allocation10_spill] sm:$0xff] }
 0x20d   :  { %v2076_v36 = vmul.f32 %v3764_v52, %v3198_v34  ;;  %v1960_v29 = vmul.f32 %v3764_v52, %v3190_v31  ;;  %v2118_v34 = vmul.f32 %v3734_v8, %v3208_v39  ;;  %v2117_v31 = vmul.f32 %v3753_v15, %v3208_v39 }
 0x20e   :  { %v2116_v44 = vmul.f32 %v3764_v52, %v3208_v39  ;;  %v2000_v6 = vmul.f32 %v3764_v52, %v3224_v47  ;;  %v2096_v16 = vmul.f32 %v3764_v52, %v4916_v23  ;;  %v1980_v38 = vmul.f32 %v3764_v52, %v4915_v25 }
 0x20f   :  { %2082 = vrot.lane.b32.xlu0 %v2076_v36, %s3001_s2  ;;  %v2022_v36 = vmul.f32 %v3734_v8, %v4917_v22 }
 0x210   :  { %1966 = vrot.lane.b32.xlu1 %v1960_v29, %s3001_s2  ;;  %v2021_v29 = vmul.f32 %v3753_v15, %v4917_v22 }
 0x212   :  { %v3789_v45 = vld [vmem:[#allocation2 + $0x8] sm:$0xf] }
 0x213   :  { %2010 = vrot.lane.b32.xlu0 %v2002_v18, %s3002_s23  ;;  %v3794_v46 = vld [vmem:[#allocation2] sm:$0xff]  ;;  %v1691_v7 = vmul.f32 %v3789_v45, %v3292_v32  ;;  %v1737_v39 = vmul.f32 %v3789_v45, %v3280_v24  ;;  %v1707_v30 = vmul.f32 %v3789_v45, %v3285_v26  ;;  %v1753_v54 = vmul.f32 %v3789_v45, %v3303_v40 }
 0x214   :  { %2008 = vrot.lane.b32.xlu1 %v2001_v57, %s3002_s23  ;;  %v1690_v50 = vmul.f32 %v3794_v46, %v3292_v32  ;;  %v1736_v47 = vmul.f32 %v3794_v46, %v3280_v24  ;;  %v1706_v32 = vmul.f32 %v3794_v46, %v3285_v26  ;;  %v1752_v24 = vmul.f32 %v3794_v46, %v3303_v40  ;;  %v4918_v18 = vld [vmem:[#allocation11_spill] sm:$0xff] }
 0x215   :  { %v1981_v26 = vmul.f32 %v3753_v15, %v4915_v25  ;;  %v2097_v40 = vmul.f32 %v3753_v15, %v4916_v23  ;;  %v2138_v57 = vmul.f32 %v3734_v8, %v4918_v18 }
 0x217   :  { %2126 = vrot.lane.b32.xlu0 %v2118_v34, %s3002_s23  ;;  %v2137_v34 = vmul.f32 %v3753_v15, %v4918_v18 }
 0x218   :  { %2124 = vrot.lane.b32.xlu1 %v2117_v31, %s3002_s23  ;;  %v2020_v31 = vmul.f32 %v3764_v52, %v4917_v22 }
 0x21b   :  { %2122 = vrot.lane.b32.xlu0 %v2116_v44, %s3002_s23 }
 0x21c   :  { %2006 = vrot.lane.b32.xlu1 %v2000_v6, %s3002_s23 }
 0x21f   :  { %1696 = vrot.lane.b32.xlu0 %v1691_v7, %s3001_s2 }
 0x220   :  { %1694 = vrot.lane.b32.xlu1 %v1690_v50, %s3001_s2 }
 0x223   :  { %1742 = vrot.lane.b32.xlu0 %v1737_v39, %s3001_s2 }
 0x224   :  { %1740 = vrot.lane.b32.xlu1 %v1736_v47, %s3001_s2 }
 0x227   :  { %1712 = vrot.lane.b32.xlu0 %v1707_v30, %s3002_s23 }
 0x228   :  { %1710 = vrot.lane.b32.xlu1 %v1706_v32, %s3002_s23 }
 0x22b   :  { %1758 = vrot.lane.b32.xlu0 %v1753_v54, %s3002_s23 }
 0x22c   :  { %1756 = vrot.lane.b32.xlu1 %v1752_v24, %s3002_s23 }
 0x22f   :  { %1990 = vrot.lane.b32.xlu0 %v1982_v56, %s3001_s2 }
 0x230   :  { %1988 = vrot.lane.b32.xlu1 %v1981_v26, %s3001_s2 }
 0x233   :  { %2106 = vrot.lane.b32.xlu0 %v2098_v3, %s3001_s2 }
 0x234   :  { %2104 = vrot.lane.b32.xlu1 %v2097_v40, %s3001_s2 }
 0x237   :  { %2102 = vrot.lane.b32.xlu0 %v2096_v16, %s3001_s2 }
 0x238   :  { %1986 = vrot.lane.b32.xlu1 %v1980_v38, %s3001_s2  ;;  %v3857_v38 = vpop.permute.xlu1 %1113 }
 0x239   :  { %4919 = vst [vmem:[#allocation8_spill] sm:$0xff] %v3857_v38 }
 0x23b   :  { %2030 = vrot.lane.b32.xlu0 %v2022_v36, %s3002_s23 }
 0x23c   :  { %2028 = vrot.lane.b32.xlu1 %v2021_v29, %s3002_s23 }
 0x23f   :  { %2146 = vrot.lane.b32.xlu0 %v2138_v57, %s3002_s23 }
 0x240   :  { %2144 = vrot.lane.b32.xlu1 %v2137_v34, %s3002_s23 }
 0x244   :  { %2026 = vrot.lane.b32.xlu1 %v2020_v31, %s3002_s23 }
 0x28e   :  { %v956_v44 = vpop.f32.mrb[0].mxu1 }
 0x28f   :  { %v957_v6 = vadd.f32 %v956_v44, %v3722_v0  ;;  %v958_v7 = vpop.f32.mrb[1].mxu1 }
 0x290   :  { %v959_v50 = vadd.f32 %v958_v7, %v3722_v0  ;;  %v3861_v7 = vpop.permute.xlu1 %1153 }
 0x291   :  { %v961_v39 = vmax.f32 %v957_v6, 0.0  ;;  %4920 = vst [vmem:[#allocation9_spill] sm:$0xff] %v3861_v7 }
 0x292   :  { %v962_v47 = vmax.f32 %v959_v50, 0.0 }
 0x293   :  { %v1044_v30 = vsub.f32 0.0, %v961_v39 }
 0x294   :  { %v1045_v32 = vsub.f32 0.0, %v962_v47 }
 0x295   :  { %v1046_v54 = vmul.f32 1.442695, %v1044_v30 }
 0x296   :  { %v1048_v24 = vmul.f32 1.442695, %v1045_v32  ;;  %v2136_v32 = vmul.f32 %v3764_v52, %v4918_v18 }
 0x297   :  { %2959 = vpow2.f32 %v1046_v54 }
 0x298   :  { %2961 = vpow2.f32 %v1048_v24  ;;  %v4922_v24 = vmov 9  }
 0x2a1   :  { %v2960_v25 = vpop.eup %2959 }
 0x2a2   :  { %v2962_v56 = vpop.eup %2961  ;;  %v1050_v26 = vadd.f32 1.0, %v2960_v25 }
 0x2a3   :  { %v1051_v23 = vadd.f32 1.0, %v2962_v56 }
 0x2a4   :  { %2963 = vrcp.f32 %v1050_v26  ;;  %v451_v3 = vpop.f32.mrb[0].mxu0 }
 0x2a5   :  { %2965 = vrcp.f32 %v1051_v23  ;;  %v453_v40 = vpop.f32.mrb[1].mxu0  ;;  %v452_v16 = vadd.f32 %v451_v3, %v3729_v17 }
 0x2a6   :  { %v454_v0 = vadd.f32 %v453_v40, %v3729_v17  ;;  %v3866_v17 = vpop.permute.xlu1 %1201 }
 0x2a7   :  { %v456_v22 = vmax.f32 %v452_v16, 0.0 }
 0x2a8   :  { %v457_v29 = vmax.f32 %v454_v0, 0.0 }
 0x2aa   :  { %v3873_v54 = vpop.permute.xlu1 %1205 }
 0x2ab   :  { %4921 = vst [vmem:[#allocation10_spill] sm:$0xff] %v3873_v54 }
 0x2ae   :  { %v2964_v36 = vpop.eup %2963  ;;  %v1037_v57 = vpop.f32.mrb[2].mxu0 }
 0x2af   :  { %v2966_v34 = vpop.eup %2965  ;;  %v1056_v31 = vmul.f32 %v2964_v36, %v456_v22  ;;  %v1038_v44 = vadd.f32 %v1037_v57, %v3732_v61  ;;  %v1039_v6 = vpop.f32.mrb[3].mxu0 }
 0x2b0   :  { %v1057_v50 = vmul.f32 %v2966_v34, %v457_v29  ;;  %v1040_v39 = vadd.f32 %v1039_v6, %v3732_v61  ;;  %v3876_v61 = vpop.permute.xlu0 %1109  ;;  %v3880_v25 = vpop.permute.xlu1 %1345 }
 0x2b1   :  { %v1042_v47 = vmax.f32 %v1038_v44, 0.0 }
 0x2b2   :  { %v1043_v30 = vmax.f32 %v1040_v39, 0.0 }
 0x2b3   :  { %1073 = vrot.lane.b32.xlu0 %v1042_v47, %s2990_s29 }
 0x2b4   :  { %1075 = vrot.lane.b32.xlu1 %v1043_v30, %s2990_s29  ;;  %v3882_v56 = vpop.permute.xlu0 %1157  ;;  %v3885_v26 = vpop.permute.xlu1 %1968 }
 0x2b5   :  { %4923 = vst [vmem:[#allocation11_spill] sm:$0xff] %v3882_v56 }
 0x2b7   :  { %1060 = vrot.lane.b32.xlu0 %v1056_v31, %s2990_s29 }
 0x2b8   :  { %1062 = vrot.lane.b32.xlu1 %v1057_v50, %s2990_s29  ;;  %v3887_v18 = vpop.permute.xlu0 %1341  ;;  %v3889_v23 = vpop.permute.xlu1 %2084 }
 0x2bb   :  { %2142 = vrot.lane.b32.xlu0 %v2136_v32, %s3002_s23 }
 0x2bc   :  { %1090 = vperm.xlu1 %2949, %v3539_v33   ;;  %v3891_v3 = vpop.permute.xlu0 %1970  ;;  %v3893_v40 = vpop.permute.xlu1 %1966 }
 0x2bf   :  { %1095 = vperm.xlu0 %2950, %v3557_v41  }
 0x2c0   :  { %2952 = vset.pattern.permute.xlu1 %v4922_v24  ;;  %v3895_v16 = vpop.permute.xlu0 %2086  ;;  %v3899_v22 = vpop.permute.xlu1 %2008 }
 0x2c3   :  { %2951 = vset.pattern.permute.xlu0 %v4922_v24 }
 0x2c4   :  { %v3897_v0 = vpop.permute.xlu0 %2082  ;;  %v3903_v29 = vpop.permute.xlu1 %2124 }
 0x2c8   :  { %v3901_v36 = vpop.permute.xlu0 %2010  ;;  %v3907_v34 = vpop.permute.xlu1 %2006 }
 0x2cc   :  { %v3905_v57 = vpop.permute.xlu0 %2126  ;;  %v3911_v44 = vpop.permute.xlu1 %1694 }
 0x2d0   :  { %v3909_v31 = vpop.permute.xlu0 %2122  ;;  %v3915_v50 = vpop.permute.xlu1 %1740 }
 0x2d4   :  { %v3913_v6 = vpop.permute.xlu0 %1696  ;;  %v3919_v47 = vpop.permute.xlu1 %1710 }
 0x2d8   :  { %v3917_v39 = vpop.permute.xlu0 %1742  ;;  %v3923_v32 = vpop.permute.xlu1 %1756 }
 0x2dc   :  { %v3921_v30 = vpop.permute.xlu0 %1712  ;;  %v3927_v2 = vpop.permute.xlu1 %1988 }
 0x2dd   :  { %4924 = vst [vmem:[#allocation34_spill] sm:$0xff] %v3927_v2 }
 0x2e0   :  { %v3925_v24 = vpop.permute.xlu0 %1758  ;;  %v3931_v53 = vpop.permute.xlu1 %2104 }
 0x2e1   :  { %4926 = vst [vmem:[#allocation36_spill] sm:$0xff] %v3931_v53 }
 0x2e4   :  { %v3929_v1 = vpop.permute.xlu0 %1990  ;;  %v3935_v63 = vpop.permute.xlu1 %1986 }
 0x2e5   :  { %4925 = vst [vmem:[#allocation35_spill] sm:$0xff] %v3929_v1  ;;  %4928 = vst [vmem:[#allocation38_spill] sm:$0xff] %v3935_v63 }
 0x2e8   :  { %v3933_v14 = vpop.permute.xlu0 %2106  ;;  %v3939_v28 = vpop.permute.xlu1 %2028 }
 0x2e9   :  { %4927 = vst [vmem:[#allocation37_spill] sm:$0xff] %v3933_v14  ;;  %4930 = vst [vmem:[#allocation40_spill] sm:$0xff] %v3939_v28 }
 0x2ec   :  { %v3937_v51 = vpop.permute.xlu0 %2102  ;;  %v3943_v13 = vpop.permute.xlu1 %2144 }
 0x2ed   :  { %4929 = vst [vmem:[#allocation39_spill] sm:$0xff] %v3937_v51  ;;  %4932 = vst [vmem:[#allocation42_spill] sm:$0xff] %v3943_v13 }
 0x2f0   :  { %v3941_v12 = vpop.permute.xlu0 %2030  ;;  %v3947_v55 = vpop.permute.xlu1 %2026 }
 0x2f1   :  { %4931 = vst [vmem:[#allocation41_spill] sm:$0xff] %v3941_v12  ;;  %4934 = vst [vmem:[#allocation44_spill] sm:$0xff] %v3947_v55 }
 0x2f4   :  { %v3945_v48 = vpop.permute.xlu0 %2146 }
 0x2f5   :  { %4933 = vst [vmem:[#allocation43_spill] sm:$0xff] %v3945_v48 }
 0x325   :  { %v1074_v2 = vpop.permute.xlu0 %1073 }
 0x326   :  { %1081 = vst.msk [vmem:[#allocation4 + $0x18] sm:$0xff] %vm91_vm4, %v1074_v2  ;;  %v1076_v1 = vpop.permute.xlu1 %1075 }
 0x327   :  { %1083 = vst.msk [vmem:[#allocation4 + $0x28] sm:$0xff] %vm58_vm0, %v1076_v1  ;;  %v3968_v14 = vsel %vm58_vm0, %v1074_v2, %v1076_v1 }
 0x328   :  { %v1366_v1 = vmul.f32 %v3720_v27, %v3968_v14  ;;  %v1414_v2 = vmul.f32 %v3750_v9, %v3968_v14 }
 0x329   :  { %v1061_v53 = vpop.permute.xlu0 %1060 }
 0x32a   :  { %1068 = vst.msk [vmem:[#allocation4] sm:$0xff] %vm91_vm4, %v1061_v53  ;;  %v1063_v63 = vpop.permute.xlu1 %1062 }
 0x32b   :  { %1070 = vst.msk [vmem:[#allocation4 + $0x10] sm:$0xff] %vm58_vm0, %v1063_v63 }
 0x32d   :  { %v3953_v28 = vld [vmem:[#allocation4 + $0x18] sm:$0xff] }
 0x32e   :  { %v1225_v12 = vmul.f32 %v3738_v4, %v3953_v28  ;;  %v1119_v55 = vmul.f32 %v3857_v38, %v3953_v28  ;;  %v3959_v51 = vld [vmem:[#allocation4 + $0x28] sm:$0xff]  ;;  %v1365_v13 = vmul.f32 %v3720_v27, %v3953_v28  ;;  %v1273_v42 = vmul.f32 %v3748_v59, %v3953_v28 }
 0x32f   :  { %v1121_v48 = vmul.f32 %v3857_v38, %v3959_v51 }
 0x330   :  { %1240 = vrot.lane.b32.xlu0 %v1225_v12, %s3001_s2  ;;  %1134 = vrot.lane.b32.xlu1 %v1119_v55, %s3001_s2  ;;  %v1226_v12 = vmul.f32 %v3738_v4, %v3968_v14  ;;  %v1413_v55 = vmul.f32 %v3750_v9, %v3953_v28 }
 0x334   :  { %1380 = vrot.lane.b32.xlu0 %v1365_v13, %s3001_s2  ;;  %1138 = vrot.lane.b32.xlu1 %v1121_v48, %s3001_s2  ;;  %v1227_v13 = vmul.f32 %v3738_v4, %v3959_v51  ;;  %v1274_v48 = vmul.f32 %v3748_v59, %v3968_v14 }
 0x338   :  { %1288 = vrot.lane.b32.xlu0 %v1273_v42, %s3002_s23  ;;  %1242 = vrot.lane.b32.xlu1 %v1226_v12, %s3001_s2  ;;  %v1367_v42 = vmul.f32 %v3720_v27, %v3959_v51  ;;  %v3994_v12 = vld [vmem:[#allocation4] sm:$0xff] }
 0x33c   :  { %1428 = vrot.lane.b32.xlu0 %v1413_v55, %s3002_s23  ;;  %1382 = vrot.lane.b32.xlu1 %v1366_v1, %s3001_s2  ;;  %v1275_v55 = vmul.f32 %v3748_v59, %v3959_v51  ;;  %v1222_v1 = vmul.f32 %v3714_v21, %v3994_v12 }
 0x340   :  { %1244 = vrot.lane.b32.xlu0 %v1227_v13, %s3001_s2  ;;  %1290 = vrot.lane.b32.xlu1 %v1274_v48, %s3002_s23  ;;  %v1415_v13 = vmul.f32 %v3750_v9, %v3959_v51  ;;  %v1362_v48 = vmul.f32 %v3744_v19, %v3994_v12  ;;  %v4020_v9 = vld [vmem:[#allocation4 + $0x10] sm:$0xff] }
 0x344   :  { %1384 = vrot.lane.b32.xlu0 %v1367_v42, %s3001_s2  ;;  %1430 = vrot.lane.b32.xlu1 %v1414_v2, %s3002_s23  ;;  %v1270_v42 = vmul.f32 %v3746_v20, %v3994_v12  ;;  %v1120_v2 = vmul.f32 %v3857_v38, %v3968_v14 }
 0x348   :  { %1292 = vrot.lane.b32.xlu0 %v1275_v55, %s3002_s23  ;;  %1234 = vrot.lane.b32.xlu1 %v1222_v1, %s3001_s2  ;;  %v1410_v55 = vmul.f32 %v3727_v62, %v3994_v12  ;;  %v1164_v1 = vmul.f32 %v3882_v56, %v3968_v14 }
 0x34c   :  { %1432 = vrot.lane.b32.xlu0 %v1415_v13, %s3002_s23  ;;  %1374 = vrot.lane.b32.xlu1 %v1362_v48, %s3001_s2  ;;  %v1116_v13 = vmul.f32 %v3876_v61, %v3994_v12  ;;  %v1118_v48 = vmul.f32 %v3876_v61, %v4020_v9 }
 0x350   :  { %1282 = vrot.lane.b32.xlu1 %v1270_v42, %s3002_s23  ;;  %1136 = vrot.lane.b32.xlu0 %v1120_v2, %s3001_s2  ;;  %v1224_v42 = vmul.f32 %v3714_v21, %v4020_v9  ;;  %v1162_v2 = vmul.f32 %v3861_v7, %v4020_v9 }
 0x354   :  { %1422 = vrot.lane.b32.xlu1 %v1410_v55, %s3002_s23  ;;  %1180 = vrot.lane.b32.xlu0 %v1164_v1, %s3002_s23  ;;  %v4035_v55 = vsel %vm58_vm0, %v1061_v53, %v1063_v63  ;;  %v1364_v1 = vmul.f32 %v3744_v19, %v4020_v9  ;;  %v1412_v53 = vmul.f32 %v3727_v62, %v4020_v9 }
 0x355   :  { %v1363_v63 = vmul.f32 %v3744_v19, %v4035_v55 }
 0x358   :  { %1128 = vrot.lane.b32.xlu0 %v1116_v13, %s3001_s2  ;;  %1132 = vrot.lane.b32.xlu1 %v1118_v48, %s3001_s2  ;;  %v1223_v13 = vmul.f32 %v3714_v21, %v4035_v55  ;;  %v1272_v48 = vmul.f32 %v3746_v20, %v4020_v9 }
 0x35c   :  { %1238 = vrot.lane.b32.xlu0 %v1224_v42, %s3001_s2  ;;  %1176 = vrot.lane.b32.xlu1 %v1162_v2, %s3002_s23  ;;  %v1271_v42 = vmul.f32 %v3746_v20, %v4035_v55  ;;  %v1160_v2 = vmul.f32 %v3861_v7, %v3994_v12 }
 0x360   :  { %1378 = vrot.lane.b32.xlu0 %v1364_v1, %s3001_s2  ;;  %1236 = vrot.lane.b32.xlu1 %v1223_v13, %s3001_s2  ;;  %v1411_v1 = vmul.f32 %v3727_v62, %v4035_v55  ;;  %v1165_v13 = vmul.f32 %v3882_v56, %v3959_v51  ;;  %v2088_v62 = vsel %vm134_vm8, %v3897_v0, %v3889_v23 }
 0x364   :  { %1286 = vrot.lane.b32.xlu0 %v1272_v48, %s3002_s23  ;;  %1376 = vrot.lane.b32.xlu1 %v1363_v63, %s3001_s2  ;;  %v4935_v48 = vld [vmem:[#allocation12_spill] sm:$0xff] }
 0x365   :  { %v1880_v63 = vmul.f32 %v3734_v8, %v4935_v48 }
 0x368   :  { %1426 = vrot.lane.b32.xlu0 %v1412_v53, %s3002_s23  ;;  %1284 = vrot.lane.b32.xlu1 %v1271_v42, %s3002_s23  ;;  %v1163_v53 = vmul.f32 %v3882_v56, %v3953_v28  ;;  %v4936_v42 = vld [vmem:[#allocation14_spill] sm:$0xff]  ;;  %v4938_v56 = vld [vmem:[#allocation15_spill] sm:$0xff] }
 0x369   :  { %v2070_v19 = vmul.f32 %v3764_v52, %v4938_v56 }
 0x36c   :  { %1172 = vrot.lane.b32.xlu0 %v1160_v2, %s3002_s23  ;;  %1424 = vrot.lane.b32.xlu1 %v1411_v1, %s3002_s23  ;;  %v1915_v2 = vmul.f32 %v3753_v15, %v4936_v42  ;;  %v4937_v1 = vld [vmem:[#allocation13_spill] sm:$0xff] }
 0x370   :  { %1487 = vperm.xlu0 %2951, %v3539_v33   ;;  %1182 = vrot.lane.b32.xlu1 %v1165_v13, %s3002_s23  ;;  %v2089_v33 = vsel %vm134_vm8, %v3889_v23, %v3895_v16  ;;  %v1956_v13 = vmul.f32 %v3734_v8, %v4937_v1  ;;  %v1955_v23 = vmul.f32 %v3753_v15, %v4937_v1 }
 0x374   :  { %1888 = vrot.lane.b32.xlu0 %v1880_v63, %s3001_s2  ;;  %1178 = vrot.lane.b32.xlu1 %v1163_v53, %s3002_s23  ;;  %v2071_v63 = vmul.f32 %v3753_v15, %v4938_v56  ;;  %v1914_v53 = vmul.f32 %v3764_v52, %v4936_v42 }
 0x375   :  { %2954 = vset.pattern.permute.xlu0 %v4893_v10  ;;  %v1879_v10 = vmul.f32 %v3753_v15, %v4935_v48 }
 0x376   :  { %v2094_v38 = vadd.f32 %v2089_v33, %v2071_v63  ;;  %v2128_v33 = vsel %vm160_vm9, %v3909_v31, %v3903_v29 }
 0x378   :  { %1922 = vrot.lane.b32.xlu0 %v1915_v2, %s3002_s23  ;;  %1491 = vperm.xlu1 %2952, %v3557_v41   ;;  %v2129_v41 = vsel %vm160_vm9, %v3903_v29, %v3905_v57  ;;  %v1979_v2 = vadd.f32 %v3891_v3, %v1956_v13  ;;  %v1878_v13 = vmul.f32 %v3764_v52, %v4935_v48 }
 0x379   :  { %v2134_v21 = vadd.f32 %v2129_v41, %v2094_v38  ;;  %v1916_v48 = vmul.f32 %v3734_v8, %v4936_v42 }
 0x37a   :  { %v2019_v20 = vadd.f32 %v3901_v36, %v1979_v2 }
 0x37b   :  { %v2157_v0 = vmul.f32 %v2134_v21, %v3476_v5  ;;  %v1954_v21 = vmul.f32 %v3764_v52, %v4937_v1 }
 0x37c   :  { %1920 = vrot.lane.b32.xlu0 %v1914_v53, %s3002_s23  ;;  %1886 = vrot.lane.b32.xlu1 %v1879_v10, %s3001_s2  ;;  %v2093_v10 = vadd.f32 %v2088_v62, %v2070_v19  ;;  %v2013_v62 = vsel %vm160_vm9, %v3899_v22, %v3901_v36  ;;  %v2012_v36 = vsel %vm160_vm9, %v3907_v34, %v3899_v22  ;;  %v4146_v22 = vpop.permute.xlu0 %2142 }
 0x37d   :  { %2953 = vset.pattern.permute.xlu1 %v4895_v11  ;;  %v1973_v11 = vsel %vm134_vm8, %v3885_v26, %v3891_v3  ;;  %v2072_v3 = vmul.f32 %v3734_v8, %v4938_v56 }
 0x37e   :  { %v2133_v38 = vadd.f32 %v2128_v33, %v2093_v10  ;;  %v1978_v19 = vadd.f32 %v1973_v11, %v1955_v23 }
 0x37f   :  { %v2095_v42 = vadd.f32 %v3895_v16, %v2072_v3  ;;  %v1117_v16 = vmul.f32 %v3876_v61, %v4035_v55  ;;  %v1212_v3 = vmul.f32 %v3873_v54, %v3968_v14 }
 0x380   :  { %2047 = vrot.lane.b32.xlu0 %v2019_v20, %s3005_s24  ;;  %1884 = vrot.lane.b32.xlu1 %v1878_v13, %s3001_s2  ;;  %v1972_v20 = vsel %vm134_vm8, %v3893_v40, %v3885_v26  ;;  %v2018_v29 = vadd.f32 %v2013_v62, %v1978_v19  ;;  %v2156_v31 = vmul.f32 %v2133_v38, %v3349_v58  ;;  %v4150_v34 = vpop.permute.xlu0 %1095 }
 0x381   :  { %v1977_v63 = vadd.f32 %v1972_v20, %v1954_v21  ;;  %v2135_v26 = vadd.f32 %v3905_v57, %v2095_v42  ;;  %v1161_v40 = vmul.f32 %v3861_v7, %v4035_v55  ;;  %v4148_v57 = vpop.permute.xlu1 %1090  ;;  %v1213_v19 = vmul.f32 %v3873_v54, %v3959_v51 }
 0x383   :  { %v2017_v56 = vadd.f32 %v2012_v36, %v1977_v63  ;;  %v2158_v1 = vmul.f32 %v2135_v26, %v3351_v60  ;;  %v1353_v26 = vmul.f32 %v3880_v25, %v3959_v51 }
 0x384   :  { %2164 = vrot.lane.b32.xlu0 %v2157_v0, %s3006_s25  ;;  %1924 = vrot.lane.b32.xlu1 %v1916_v48, %s3002_s23 }
 0x388   :  { %2162 = vrot.lane.b32.xlu0 %v2156_v31, %s3006_s25  ;;  %2045 = vrot.lane.b32.xlu1 %v2018_v29, %s3005_s24  ;;  %v1211_v29 = vmul.f32 %v3873_v54, %v3953_v28 }
 0x38c   :  { %2043 = vrot.lane.b32.xlu1 %v2017_v56, %s3005_s24  ;;  %1174 = vrot.lane.b32.xlu0 %v1161_v40, %s3002_s23 }
 0x390   :  { %2166 = vrot.lane.b32.xlu1 %v2158_v1, %s3006_s25 }
 0x394   :  { %1130 = vrot.lane.b32.xlu1 %v1117_v16, %s3001_s2 }
 0x3a2   :  { %v1241_v53 = vpop.permute.xlu0 %1240  ;;  %v4152_v41 = vpop.permute.xlu1 %1134 }
 0x3a6   :  { %v1381_v2 = vpop.permute.xlu0 %1380  ;;  %v4154_v13 = vpop.permute.xlu1 %1138 }
 0x3aa   :  { %v1289_v33 = vpop.permute.xlu0 %1288  ;;  %v1243_v10 = vpop.permute.xlu1 %1242 }
 0x3ab   :  { %v1248_v31 = vsel %vm134_vm8, %v1241_v53, %v1243_v10 }
 0x3ac   :  { %v1259_v54 = vadd.f32 %v1248_v31, %v1211_v29 }
 0x3ae   :  { %v1429_v11 = vpop.permute.xlu0 %1428  ;;  %v1383_v23 = vpop.permute.xlu1 %1382 }
 0x3af   :  { %v1388_v53 = vsel %vm134_vm8, %v1381_v2, %v1383_v23 }
 0x3b2   :  { %v1245_v38 = vpop.permute.xlu0 %1244  ;;  %v1291_v0 = vpop.permute.xlu1 %1290 }
 0x3b3   :  { %v1249_v20 = vsel %vm134_vm8, %v1243_v10, %v1245_v38  ;;  %v1261_v21 = vadd.f32 %v1245_v38, %v1213_v19  ;;  %v1296_v16 = vsel %vm160_vm9, %v1289_v33, %v1291_v0  ;;  %v1352_v38 = vmul.f32 %v3880_v25, %v3968_v14 }
 0x3b4   :  { %v1260_v36 = vadd.f32 %v1249_v20, %v1212_v3  ;;  %v1351_v3 = vmul.f32 %v3880_v25, %v3953_v28 }
 0x3b6   :  { %v1385_v48 = vpop.permute.xlu0 %1384  ;;  %v1431_v62 = vpop.permute.xlu1 %1430 }
 0x3b7   :  { %v1389_v56 = vsel %vm134_vm8, %v1383_v23, %v1385_v48  ;;  %v1401_v7 = vadd.f32 %v1385_v48, %v1353_v26  ;;  %v1399_v48 = vadd.f32 %v1388_v53, %v1351_v3  ;;  %v1350_v3 = vmul.f32 %v3887_v18, %v4020_v9 }
 0x3b8   :  { %v1400_v10 = vadd.f32 %v1389_v56, %v1352_v38 }
 0x3ba   :  { %v1293_v42 = vpop.permute.xlu0 %1292  ;;  %v1235_v63 = vpop.permute.xlu1 %1234 }
 0x3bb   :  { %v1297_v40 = vsel %vm160_vm9, %v1291_v0, %v1293_v42  ;;  %v1309_v1 = vadd.f32 %v1293_v42, %v1261_v21  ;;  %v1307_v21 = vadd.f32 %v1296_v16, %v1259_v54 }
 0x3bc   :  { %v1308_v19 = vadd.f32 %v1297_v40, %v1260_v36  ;;  %v1436_v36 = vsel %vm160_vm9, %v1429_v11, %v1431_v62 }
 0x3bd   :  { %1326 = vrot.lane.b32.xlu0 %v1309_v1, %s3005_s24  ;;  %v1447_v42 = vadd.f32 %v1436_v36, %v1399_v48 }
 0x3be   :  { %v1433_v20 = vpop.permute.xlu0 %1432  ;;  %1324 = vrot.lane.b32.xlu1 %v1308_v19, %s3005_s24  ;;  %v1375_v51 = vpop.permute.xlu1 %1374  ;;  %v1210_v19 = vmul.f32 %v3866_v17, %v4020_v9  ;;  %v1208_v9 = vmul.f32 %v3866_v17, %v3994_v12 }
 0x3bf   :  { %v1437_v33 = vsel %vm160_vm9, %v1431_v62, %v1433_v20  ;;  %v1449_v0 = vadd.f32 %v1433_v20, %v1401_v7  ;;  %v1453_v11 = vmul.f32 %v1447_v42, %v3349_v58 }
 0x3c0   :  { %v1448_v29 = vadd.f32 %v1437_v33, %v1400_v10 }
 0x3c1   :  { %1322 = vrot.lane.b32.xlu0 %v1307_v21, %s3005_s24  ;;  %v1455_v26 = vmul.f32 %v1449_v0, %v3351_v60  ;;  %v1209_v0 = vmul.f32 %v3866_v17, %v4035_v55 }
 0x3c2   :  { %v1454_v2 = vmul.f32 %v1448_v29, %v3476_v5  ;;  %v4180_v23 = vpop.permute.xlu0 %1136  ;;  %v1283_v31 = vpop.permute.xlu1 %1282 }
 0x3c4   :  { %1470 = vrot.lane.b32.xlu1 %v1454_v2, %s3006_s25 }
 0x3c5   :  { %1472 = vrot.lane.b32.xlu0 %v1455_v26, %s3006_s25 }
 0x3c6   :  { %v4185_v54 = vpop.permute.xlu0 %1180  ;;  %v1423_v7 = vpop.permute.xlu1 %1422 }
 0x3c9   :  { %1468 = vrot.lane.b32.xlu0 %v1453_v11, %s3006_s25 }
 0x3ca   :  { %v4189_v62 = vpop.permute.xlu0 %1128  ;;  %v4191_v56 = vpop.permute.xlu1 %1132 }
 0x3ce   :  { %v1239_v40 = vpop.permute.xlu0 %1238  ;;  %v4193_v1 = vpop.permute.xlu1 %1176 }
 0x3cf   :  { %v1258_v53 = vadd.f32 %v1239_v40, %v1210_v19 }
 0x3d2   :  { %v1379_v16 = vpop.permute.xlu0 %1378  ;;  %v1237_v38 = vpop.permute.xlu1 %1236 }
 0x3d3   :  { %v1247_v21 = vsel %vm134_vm8, %v1237_v38, %v1239_v40  ;;  %v1398_v36 = vadd.f32 %v1379_v16, %v1350_v3  ;;  %v1246_v42 = vsel %vm134_vm8, %v1235_v63, %v1237_v38  ;;  %v1349_v40 = vmul.f32 %v3887_v18, %v4035_v55 }
 0x3d4   :  { %v1257_v29 = vadd.f32 %v1247_v21, %v1209_v0 }
 0x3d6   :  { %v1287_v10 = vpop.permute.xlu0 %1286  ;;  %v1377_v20 = vpop.permute.xlu1 %1376 }
 0x3d7   :  { %v1306_v33 = vadd.f32 %v1287_v10, %v1258_v53  ;;  %v1387_v26 = vsel %vm134_vm8, %v1377_v20, %v1379_v16  ;;  %v1386_v16 = vsel %vm134_vm8, %v1375_v51, %v1377_v20 }
 0x3d8   :  { %v1397_v0 = vadd.f32 %v1387_v26, %v1349_v40  ;;  %v4940_v26 = vld [vmem:[#allocation17_spill] sm:$0xff] }
 0x3d9   :  { %1320 = vrot.lane.b32.xlu0 %v1306_v33, %s3005_s24  ;;  %v1256_v33 = vadd.f32 %v1246_v42, %v1208_v9  ;;  %v1735_v42 = vmul.f32 %v3789_v45, %v3461_v49  ;;  %v1699_v9 = vrot.slane %v3913_v6, 4 }
 0x3da   :  { %v1427_v48 = vpop.permute.xlu0 %1426  ;;  %v1285_v2 = vpop.permute.xlu1 %1284 }
 0x3db   :  { %v1446_v11 = vadd.f32 %v1427_v48, %v1398_v36  ;;  %v1295_v19 = vsel %vm160_vm9, %v1285_v2, %v1287_v10  ;;  %v1294_v21 = vsel %vm160_vm9, %v1283_v31, %v1285_v2  ;;  %v1348_v10 = vmul.f32 %v3887_v18, %v3994_v12 }
 0x3dc   :  { %v1305_v53 = vadd.f32 %v1295_v19, %v1257_v29  ;;  %v1304_v36 = vadd.f32 %v1294_v21, %v1256_v33  ;;  %v4939_v19 = vld [vmem:[#allocation16_spill] sm:$0xff]  ;;  %v1698_v21 = vrot.slane %v3911_v44, 4  ;;  %v1744_v33 = vrot.slane %v3915_v50, 4 }
 0x3dd   :  { %v1452_v3 = vmul.f32 %v1446_v11, %v3351_v60  ;;  %v1660_v31 = vmul.f32 %v3789_v45, %v4939_v19  ;;  %v1396_v2 = vadd.f32 %v1386_v16, %v1348_v10  ;;  %v1715_v16 = vrot.slane %v3921_v30, 4 }
 0x3de   :  { %1318 = vrot.lane.b32.xlu1 %v1305_v53, %s3005_s24  ;;  %v1425_v63 = vpop.permute.xlu1 %1424  ;;  %v1751_v53 = vadd.f32 %v3917_v39, %v1735_v42  ;;  %v1760_v10 = vrot.slane %v3923_v32, 4 }
 0x3df   :  { %v1435_v38 = vsel %vm160_vm9, %v1425_v63, %v1427_v48  ;;  %1466 = vrot.lane.b32.xlu0 %v1452_v3, %s3006_s25  ;;  %v1434_v11 = vsel %vm160_vm9, %v1423_v7, %v1425_v63  ;;  %v1689_v48 = vmul.f32 %v3789_v45, %v3449_v37  ;;  %v1674_v7 = vmul.f32 %v3789_v45, %v4940_v26 }
 0x3e0   :  { %v1445_v29 = vadd.f32 %v1435_v38, %v1397_v0  ;;  %v1444_v51 = vadd.f32 %v1434_v11, %v1396_v2  ;;  %v1745_v3 = vrot.slane %v3917_v39, 4  ;;  %v1767_v63 = vadd.f32 %v3925_v24, %v1751_v53  ;;  %v4945_v53 = vld [vmem:[#allocation19_spill] sm:$0xff] }
 0x3e1   :  { %v1705_v40 = vadd.f32 %v3913_v6, %v1689_v48  ;;  %v1761_v6 = vrot.slane %v3925_v24, 4  ;;  %v1714_v38 = vrot.slane %v3919_v47, 4  ;;  %v1700_v39 = vsel %vm132_vm10, %v1698_v21, %v1699_v9  ;;  %v4944_v9 = vld [vmem:[#allocation36_spill] sm:$0xff] }
 0x3e2   :  { %1316 = vrot.lane.b32.xlu1 %v1304_v36, %s3005_s24  ;;  %v1451_v20 = vmul.f32 %v1445_v29, %v3476_v5  ;;  %v1450_v0 = vmul.f32 %v1444_v51, %v3349_v58  ;;  %v1746_v36 = vsel %vm132_vm10, %v1744_v33, %v1745_v3  ;;  %v1659_v29 = vmul.f32 %v3794_v46, %v4939_v19  ;;  %v4946_v21 = vld [vmem:[#allocation20_spill] sm:$0xff] }
 0x3e3   :  { %1665 = vrot.lane.b32.xlu0 %v1660_v31, %s3001_s2  ;;  %v1721_v45 = vadd.f32 %v3921_v30, %v1705_v40  ;;  %v1769_v11 = vmul.f32 %v1767_v63, %v3486_v43  ;;  %v1716_v30 = vsel %vm132_vm10, %v1714_v38, %v1715_v16  ;;  %v1762_v24 = vsel %vm132_vm10, %v1760_v10, %v1761_v6  ;;  %v4948_v63 = vld [vmem:[#allocation42_spill] sm:$0xff]  ;;  %v4949_v6 = vld [vmem:[#allocation35_spill] sm:$0xff] }
 0x3e4   :  { %v1701_v31 = vsel %vm134_vm8, %v3911_v44, %v1700_v39  ;;  %v1747_v2 = vsel %vm134_vm8, %v3915_v50, %v1746_v36  ;;  %v1688_v51 = vmul.f32 %v3794_v46, %v3449_v37  ;;  %v1734_v43 = vmul.f32 %v3794_v46, %v3461_v49  ;;  %v4950_v39 = vld [vmem:[#allocation39_spill] sm:$0xff] }
 0x3e5   :  { %v1673_v19 = vmul.f32 %v3794_v46, %v4940_v26  ;;  %v1763_v44 = vsel %vm160_vm9, %v3923_v32, %v1762_v24  ;;  %v1898_v50 = vmul.f32 %v3734_v8, %v3376_v35  ;;  %v4943_v26 = vld [vmem:[#allocation37_spill] sm:$0xff]  ;;  %v1959_v3 = vmul.f32 %v3734_v8, %v4945_v53 }
 0x3e6   :  { %1464 = vrot.lane.b32.xlu1 %v1451_v20, %s3006_s25  ;;  %v1717_v20 = vsel %vm160_vm9, %v3919_v47, %v1716_v30  ;;  %v1704_v48 = vadd.f32 %v1701_v31, %v1688_v51  ;;  %v1750_v42 = vadd.f32 %v1747_v2, %v1734_v43  ;;  %v4942_v47 = vld [vmem:[#allocation21_spill] sm:$0xff]  ;;  %v2109_v40 = vsel %vm134_vm8, %v4944_v9, %v4943_v26 }
 0x3e7   :  { %1679 = vrot.lane.b32.xlu0 %v1674_v7, %s3002_s23  ;;  %v4941_v7 = vld [vmem:[#allocation18_spill] sm:$0xff]  ;;  %v2074_v33 = vmul.f32 %v3753_v15, %v4946_v21  ;;  %v1999_v38 = vadd.f32 %v4949_v6, %v1959_v3  ;;  %v2108_v36 = vsel %vm134_vm8, %v4950_v39, %v4944_v9  ;;  %v2073_v24 = vmul.f32 %v3764_v52, %v4946_v21 }
 0x3e8   :  { %v1720_v37 = vadd.f32 %v1717_v20, %v1704_v48  ;;  %v1766_v49 = vadd.f32 %v1763_v44, %v1750_v42  ;;  %v1933_v46 = vmul.f32 %v3753_v15, %v4941_v7  ;;  %v2148_v2 = vsel %vm160_vm9, %v4146_v22, %v4948_v63  ;;  %v4952_v44 = vld [vmem:[#allocation34_spill] sm:$0xff]  ;;  %v4953_v42 = vld [vmem:[#allocation40_spill] sm:$0xff] }
 0x3e9   :  { %v2114_v10 = vadd.f32 %v2109_v40, %v2074_v33  ;;  %v2113_v51 = vadd.f32 %v2108_v36, %v2073_v24  ;;  %v1896_v43 = vmul.f32 %v3764_v52, %v3376_v35  ;;  %v1958_v22 = vmul.f32 %v3753_v15, %v4945_v53  ;;  %v4955_v40 = vld [vmem:[#allocation44_spill] sm:$0xff]  ;;  %v4354_v39 = vld [vmem:[%s4776_s6] sm:$0xff] }
 0x3ea   :  { %1462 = vrot.lane.b32.xlu1 %v1450_v0, %s3006_s25  ;;  %v1768_v32 = vmul.f32 %v1766_v49, %v4942_v47  ;;  %v1932_v0 = vmul.f32 %v3764_v52, %v4941_v7  ;;  %v1934_v48 = vmul.f32 %v3734_v8, %v4941_v7  ;;  %v4323_v49 = vpop.permute.xlu0 %1172  ;;  %v4954_v47 = vld [vmem:[#allocation38_spill] sm:$0xff]  ;;  %v1957_v7 = vmul.f32 %v3764_v52, %v4945_v53 }
 0x3eb   :  { %1726 = vrot.lane.b32.xlu0 %v1721_v45, %s3005_s24  ;;  %v4947_v45 = vld [vmem:[#allocation43_spill] sm:$0xff]  ;;  %v2153_v20 = vadd.f32 %v2148_v2, %v2113_v51  ;;  %v2032_v3 = vsel %vm160_vm9, %v4955_v40, %v4953_v42 }
 0x3ec   :  { %v2149_v16 = vsel %vm160_vm9, %v4948_v63, %v4947_v45 }
 0x3ed   :  { %v2154_v31 = vadd.f32 %v2149_v16, %v2114_v10  ;;  %v4344_v16 = vld [vmem:[%s4777_s4] sm:$0xff] }
 0x3ee   :  { %1663 = vrot.lane.b32.xlu1 %v1659_v29, %s3001_s2  ;;  %v1897_v29 = vmul.f32 %v3753_v15, %v3376_v35  ;;  %v2075_v15 = vmul.f32 %v3734_v8, %v4946_v21 }
 0x3ef   :  { %1774 = vrot.lane.b32.xlu0 %v1769_v11, %s3006_s25  ;;  %v4951_v11 = vld [vmem:[#allocation41_spill] sm:$0xff]  ;;  %v4337_v33 = vpop.permute.xlu0 %1487 }
 0x3f0   :  { %v2039_v30 = vadd.f32 %v4951_v11, %v1999_v38  ;;  %v2033_v35 = vsel %vm160_vm9, %v4953_v42, %v4951_v11  ;;  %v1183_v38 = vpop.permute.xlu1 %1182 }
 0x3f2   :  { %1677 = vrot.lane.b32.xlu1 %v1673_v19, %s3002_s23  ;;  %v2175_v19 = vmul.f32 %v2154_v31, %v3476_v5 }
 0x3f3   :  { %1906 = vrot.lane.b32.xlu0 %v1898_v50, %s3001_s2  ;;  %v1993_v50 = vsel %vm134_vm8, %v4952_v44, %v4949_v6  ;;  %v1889_v21 = vpop.permute.xlu0 %1888 }
 0x3f4   :  { %v1179_v10 = vpop.permute.xlu1 %1178 }
 0x3f6   :  { %1724 = vrot.lane.b32.xlu1 %v1720_v37, %s3005_s24  ;;  %v2174_v37 = vmul.f32 %v2153_v20, %v3349_v58 }
 0x3f7   :  { %1940 = vrot.lane.b32.xlu0 %v1933_v46, %s3002_s23  ;;  %v1998_v46 = vadd.f32 %v1993_v50, %v1958_v22 }
 0x3f8   :  { %v4357_v36 = vpop.permute.xlu1 %1491 }
 0x3f9   :  { %v2038_v9 = vadd.f32 %v2033_v35, %v1998_v46 }
 0x3fa   :  { %1772 = vrot.lane.b32.xlu1 %v1768_v32, %s3006_s25  ;;  %v1992_v32 = vsel %vm134_vm8, %v4954_v47, %v4952_v44  ;;  %v1101_v47 = vmul.f32 %v4150_v34, %v3968_v14 }
 0x3fb   :  { %1938 = vrot.lane.b32.xlu0 %v1932_v0, %s3002_s23  ;;  %v2115_v0 = vadd.f32 %v4943_v26, %v2075_v15  ;;  %v1997_v63 = vadd.f32 %v1992_v32, %v1957_v7  ;;  %v1923_v26 = vpop.permute.xlu0 %1922  ;;  %v1187_v32 = vsel %vm160_vm9, %v4185_v54, %v1183_v38  ;;  %v4395_v38 = vld [vmem:[#allocation3 + $0x8] sm:$0xff] }
 0x3fc   :  { %v1887_v11 = vpop.permute.xlu1 %1886 }
 0x3fd   :  { %v2155_v8 = vadd.f32 %v4947_v45, %v2115_v0  ;;  %v2037_v53 = vadd.f32 %v2032_v3, %v1997_v63  ;;  %v4362_v45 = vld [vmem:[%s4778_s8] sm:$0xff]  ;;  %v1142_v3 = vsel %vm134_vm8, %v4152_v41, %v4180_v23 }
 0x3fe   :  { %1904 = vrot.lane.b32.xlu1 %v1897_v29, %s3001_s2 }
 0x3ff   :  { %2062 = vrot.lane.b32.xlu0 %v2039_v30, %s3005_s24  ;;  %v2176_v6 = vmul.f32 %v2155_v8, %v3351_v60  ;;  %v1921_v29 = vpop.permute.xlu0 %1920  ;;  %v1100_v8 = vmul.f32 %v3953_v28, %v4150_v34  ;;  %v1098_v28 = vmul.f32 %v3994_v12, %v4148_v57 }
 0x400   :  { %v1885_v24 = vpop.permute.xlu1 %1884 }
 0x401   :  { %v1890_v14 = vsel %vm134_vm8, %v1885_v24, %v1887_v11 }
 0x402   :  { %1902 = vrot.lane.b32.xlu1 %v1896_v43, %s3001_s2 }
 0x403   :  { %2182 = vrot.lane.b32.xlu0 %v2175_v19, %s3006_s25  ;;  %v4365_v30 = vpop.permute.xlu0 %2047 }
 0x404   :  { %v1925_v2 = vpop.permute.xlu1 %1924 }
 0x406   :  { %1942 = vrot.lane.b32.xlu1 %v1934_v48, %s3002_s23 }
 0x407   :  { %2180 = vrot.lane.b32.xlu0 %v2174_v37, %s3006_s25  ;;  %v4367_v31 = vpop.permute.xlu0 %2164  ;;  %v1143_v37 = vsel %vm134_vm8, %v4180_v23, %v4154_v13  ;;  %v4956_v13 = vld [vmem:[#allocation22_spill] sm:$0xff]  ;;  %v1150_v23 = vadd.f32 %v1142_v3, %v1100_v8 }
 0x408   :  { %v4371_v43 = vpop.permute.xlu1 %2045  ;;  %v1151_v7 = vadd.f32 %v1143_v37, %v1101_v47  ;;  %v1873_v0 = vmul.f32 %v3764_v52, %v4956_v13  ;;  %v1874_v41 = vmul.f32 %v4395_v38, %v4956_v13  ;;  %v1927_v37 = vsel %vm160_vm9, %v1923_v26, %v1925_v2 }
 0x40a   :  { %2060 = vrot.lane.b32.xlu1 %v2038_v9, %s3005_s24  ;;  %v1099_v9 = vmul.f32 %v4148_v57, %v4035_v55  ;;  %v1186_v55 = vsel %vm160_vm9, %v1179_v10, %v4185_v54  ;;  %v1894_v24 = vadd.f32 %v1890_v14, %v1873_v0 }
 0x40b   :  { %1787 = vperm.xlu0 %2954, %v4344_v16   ;;  %v4369_v51 = vpop.permute.xlu0 %2162 }
 0x40c   :  { %v2044_v44 = vpop.permute.xlu1 %2043 }
 0x40e   :  { %2058 = vrot.lane.b32.xlu1 %v2037_v53, %s3005_s24  ;;  %v1195_v53 = vadd.f32 %v1187_v32, %v1151_v7  ;;  %v1194_v32 = vadd.f32 %v1186_v55, %v1150_v23 }
 0x40f   :  { %v1175_v19 = vpop.permute.xlu0 %1174 }
 0x410   :  { %v2167_v22 = vpop.permute.xlu1 %2166  ;;  %v1185_v54 = vsel %vm160_vm9, %v1175_v19, %v4193_v1  ;;  %v1184_v14 = vsel %vm160_vm9, %v4323_v49, %v1175_v19 }
 0x412   :  { %2184 = vrot.lane.b32.xlu1 %v2176_v6, %s3006_s25 }
 0x414   :  { %v1131_v42 = vpop.permute.xlu1 %1130 }
 0x415   :  { %v1141_v15 = vsel %vm134_vm8, %v1131_v42, %v4191_v56  ;;  %v1891_v56 = vsel %vm134_vm8, %v1887_v11, %v1889_v21  ;;  %v1140_v52 = vsel %vm134_vm8, %v4189_v62, %v1131_v42  ;;  %v1926_v42 = vsel %vm160_vm9, %v1921_v29, %v1923_v26 }
 0x416   :  { %2203 = vperm.xlu1 %2953, %v4354_v39   ;;  %v1149_v6 = vadd.f32 %v1141_v15, %v1099_v9  ;;  %v1895_v11 = vadd.f32 %v1891_v56, %v1874_v41  ;;  %v1148_v15 = vadd.f32 %v1140_v52, %v1098_v28  ;;  %v4957_v9 = vld [vmem:[#allocation7_spill] sm:$0xff]  ;;  %v1930_v13 = vadd.f32 %v1926_v42, %v1894_v24 }
 0x417   :  { %v1199_v62 = vmul.f32 %v1195_v53, %v4957_v9  ;;  %v2050_v41 = vsel %vm254_vm12, %v4371_v43, %v4365_v30  ;;  %v2169_v52 = vsel %vm353_vm13, %v4367_v31, %v2167_v22  ;;  %v2168_v42 = vsel %vm353_vm13, %v4369_v51, %v4367_v31 }
 0x418   :  { %v1193_v7 = vadd.f32 %v1185_v54, %v1149_v6  ;;  %v1931_v3 = vadd.f32 %v1927_v37, %v1895_v11  ;;  %v1192_v56 = vadd.f32 %v1184_v14, %v1148_v15  ;;  %v4958_v6 = vld [vmem:[#allocation6_spill] sm:$0xff] }
 0x419   :  { %v1198_v55 = vmul.f32 %v1194_v32, %v4958_v6  ;;  %v1950_v49 = vmul.f32 %v1930_v13, %v4958_v6 }
 0x41a   :  { %2284 = vperm.xlu1 %2953, %v4362_v45   ;;  %v1197_v26 = vmul.f32 %v1193_v7, %v4957_v9  ;;  %v1951_v29 = vmul.f32 %v1931_v3, %v4957_v9  ;;  %v1196_v30 = vmul.f32 %v1192_v56, %v4958_v6 }
 0x41c   :  { %v2054_v11 = vadd.f32 %v2050_v41, %v1951_v29 }
 0x42f   :  { %v1327_v20 = vpop.permute.xlu0 %1326 }
 0x430   :  { %v1325_v35 = vpop.permute.xlu1 %1324 }
 0x431   :  { %v1331_v10 = vsel %vm254_vm12, %v1325_v35, %v1327_v20 }
 0x432   :  { %v1339_v12 = vadd.f32 %v1331_v10, %v1199_v62 }
 0x433   :  { %v1323_v50 = vpop.permute.xlu0 %1322 }
 0x434   :  { %v1330_v1 = vsel %vm254_vm12, %v1323_v50, %v1325_v35 }
 0x435   :  { %v1338_v19 = vadd.f32 %v1330_v1, %v1198_v55 }
 0x436   :  { %v1471_v40 = vpop.permute.xlu1 %1470 }
 0x437   :  { %v1473_v48 = vpop.permute.xlu0 %1472 }
 0x438   :  { %v1477_v2 = vsel %vm353_vm13, %v1471_v40, %v1473_v48 }
 0x439   :  { %v1485_v53 = vadd.f32 %v1477_v2, %v1339_v12 }
 0x43b   :  { %v1469_v46 = vpop.permute.xlu0 %1468 }
 0x43c   :  { %v1476_v48 = vsel %vm353_vm13, %v1469_v46, %v1471_v40  ;;  %v1497_v40 = vadd.f32 %v4357_v36, %v1485_v53 }
 0x43d   :  { %v1484_v37 = vadd.f32 %v1476_v48, %v1338_v19  ;;  %v4960_v19 = vld [vmem:[#allocation25_spill] sm:$0xff] }
 0x44b   :  { %v1321_v63 = vpop.permute.xlu0 %1320 }
 0x450   :  { %v1319_v21 = vpop.permute.xlu1 %1318 }
 0x451   :  { %v1467_v47 = vpop.permute.xlu0 %1466  ;;  %v1329_v20 = vsel %vm254_vm12, %v1319_v21, %v1321_v63  ;;  %v2049_v63 = vsel %vm254_vm12, %v2044_v44, %v4371_v43  ;;  %v2173_v44 = vadd.f32 %v2169_v52, %v2054_v11  ;;  %v4445_v52 = vld [vmem:[%s4779_s10] sm:$0xf] }
 0x452   :  { %v1337_v50 = vadd.f32 %v1329_v20, %v1197_v26  ;;  %v2053_v54 = vadd.f32 %v2049_v63, %v1950_v49  ;;  %v4959_v20 = vld [vmem:[#allocation24_spill] sm:$0xff]  ;;  %v2987_v49 = vld [vmem:[#allocation2] sm:$0xff] }
 0x453   :  { %v2193_v56 = vadd.f32 %v2173_v44, %v4959_v20 }
 0x454   :  { %v1317_v0 = vpop.permute.xlu1 %1316  ;;  %v2172_v3 = vadd.f32 %v2168_v42, %v2053_v54 }
 0x455   :  { %v1666_v8 = vpop.permute.xlu0 %1665  ;;  %v1328_v23 = vsel %vm254_vm12, %v1317_v0, %v1319_v21  ;;  %v1501_v21 = vmax.f32 %v1497_v40, 0.0  ;;  %v2195_v63 = vmax.f32 %v2193_v56, 0.0 }
 0x456   :  { %v1336_v10 = vadd.f32 %v1328_v23, %v1196_v30  ;;  %v1668_v0 = vrot.slane %v1666_v8, 4  ;;  %v2192_v29 = vadd.f32 %v2172_v3, %v4959_v20 }
 0x458   :  { %v1465_v35 = vpop.permute.xlu1 %1464  ;;  %v2194_v40 = vmax.f32 %v2192_v29, 0.0 }
 0x459   :  { %v1475_v24 = vsel %vm353_vm13, %v1465_v35, %v1467_v47  ;;  %v1680_v46 = vpop.permute.xlu0 %1679  ;;  %v1496_v47 = vadd.f32 %v4357_v36, %v1484_v37 }
 0x45a   :  { %v1483_v28 = vadd.f32 %v1475_v24, %v1337_v50  ;;  %v1682_v41 = vrot.slane %v1680_v46, 4  ;;  %v1657_v50 = vmul.f32 %v2987_v49, %v4960_v19 }
 0x45b   :  { %v1500_v55 = vmax.f32 %v1496_v47, 0.0 }
 0x45c   :  { %v1495_v32 = vadd.f32 %v4337_v33, %v1483_v28  ;;  %v1463_v43 = vpop.permute.xlu1 %1462 }
 0x45d   :  { %v1474_v22 = vsel %vm353_vm13, %v1463_v43, %v1465_v35  ;;  %v1727_v15 = vpop.permute.xlu0 %1726 }
 0x45e   :  { %v1499_v7 = vmax.f32 %v1495_v32, 0.0  ;;  %v1482_v62 = vadd.f32 %v1474_v22, %v1336_v10  ;;  %v1729_v30 = vrot.slane %v1727_v15, 4  ;;  %v4961_v10 = vmov 0.0   ;;  %v4962_v32 = vld [vmem:[#allocation26_spill] sm:$0xff] }
 0x460   :  { %v1494_v2 = vadd.f32 %v4337_v33, %v1482_v62  ;;  %v1664_v13 = vpop.permute.xlu1 %1663  ;;  %v2881_v12 = vpack.c.bf16 %v1501_v21, %v1499_v7 }
 0x461   :  { %v1667_v14 = vrot.slane %v1664_v13, 4  ;;  %v1775_v1 = vpop.permute.xlu0 %1774 }
 0x462   :  { %v1498_v53 = vmax.f32 %v1494_v2, 0.0  ;;  %2882 = vmatprep.subr.bf16.mxu1 %v2881_v12  ;;  %v1777_v47 = vrot.slane %v1775_v1, 4  ;;  %v4963_v12 = vld [vmem:[#allocation28_spill] sm:$0xff] }
 0x463   :  { %v1669_v26 = vsel %vm132_vm10, %v1667_v14, %v1668_v0 }
 0x464   :  { %v2883_v48 = vpack.c.bf16 %v1500_v55, %v1498_v53  ;;  %v1670_v31 = vsel %vm134_vm8, %v1664_v13, %v1669_v26  ;;  %v1678_v51 = vpop.permute.xlu1 %1677  ;;  %v2988_v55 = vld [vmem:[#allocation3] sm:$0xff]  ;;  %v4964_v53 = vld [vmem:[#allocation23_spill] sm:$0xff] }
 0x465   :  { %v1681_v8 = vrot.slane %v1678_v51, 4  ;;  %v1907_v35 = vpop.permute.xlu0 %1906  ;;  %v1672_v23 = vadd.f32 %v1670_v31, %v1657_v50 }
 0x466   :  { %2884 = vmatpush1.bf16.msra.mxu1 %v2883_v48  ;;  %v1876_v48 = vmul.f32 %v4395_v38, %v4964_v53 }
 0x467   :  { %v1683_v24 = vsel %vm132_vm10, %v1681_v8, %v1682_v41  ;;  %2208 = vmatprep.subr.mxu1 %v2195_v63 }
 0x468   :  { %v1684_v46 = vsel %vm160_vm9, %v1678_v51, %v1683_v24  ;;  %v1725_v37 = vpop.permute.xlu1 %1724 }
 0x469   :  { %v1686_v28 = vadd.f32 %v1684_v46, %v1672_v23  ;;  %v1728_v11 = vrot.slane %v1725_v37, 4  ;;  %v1941_v54 = vpop.permute.xlu0 %1940  ;;  %2870 = vmatmul.mubr.msk.f32.vlgmr.msra.gmra.mrb[2].mxu1 %vm1508_vm1, %v4445_v52 }
 0x46a   :  { %2209 = vmatpush1.msra.mxu1 %v2194_v40  ;;  %2272 = vmatprep.mubr.f32.mxu1 %v4961_v10 }
 0x46b   :  { %v1687_v43 = vmul.f32 %v1686_v28, %v4962_v32  ;;  %v1730_v44 = vsel %vm132_vm10, %v1728_v11, %v1729_v30 }
 0x46c   :  { %v1731_v22 = vsel %vm254_vm12, %v1725_v37, %v1730_v44  ;;  %v1773_v21 = vpop.permute.xlu1 %1772 }
 0x46d   :  { %v1776_v7 = vrot.slane %v1773_v21, 4  ;;  %2877 = vmatmul.mubr.msk.f32.vlgmr.msra.gmra.mrb[4].mxu1 %vm887_vm14, %v4354_v39  ;;  %v1939_v15 = vpop.permute.xlu0 %1938  ;;  %v1733_v62 = vadd.f32 %v1731_v22, %v1687_v43  ;;  %v1875_v39 = vmul.f32 %v2988_v55, %v4964_v53 }
 0x46e   :  { %2806 = vmatprep.mubr.f32.mxu1 %v4961_v10  ;;  %v1944_v50 = vsel %vm160_vm9, %v1939_v15, %v1941_v54 }
 0x46f   :  { %v1778_v42 = vsel %vm132_vm10, %v1776_v7, %v1777_v47 }
 0x470   :  { %v1779_v3 = vsel %vm353_vm13, %v1773_v21, %v1778_v42  ;;  %v1905_v2 = vpop.permute.xlu1 %1904 }
 0x471   :  { %v1781_v13 = vadd.f32 %v1779_v3, %v1733_v62  ;;  %v2063_v14 = vpop.permute.xlu0 %2062  ;;  %v1909_v29 = vsel %vm134_vm8, %v1905_v2, %v1907_v35 }
 0x472   :  { %v1913_v49 = vadd.f32 %v1909_v29, %v1876_v48 }
 0x473   :  { %v1782_v0 = vadd.f32 %v1781_v13, %v4963_v12 }
 0x474   :  { %v1903_v20 = vpop.permute.xlu1 %1902 }
 0x475   :  { %v1783_v56 = vmax.f32 %v1782_v0, 0.0  ;;  %v1908_v1 = vsel %vm134_vm8, %v1903_v20, %v1905_v2  ;;  %v2183_v19 = vpop.permute.xlu0 %2182 }
 0x476   :  { %v1912_v31 = vadd.f32 %v1908_v1, %v1875_v39 }
 0x477   :  { %v1791_v26 = vcombine.high %v1783_v56, %v1783_v56 }
 0x478   :  { %v1943_v51 = vpop.permute.xlu1 %1942  ;;  %v1948_v8 = vadd.f32 %v1944_v50, %v1912_v31 }
 0x479   :  { %v1945_v41 = vsel %vm160_vm9, %v1941_v54, %v1943_v51  ;;  %2874 = vmatprep.subr.msk.mxu0 %vm132_vm10, %v1791_v26  ;;  %v2181_v38 = vpop.permute.xlu0 %2180 }
 0x47a   :  { %2875 = vmatpush1.msk.msra.mxu0 %vm132_vm10, %v1783_v56  ;;  %v1949_v35 = vadd.f32 %v1945_v41, %v1913_v49  ;;  %v1952_v24 = vmul.f32 %v1948_v8, %v4958_v6  ;;  %v2186_v28 = vsel %vm353_vm13, %v2181_v38, %v2183_v19 }
 0x47b   :  { %2876 = vmatmul.mubr.msk.f32.vlgmr.msra.gmra.mrb[4].mxu0 %vm378_vm15, %v4344_v16 }
 0x47c   :  { %v2061_v63 = vpop.permute.xlu1 %2060  ;;  %2353 = vmatprep.mubr.f32.mxu0 %v4961_v10  ;;  %v1953_v23 = vmul.f32 %v1949_v35, %v4957_v9  ;;  %v4965_v10 = vld [vmem:[#allocation27_spill] sm:$0xff] }
 0x47d   :  { %v2065_v46 = vsel %vm254_vm12, %v2061_v63, %v2063_v14 }
 0x47e   :  { %v2069_v11 = vadd.f32 %v2065_v46, %v1953_v23 }
 0x480   :  { %v2059_v40 = vpop.permute.xlu1 %2058 }
 0x481   :  { %v2064_v37 = vsel %vm254_vm12, %v2059_v40, %v2061_v63 }
 0x482   :  { %v2068_v30 = vadd.f32 %v2064_v37, %v1952_v24 }
 0x484   :  { %v2190_v16 = vadd.f32 %v2186_v28, %v2068_v30  ;;  %v2185_v54 = vpop.permute.xlu1 %2184 }
 0x485   :  { %v2187_v32 = vsel %vm353_vm13, %v2183_v19, %v2185_v54 }
 0x486   :  { %v2191_v43 = vadd.f32 %v2187_v32, %v2069_v11  ;;  %v2196_v44 = vadd.f32 %v2190_v16, %v4965_v10 }
 0x488   :  { %v2197_v22 = vadd.f32 %v2191_v43, %v4965_v10  ;;  %v2198_v47 = vmax.f32 %v2196_v44, 0.0 }
 0x48a   :  { %v2199_v21 = vmax.f32 %v2197_v22, 0.0  ;;  %v1788_v48 = vpop.permute.xlu0 %1787 }
 0x48c   :  { %2289 = vmatprep.subr.mxu0 %v2199_v21 }
 0x48d   :  { %2290 = vmatpush1.msra.mxu0 %v2198_v47 }
 0x48e   :  { %2878 = vmatmul.mubr.msk.f32.vlgmr.msra.gmra.mrb[6].mxu0 %vm887_vm14, %v4362_v45 }
 0x495   :  { %v2204_v62 = vpop.permute.xlu1 %2203 }
 0x499   :  { %v2285_v8 = vpop.permute.xlu1 %2284 }
 0x53c   :  { %v4483_v7 = vpop.f32.mrb[2].mxu1 }
 0x53d   :  { %v4485_v15 = vpop.f32.mrb[3].mxu1 }
 0x540   :  { %v2274_v42 = vpop.f32.mrb[4].mxu1 }
 0x541   :  { %v2275_v3 = vadd.f32 %v2274_v42, %v2204_v62  ;;  %v2276_v2 = vpop.f32.mrb[5].mxu1  ;;  %v4966_v42 = vld [vmem:[#allocation33_spill] sm:$0xff] }
 0x542   :  { %v2277_v13 = vadd.f32 %v2276_v2, %v2204_v62 }
 0x543   :  { %v2279_v12 = vmax.f32 %v2275_v3, 0.0 }
 0x544   :  { %v2280_v0 = vmax.f32 %v2277_v13, 0.0 }
 0x545   :  { %v2362_v14 = vsub.f32 0.0, %v2279_v12  ;;  %v4967_v12 = vld [vmem:[#allocation29_spill] sm:$0xff] }
 0x546   :  { %v2363_v20 = vsub.f32 0.0, %v2280_v0 }
 0x547   :  { %v2364_v56 = vmul.f32 1.442695, %v2362_v14 }
 0x548   :  { %v2366_v1 = vmul.f32 1.442695, %v2363_v20  ;;  %v4968_v20 = vld [vmem:[#allocation31_spill] sm:$0xff] }
 0x549   :  { %2967 = vpow2.f32 %v2364_v56 }
 0x54a   :  { %2969 = vpow2.f32 %v2366_v1  ;;  %v4969_v1 = vld [vmem:[#allocation32_spill] sm:$0xff] }
 0x54e   :  { %v1864_v55 = vpop.f32.mrb[4].mxu0 }
 0x54f   :  { %v1866_v53 = vpop.f32.mrb[5].mxu0  ;;  %v1865_v31 = vadd.f32 %v1864_v55, %v1788_v48 }
 0x550   :  { %v1867_v51 = vadd.f32 %v1866_v53, %v1788_v48 }
 0x551   :  { %v1869_v41 = vmax.f32 %v1865_v31, 0.0  ;;  %v4970_v31 = vld [vmem:[#allocation30_spill] sm:$0xff] }
 0x552   :  { %v1870_v49 = vmax.f32 %v1867_v51, 0.0 }
 0x553   :  { %v2968_v45 = vpop.eup %2967 }
 0x554   :  { %v2970_v39 = vpop.eup %2969  ;;  %v2368_v26 = vadd.f32 1.0, %v2968_v45 }
 0x555   :  { %v2369_v29 = vadd.f32 1.0, %v2970_v39 }
 0x556   :  { %2971 = vrcp.f32 %v2368_v26 }
 0x557   :  { %2973 = vrcp.f32 %v2369_v29 }
 0x560   :  { %v2972_v19 = vpop.eup %2971 }
 0x561   :  { %v2974_v50 = vpop.eup %2973  ;;  %v2374_v35 = vmul.f32 %v2972_v19, %v1869_v41  ;;  %v2355_v63 = vpop.f32.mrb[6].mxu0 }
 0x562   :  { %v2375_v38 = vmul.f32 %v2974_v50, %v1870_v49  ;;  %v2356_v23 = vadd.f32 %v2355_v63, %v2285_v8  ;;  %v2357_v24 = vpop.f32.mrb[7].mxu0  ;;  %v4971_v50 = vld [vmem:[#allocation8_spill] sm:$0xff] }
 0x563   :  { %v2358_v40 = vadd.f32 %v2357_v24, %v2285_v8  ;;  %2378 = vrot.lane.b32.xlu1 %v2374_v35, %s2990_s29  ;;  %v3007_v35 = vmov 16   ;;  %v4972_v24 = vld [vmem:[#allocation11_spill] sm:$0xff] }
 0x564   :  { %v2360_v46 = vmax.f32 %v2356_v23, 0.0  ;;  %2380 = vrot.lane.b32.xlu0 %v2375_v38, %s2990_s29  ;;  %2955 = vset.pattern.permute.xlu1 %v3007_v35 }
 0x565   :  { %v2361_v37 = vmax.f32 %v2358_v40, 0.0  ;;  %2956 = vset.pattern.permute.xlu0 %v3007_v35 }
 0x567   :  { %2391 = vrot.lane.b32.xlu1 %v2360_v46, %s2990_s29 }
 0x568   :  { %2393 = vrot.lane.b32.xlu0 %v2361_v37, %s2990_s29  ;;  %v4973_v37 = vld [vmem:[#allocation9_spill] sm:$0xff] }
 0x5d5   :  { %v2379_v30 = vpop.permute.xlu1 %2378 }
 0x5d6   :  { %2386 = vst.msk [vmem:[#allocation4] sm:$0xff] %vm91_vm4, %v2379_v30  ;;  %v2381_v28 = vpop.permute.xlu0 %2380 }
 0x5d7   :  { %v4493_v11 = vsel %vm58_vm0, %v2379_v30, %v2381_v28  ;;  %2388 = vst.msk [vmem:[#allocation4 + $0x10] sm:$0xff] %vm58_vm0, %v2381_v28 }
 0x5d8   :  { %v2495_v53 = vmul.f32 %v4493_v11, %v4967_v12  ;;  %v2611_v26 = vmul.f32 %v4493_v11, %v4968_v20  ;;  %v2535_v48 = vmul.f32 %v4493_v11, %v4969_v1  ;;  %v2651_v51 = vmul.f32 %v4493_v11, %v4970_v31 }
 0x5d9   :  { %v2392_v16 = vpop.permute.xlu1 %2391 }
 0x5da   :  { %2399 = vst.msk [vmem:[#allocation4 + $0x18] sm:$0xff] %vm91_vm4, %v2392_v16  ;;  %v2394_v54 = vpop.permute.xlu0 %2393 }
 0x5db   :  { %v4498_v32 = vsel %vm58_vm0, %v2392_v16, %v2394_v54  ;;  %2401 = vst.msk [vmem:[#allocation4 + $0x28] sm:$0xff] %vm58_vm0, %v2394_v54  ;;  %vm1591_vm0 = vcmask 27648  }
 0x5dc   :  { %v2498_v43 = vmul.f32 %v4498_v32, %v3738_v4  ;;  %v2614_v10 = vmul.f32 %v4498_v32, %v3720_v27  ;;  %v2538_v21 = vmul.f32 %v4498_v32, %v3748_v59  ;;  %v2654_v3 = vmul.f32 %v4498_v32, %v4966_v42 }
 0x5dd   :  { %v4522_v2 = vld [vmem:[#allocation4] sm:$0xff]  ;;  %v2416_v8 = vmul.f32 %v4498_v32, %v4971_v50  ;;  %v2452_v40 = vmul.f32 %v4498_v32, %v4972_v24 }
 0x5de   :  { %2514 = vrot.lane.b32.xlu1 %v2498_v43, %s3001_s2  ;;  %v2494_v0 = vmul.f32 %v4522_v2, %v4967_v12  ;;  %v2610_v56 = vmul.f32 %v4522_v2, %v4968_v20  ;;  %v2534_v55 = vmul.f32 %v4522_v2, %v4969_v1  ;;  %v4551_v39 = vld [vmem:[#allocation4 + $0x10] sm:$0xff]  ;;  %v2650_v49 = vmul.f32 %v4522_v2, %v4970_v31 }
 0x5df   :  { %v2496_v29 = vmul.f32 %v4551_v39, %v4967_v12  ;;  %v2536_v41 = vmul.f32 %v4551_v39, %v4969_v1  ;;  %v2652_v19 = vmul.f32 %v4551_v39, %v4970_v31  ;;  %v2412_v38 = vmul.f32 %v4522_v2, %v3876_v61 }
 0x5e0   :  { %v2414_v23 = vmul.f32 %v4551_v39, %v3876_v61  ;;  %v2448_v30 = vmul.f32 %v4522_v2, %v4973_v37  ;;  %v2450_v16 = vmul.f32 %v4551_v39, %v4973_v37 }
 0x5e1   :  { %v4517_v62 = vld [vmem:[#allocation4 + $0x18] sm:$0xff] }
 0x5e2   :  { %v4506_v44 = vld [vmem:[#allocation4 + $0x28] sm:$0xff]  ;;  %2630 = vrot.lane.b32.xlu1 %v2614_v10, %s3001_s2  ;;  %v2497_v13 = vmul.f32 %v4517_v62, %v3738_v4  ;;  %v2613_v14 = vmul.f32 %v4517_v62, %v3720_v27  ;;  %v2537_v45 = vmul.f32 %v4517_v62, %v3748_v59  ;;  %v2653_v63 = vmul.f32 %v4517_v62, %v4966_v42 }
 0x5e3   :  { %v2499_v22 = vmul.f32 %v4506_v44, %v3738_v4  ;;  %v2615_v47 = vmul.f32 %v4506_v44, %v3720_v27  ;;  %v2539_v4 = vmul.f32 %v4506_v44, %v3748_v59  ;;  %v2655_v27 = vmul.f32 %v4506_v44, %v4966_v42 }
 0x5e4   :  { %v2612_v59 = vmul.f32 %v4551_v39, %v4968_v20  ;;  %v2417_v46 = vmul.f32 %v4506_v44, %v4971_v50  ;;  %v2415_v28 = vmul.f32 %v4517_v62, %v4971_v50  ;;  %v2453_v54 = vmul.f32 %v4506_v44, %v4972_v24 }
 0x5e5   :  { %2516 = vrot.lane.b32.xlu0 %v2499_v22, %s3001_s2  ;;  %v2451_v43 = vmul.f32 %v4517_v62, %v4972_v24 }
 0x5e6   :  { %2554 = vrot.lane.b32.xlu1 %v2538_v21, %s3002_s23 }
 0x5e9   :  { %2632 = vrot.lane.b32.xlu0 %v2615_v47, %s3001_s2 }
 0x5ea   :  { %2670 = vrot.lane.b32.xlu1 %v2654_v3, %s3002_s23 }
 0x5ed   :  { %2512 = vrot.lane.b32.xlu0 %v2497_v13, %s3001_s2 }
 0x5ee   :  { %2506 = vrot.lane.b32.xlu1 %v2494_v0, %s3001_s2 }
 0x5f1   :  { %2628 = vrot.lane.b32.xlu0 %v2613_v14, %s3001_s2  ;;  %v4974_v14 = vld [vmem:[#allocation10_spill] sm:$0xff] }
 0x5f2   :  { %2622 = vrot.lane.b32.xlu1 %v2610_v56, %s3001_s2  ;;  %v2493_v20 = vmul.f32 %v4506_v44, %v4974_v14  ;;  %v2492_v1 = vmul.f32 %v4498_v32, %v4974_v14  ;;  %v2491_v35 = vmul.f32 %v4517_v62, %v4974_v14  ;;  %v2489_v14 = vmul.f32 %v4493_v11, %v3866_v17 }
 0x5f5   :  { %2556 = vrot.lane.b32.xlu0 %v2539_v4, %s3002_s23 }
 0x5f6   :  { %2546 = vrot.lane.b32.xlu1 %v2534_v55, %s3002_s23 }
 0x5f9   :  { %2672 = vrot.lane.b32.xlu0 %v2655_v27, %s3002_s23 }
 0x5fa   :  { %2508 = vrot.lane.b32.xlu1 %v2495_v53, %s3001_s2 }
 0x5fd   :  { %2552 = vrot.lane.b32.xlu0 %v2537_v45, %s3002_s23 }
 0x5fe   :  { %2624 = vrot.lane.b32.xlu1 %v2611_v26, %s3001_s2 }
 0x601   :  { %2510 = vrot.lane.b32.xlu0 %v2496_v29, %s3001_s2 }
 0x602   :  { %2548 = vrot.lane.b32.xlu1 %v2535_v48, %s3002_s23 }
 0x605   :  { %2626 = vrot.lane.b32.xlu0 %v2612_v59, %s3001_s2  ;;  %v2608_v59 = vmul.f32 %v4498_v32, %v3880_v25 }
 0x606   :  { %2664 = vrot.lane.b32.xlu1 %v2651_v51, %s3002_s23 }
 0x609   :  { %2550 = vrot.lane.b32.xlu0 %v2536_v41, %s3002_s23 }
 0x60a   :  { %2662 = vrot.lane.b32.xlu1 %v2650_v49, %s3002_s23 }
 0x60d   :  { %2666 = vrot.lane.b32.xlu0 %v2652_v19, %s3002_s23 }
 0x60e   :  { %2432 = vrot.lane.b32.xlu1 %v2416_v8, %s3001_s2  ;;  %v2609_v8 = vmul.f32 %v4506_v44, %v3880_v25  ;;  %v2413_v44 = vmul.f32 %v4493_v11, %v3876_v61 }
 0x611   :  { %2668 = vrot.lane.b32.xlu0 %v2653_v63, %s3002_s23 }
 0x612   :  { %2424 = vrot.lane.b32.xlu1 %v2412_v38, %s3001_s2 }
 0x615   :  { %2428 = vrot.lane.b32.xlu0 %v2414_v23, %s3001_s2 }
 0x616   :  { %2468 = vrot.lane.b32.xlu1 %v2452_v40, %s3002_s23 }
 0x619   :  { %2434 = vrot.lane.b32.xlu0 %v2417_v46, %s3001_s2 }
 0x61a   :  { %2460 = vrot.lane.b32.xlu1 %v2448_v30, %s3002_s23 }
 0x61d   :  { %2430 = vrot.lane.b32.xlu0 %v2415_v28, %s3001_s2 }
 0x621   :  { %2464 = vrot.lane.b32.xlu0 %v2450_v16, %s3002_s23 }
 0x625   :  { %2470 = vrot.lane.b32.xlu0 %v2453_v54, %s3002_s23 }
 0x629   :  { %2466 = vrot.lane.b32.xlu0 %v2451_v43, %s3002_s23 }
 0x650   :  { %v2515_v10 = vpop.permute.xlu1 %2514 }
 0x654   :  { %v4611_v22 = vpop.permute.xlu1 %2630 }
 0x657   :  { %v2517_v21 = vpop.permute.xlu0 %2516 }
 0x658   :  { %v2555_v47 = vpop.permute.xlu1 %2554  ;;  %v2521_v56 = vsel %vm134_vm8, %v2515_v10, %v2517_v21  ;;  %v2533_v55 = vadd.f32 %v2517_v21, %v2493_v20 }
 0x659   :  { %v2532_v27 = vadd.f32 %v2521_v56, %v2492_v1  ;;  %v2606_v1 = vmul.f32 %v4551_v39, %v3887_v18 }
 0x65b   :  { %v2633_v42 = vpop.permute.xlu0 %2632 }
 0x65c   :  { %v4613_v3 = vpop.permute.xlu1 %2670  ;;  %v2637_v45 = vsel %vm134_vm8, %v4611_v22, %v2633_v42  ;;  %v2649_v38 = vadd.f32 %v2633_v42, %v2609_v8  ;;  %v2490_v42 = vmul.f32 %v4551_v39, %v3866_v17 }
 0x65d   :  { %v2648_v51 = vadd.f32 %v2637_v45, %v2608_v59 }
 0x65f   :  { %v2513_v13 = vpop.permute.xlu0 %2512 }
 0x660   :  { %v2507_v12 = vpop.permute.xlu1 %2506  ;;  %v2520_v49 = vsel %vm134_vm8, %v2513_v13, %v2515_v10 }
 0x661   :  { %v2531_v23 = vadd.f32 %v2520_v49, %v2491_v35  ;;  %v2604_v35 = vmul.f32 %v4522_v2, %v3887_v18 }
 0x663   :  { %v4615_v0 = vpop.permute.xlu0 %2628 }
 0x664   :  { %v4620_v4 = vpop.permute.xlu1 %2622 }
 0x667   :  { %v2557_v53 = vpop.permute.xlu0 %2556 }
 0x668   :  { %v2561_v26 = vsel %vm160_vm9, %v2555_v47, %v2557_v53  ;;  %v2573_v29 = vadd.f32 %v2557_v53, %v2533_v55  ;;  %v2547_v48 = vpop.permute.xlu1 %2546 }
 0x669   :  { %v2572_v31 = vadd.f32 %v2561_v26, %v2532_v27  ;;  %v2488_v26 = vmul.f32 %v4522_v2, %v3866_v17 }
 0x66a   :  { %2590 = vrot.lane.b32.xlu0 %v2573_v29, %s3005_s24  ;;  %v2605_v29 = vmul.f32 %v4493_v11, %v3887_v18 }
 0x66b   :  { %v2673_v41 = vpop.permute.xlu0 %2672  ;;  %2588 = vrot.lane.b32.xlu1 %v2572_v31, %s3005_s24 }
 0x66c   :  { %v2677_v19 = vsel %vm160_vm9, %v4613_v3, %v2673_v41  ;;  %v2509_v50 = vpop.permute.xlu1 %2508  ;;  %v2689_v28 = vadd.f32 %v2673_v41, %v2649_v38 }
 0x66d   :  { %v2688_v63 = vadd.f32 %v2677_v19, %v2648_v51  ;;  %v2518_v27 = vsel %vm134_vm8, %v2507_v12, %v2509_v50  ;;  %v2636_v19 = vsel %vm134_vm8, %v4615_v0, %v4611_v22 }
 0x66e   :  { %v2695_v10 = vmul.f32 %v2689_v28, %v3351_v60  ;;  %v2528_v39 = vadd.f32 %v2518_v27, %v2488_v26 }
 0x66f   :  { %v2694_v24 = vmul.f32 %v2688_v63, %v3476_v5  ;;  %v2553_v40 = vpop.permute.xlu0 %2552 }
 0x670   :  { %v2560_v46 = vsel %vm160_vm9, %v2553_v40, %v2555_v47  ;;  %v2625_v30 = vpop.permute.xlu1 %2624  ;;  %v2449_v47 = vmul.f32 %v4493_v11, %v4973_v37 }
 0x671   :  { %v2571_v16 = vadd.f32 %v2560_v46, %v2531_v23  ;;  %2710 = vrot.lane.b32.xlu1 %v2694_v24, %s3006_s25  ;;  %v2634_v17 = vsel %vm134_vm8, %v4620_v4, %v2625_v30 }
 0x672   :  { %v2644_v22 = vadd.f32 %v2634_v17, %v2604_v35 }
 0x673   :  { %v2511_v54 = vpop.permute.xlu0 %2510  ;;  %2586 = vrot.lane.b32.xlu0 %v2571_v16, %s3005_s24 }
 0x674   :  { %v2549_v43 = vpop.permute.xlu1 %2548  ;;  %v2519_v13 = vsel %vm134_vm8, %v2509_v50, %v2511_v54  ;;  %v2530_v20 = vadd.f32 %v2511_v54, %v2490_v42 }
 0x675   :  { %2426 = vrot.lane.b32.xlu1 %v2413_v44, %s3001_s2  ;;  %v2529_v56 = vadd.f32 %v2519_v13, %v2489_v14  ;;  %v2558_v51 = vsel %vm160_vm9, %v2547_v48, %v2549_v43  ;;  %v2607_v48 = vmul.f32 %v4517_v62, %v3880_v25 }
 0x676   :  { %v2568_v63 = vadd.f32 %v2558_v51, %v2528_v39  ;;  %v2408_v51 = vmul.f32 %v4517_v62, %v4150_v34 }
 0x677   :  { %v2627_v21 = vpop.permute.xlu0 %2626  ;;  %2712 = vrot.lane.b32.xlu0 %v2695_v10, %s3006_s25  ;;  %v2647_v40 = vadd.f32 %v2636_v19, %v2607_v48 }
 0x678   :  { %v2665_v61 = vpop.permute.xlu1 %2664  ;;  %v2635_v37 = vsel %vm134_vm8, %v2625_v30, %v2627_v21  ;;  %v2646_v31 = vadd.f32 %v2627_v21, %v2606_v1  ;;  %v2409_v1 = vmul.f32 %v4498_v32, %v4150_v34 }
 0x679   :  { %2462 = vrot.lane.b32.xlu1 %v2449_v47, %s3002_s23  ;;  %v2645_v41 = vadd.f32 %v2635_v37, %v2605_v29  ;;  %v2407_v29 = vmul.f32 %v4493_v11, %v4148_v57  ;;  %v2406_v11 = vmul.f32 %v4522_v2, %v4148_v57 }
 0x67b   :  { %v2551_v55 = vpop.permute.xlu0 %2550 }
 0x67c   :  { %v2570_v53 = vadd.f32 %v2551_v55, %v2530_v20  ;;  %v2559_v45 = vsel %vm160_vm9, %v2549_v43, %v2551_v55  ;;  %v2663_v49 = vpop.permute.xlu1 %2662 }
 0x67d   :  { %v2569_v59 = vadd.f32 %v2559_v45, %v2529_v56  ;;  %v2674_v24 = vsel %vm160_vm9, %v2663_v49, %v2665_v61 }
 0x67e   :  { %2584 = vrot.lane.b32.xlu0 %v2570_v53, %s3005_s24  ;;  %v2684_v18 = vadd.f32 %v2674_v24, %v2644_v22 }
 0x67f   :  { %v2667_v12 = vpop.permute.xlu0 %2666  ;;  %2582 = vrot.lane.b32.xlu1 %v2569_v59, %s3005_s24 }
 0x680   :  { %v2686_v50 = vadd.f32 %v2667_v12, %v2646_v31  ;;  %v2675_v8 = vsel %vm160_vm9, %v2665_v61, %v2667_v12 }
 0x681   :  { %v2685_v38 = vadd.f32 %v2675_v8, %v2645_v41 }
 0x682   :  { %v2692_v23 = vmul.f32 %v2686_v50, %v3351_v60  ;;  %v2690_v60 = vmul.f32 %v2684_v18, %v3349_v58 }
 0x683   :  { %v2669_v0 = vpop.permute.xlu0 %2668  ;;  %2580 = vrot.lane.b32.xlu1 %v2568_v63, %s3005_s24  ;;  %v2691_v25 = vmul.f32 %v2685_v38, %v3476_v5  ;;  %v4975_v5 = vmov 4  }
 0x684   :  { %v2676_v4 = vsel %vm160_vm9, %v2669_v0, %v4613_v3  ;;  %2706 = vrot.lane.b32.xlu0 %v2692_v23, %s3006_s25  ;;  %v4692_v3 = vld [vmem:[%s4779_s10] sm:$0xf] }
 0x685   :  { %v2687_v46 = vadd.f32 %v2676_v4, %v2647_v40 }
 0x687   :  { %v2693_v30 = vmul.f32 %v2687_v46, %v3349_v58  ;;  %2704 = vrot.lane.b32.xlu1 %v2691_v25, %s3006_s25  ;;  %v2429_v28 = vpop.permute.xlu0 %2428  ;;  %v2433_v58 = vpop.permute.xlu1 %2432 }
 0x689   :  { %2708 = vrot.lane.b32.xlu0 %v2693_v30, %s3006_s25 }
 0x68b   :  { %2702 = vrot.lane.b32.xlu1 %v2690_v60, %s3006_s25  ;;  %v2435_v16 = vpop.permute.xlu0 %2434  ;;  %v2425_v44 = vpop.permute.xlu1 %2424 }
 0x68d   :  { %2737 = vperm.xlu0 %2956, %v4692_v3  }
 0x68f   :  { %1505 = vperm.xlu1 %2955, %v4445_v52   ;;  %v2431_v54 = vpop.permute.xlu0 %2430  ;;  %v2469_v10 = vpop.permute.xlu1 %2468  ;;  %v2439_v52 = vsel %vm134_vm8, %v2433_v58, %v2435_v16 }
 0x690   :  { %v2447_v27 = vadd.f32 %v2439_v52, %v2409_v1  ;;  %v2438_v59 = vsel %vm134_vm8, %v2431_v54, %v2433_v58 }
 0x691   :  { %2958 = vset.pattern.permute.xlu0 %v4975_v5  ;;  %v2446_v17 = vadd.f32 %v2438_v59, %v2408_v51 }
 0x693   :  { %2957 = vset.pattern.permute.xlu1 %v4975_v5  ;;  %v2465_v43 = vpop.permute.xlu0 %2464  ;;  %v2461_v47 = vpop.permute.xlu1 %2460 }
 0x697   :  { %v2471_v21 = vpop.permute.xlu0 %2470 }
 0x698   :  { %v2475_v55 = vsel %vm160_vm9, %v2469_v10, %v2471_v21 }
 0x699   :  { %v2483_v26 = vadd.f32 %v2475_v55, %v2447_v27 }
 0x69b   :  { %v2467_v13 = vpop.permute.xlu0 %2466  ;;  %v2487_v50 = vmul.f32 %v2483_v26, %v4957_v9 }
 0x69c   :  { %v2474_v41 = vsel %vm160_vm9, %v2467_v13, %v2469_v10 }
 0x69d   :  { %v2482_v62 = vadd.f32 %v2474_v41, %v2446_v17  ;;  %v53_v17 = vld [vmem:[%s4781_s12] sm:$0xf] }
 0x69f   :  { %v2486_v57 = vmul.f32 %v2482_v62, %v4958_v6 }
 0x6dc   :  { %v2591_v61 = vpop.permute.xlu0 %2590 }
 0x6dd   :  { %v2589_v42 = vpop.permute.xlu1 %2588 }
 0x6de   :  { %v2595_v12 = vsel %vm254_vm12, %v2589_v42, %v2591_v61 }
 0x6df   :  { %v2603_v35 = vadd.f32 %v2595_v12, %v2487_v50  ;;  %v4976_v12 = vld [vmem:[#allocation5_spill] sm:$0xff] }
 0x6e3   :  { %v2711_v14 = vpop.permute.xlu1 %2710 }
 0x6e5   :  { %v2587_v56 = vpop.permute.xlu0 %2586 }
 0x6e6   :  { %v2594_v4 = vsel %vm254_vm12, %v2587_v56, %v2589_v42 }
 0x6e7   :  { %v2427_v20 = vpop.permute.xlu1 %2426  ;;  %v2602_v30 = vadd.f32 %v2594_v4, %v2486_v57 }
 0x6e8   :  { %v2437_v53 = vsel %vm134_vm8, %v2427_v20, %v2429_v28  ;;  %v2436_v49 = vsel %vm134_vm8, %v2425_v44, %v2427_v20 }
 0x6e9   :  { %v2713_v45 = vpop.permute.xlu0 %2712  ;;  %v2445_v39 = vadd.f32 %v2437_v53, %v2407_v29  ;;  %v2444_v63 = vadd.f32 %v2436_v49, %v2406_v11  ;;  %v1603_v49 = vsub.s32 4, %v4976_v12 }
 0x6ea   :  { %v2717_v48 = vsel %vm353_vm13, %v2711_v14, %v2713_v45 }
 0x6eb   :  { %v2463_v37 = vpop.permute.xlu1 %2462  ;;  %v2725_v40 = vadd.f32 %v2717_v48, %v2603_v35 }
 0x6ec   :  { %v2473_v31 = vsel %vm160_vm9, %v2463_v37, %v2465_v43  ;;  %v2472_v34 = vsel %vm160_vm9, %v2461_v47, %v2463_v37 }
 0x6ed   :  { %v2481_v8 = vadd.f32 %v2473_v31, %v2445_v39  ;;  %v2480_v22 = vadd.f32 %v2472_v34, %v2444_v63  ;;  %v2729_v60 = vadd.f32 %v2725_v40, %v4357_v36 }
 0x6ef   :  { %v2485_v0 = vmul.f32 %v2481_v8, %v4957_v9  ;;  %v2484_v5 = vmul.f32 %v2480_v22, %v4958_v6  ;;  %v2733_v21 = vmax.f32 %v2729_v60, 0.0 }
 0x6f0   :  { %v2585_v19 = vpop.permute.xlu0 %2584 }
 0x6f1   :  { %v2583_v32 = vpop.permute.xlu1 %2582 }
 0x6f2   :  { %v2593_v23 = vsel %vm254_vm12, %v2583_v32, %v2585_v19 }
 0x6f3   :  { %v2601_v2 = vadd.f32 %v2593_v23, %v2485_v0 }
 0x6f5   :  { %v2581_v38 = vpop.permute.xlu1 %2580 }
 0x6f6   :  { %v2707_v24 = vpop.permute.xlu0 %2706  ;;  %v2592_v46 = vsel %vm254_vm12, %v2581_v38, %v2583_v32 }
 0x6f7   :  { %v2600_v9 = vadd.f32 %v2592_v46, %v2484_v5 }
 0x6f9   :  { %v2705_v25 = vpop.permute.xlu1 %2704 }
 0x6fa   :  { %v2715_v18 = vsel %vm353_vm13, %v2705_v25, %v2707_v24 }
 0x6fb   :  { %v2723_v28 = vadd.f32 %v2715_v18, %v2601_v2  ;;  %v2709_v16 = vpop.permute.xlu0 %2708 }
 0x6fc   :  { %v2716_v58 = vsel %vm353_vm13, %v2709_v16, %v2711_v14 }
 0x6fd   :  { %v2727_v54 = vadd.f32 %v2723_v28, %v4337_v33  ;;  %v2724_v44 = vadd.f32 %v2716_v58, %v2602_v30  ;;  %v2703_v43 = vpop.permute.xlu1 %2702 }
 0x6fe   :  { %v2714_v10 = vsel %vm353_vm13, %v2703_v43, %v2705_v25 }
 0x6ff   :  { %v2731_v47 = vmax.f32 %v2727_v54, 0.0  ;;  %v2728_v42 = vadd.f32 %v2724_v44, %v4357_v36  ;;  %v2722_v13 = vadd.f32 %v2714_v10, %v2600_v9 }
 0x701   :  { %v2726_v61 = vadd.f32 %v2722_v13, %v4337_v33  ;;  %v2885_v20 = vpack.c.bf16 %v2733_v21, %v2731_v47  ;;  %v2732_v6 = vmax.f32 %v2728_v42, 0.0 }
 0x703   :  { %v2730_v56 = vmax.f32 %v2726_v61, 0.0  ;;  %2886 = vmatprep.subr.bf16.mxu1 %v2885_v20 }
 0x705   :  { %v2887_v52 = vpack.c.bf16 %v2732_v6, %v2730_v56 }
 0x707   :  { %2888 = vmatpush1.bf16.msra.mxu1 %v2887_v52 }
 0x70a   :  { %2879 = vmatmul.mubr.msk.f32.vlgmr.msra.gmra.mrb[6].mxu1 %vm1508_vm1, %v4692_v3 }
 0x70c   :  { %v2738_v48 = vpop.permute.xlu0 %2737 }
 0x70e   :  { %v1506_v14 = vpop.permute.xlu1 %1505 }
 0x70f   :  { %v4733_v1 = vadd.f32 %v4483_v7, %v1506_v14  ;;  %v4736_v55 = vadd.f32 %v4485_v15, %v1506_v14  ;;  %v52_v7 = vld [vmem:[%s4780_s11] sm:$0x1f] }
 0x711   :  { %v1582_v36 = vmax.f32 %v4733_v1, 0.0  ;;  %v1583_v33 = vmax.f32 %v4736_v55, 0.0 }
 0x713   :  { %v1584_v27 = vsel %vm132_vm10, %v1582_v36, 0.0  ;;  %v1585_v37 = vsel %vm132_vm10, %v1583_v33, 0.0 }
 0x714   :  { %v1586_v3 = vadd.f32 %v1585_v37, %v1584_v27 }
 0x716   :  { %1587 = vadd.xlane.f32.xlu1 %v1586_v3 }
 0x7a3   :  { %v1588_v15 = vpop.xlane.xlu1 %1587 }
 0x7a4   :  { %v1589_v53 = vmul.f32 0.00390625, %v1588_v15 }
 0x7a6   :  { %v1590_v45 = vmul.f32 %v1589_v53, %v52_v7 }
 0x7a8   :  { %v1592_v26 = vsel %vm1591_vm0, %v1590_v45, 0.0 }
 0x7a9   :  { %v1593_v29 = vrot.slane %v1592_v26, 4 }
 0x7ab   :  { %v1594_v59 = vadd.f32 %v1593_v29, %v1592_v26 }
 0x7ad   :  { %v1595_v31 = vrot.slane %v1594_v59, 2 }
 0x7af   :  { %v1596_v51 = vadd.f32 %v1595_v31, %v1594_v59 }
 0x7b1   :  { %v1597_v39 = vrot.slane %v1596_v51, 1 }
 0x7b3   :  { %v1598_v32 = vadd.f32 %v1597_v39, %v1596_v51 }
 0x7b5   :  { %v1599_v41 = vadd.f32 %v1598_v32, %v52_v7 }
 0x7b7   :  { %v1600_v19 = vmax.f32 %v1599_v41, 0.0 }
 0x7b9   :  { %v1604_v50 = vrot.slane %v1600_v19, %v1603_v49 }
 0x7bb   :  { %v1605_v11 = vmul.f32 %v1604_v50, %v53_v17 }
 0x7bd   :  { %v1606_v8 = vsel %vm1591_vm0, %v1605_v11, 0.0 }
 0x7be   :  { %1607 = vadd.xlane.f32.xlu1 %v1606_v8 }
 0x7dd   :  { %v2808_v34 = vpop.f32.mrb[6].mxu1 }
 0x7de   :  { %v2809_v62 = vadd.f32 %v2808_v34, %v2738_v48  ;;  %v2810_v35 = vpop.f32.mrb[7].mxu1 }
 0x7df   :  { %v2811_v63 = vadd.f32 %v2810_v35, %v2738_v48 }
 0x7e0   :  { %v2813_v38 = vmax.f32 %v2809_v62, 0.0 }
 0x7e1   :  { %v2814_v23 = vmax.f32 %v2811_v63, 0.0 }
 0x7e2   :  { %v2815_v24 = vsel %vm132_vm10, %v2813_v38, 0.0 }
 0x7e3   :  { %v2816_v40 = vsel %vm132_vm10, %v2814_v23, 0.0 }
 0x7e4   :  { %v2817_v22 = vadd.f32 %v2816_v40, %v2815_v24 }
 0x7e6   :  { %2818 = vadd.xlane.f32.xlu0 %v2817_v22 }
 0x84b   :  { %v1608_v0 = vpop.xlane.xlu1 %1607 }
 0x84c   :  { %v1609_v4 = vadd.f32 %v1608_v0, %v53_v17 }
 0x84e   :  { %v1610_v57 = vsub.f32 0.0, %v1609_v4 }
 0x850   :  { %v1611_v2 = vmul.f32 1.442695, %v1610_v57 }
 0x852   :  { %2975 = vpow2.f32 %v1611_v2 }
 0x85c   :  { %v2976_v25 = vpop.eup %2975 }
 0x85d   :  { %v1613_v46 = vadd.f32 1.0, %v2976_v25 }
 0x85f   :  { %2977 = vrcp.f32 %v1613_v46 }
 0x869   :  { %v2978_v18 = vpop.eup %2977 }
 0x86a   :  { %v1616_v30 = vadd.f32 1.0, %v2978_v18 }
 0x86c   :  { %1619 = vperm.xlu1 %2957, %v1616_v30  }
 0x873   :  { %v2819_v60 = vpop.xlane.xlu0 %2818 }
 0x874   :  { %v2820_v5 = vmul.f32 0.00390625, %v2819_v60 }
 0x876   :  { %v2821_v28 = vmul.f32 %v2820_v5, %v52_v7 }
 0x878   :  { %v2822_v16 = vsel %vm1591_vm0, %v2821_v28, 0.0 }
 0x879   :  { %v2823_v58 = vrot.slane %v2822_v16, 4 }
 0x87b   :  { %v2824_v9 = vadd.f32 %v2823_v58, %v2822_v16 }
 0x87d   :  { %v2825_v54 = vrot.slane %v2824_v9, 2 }
 0x87f   :  { %v2826_v44 = vadd.f32 %v2825_v54, %v2824_v9 }
 0x881   :  { %v2827_v43 = vrot.slane %v2826_v44, 1 }
 0x883   :  { %v2828_v10 = vadd.f32 %v2827_v43, %v2826_v44 }
 0x885   :  { %v2829_v21 = vadd.f32 %v2828_v10, %v52_v7 }
 0x887   :  { %v2830_v47 = vmax.f32 %v2829_v21, 0.0 }
 0x889   :  { %v2834_v42 = vrot.slane %v2830_v47, %v1603_v49 }
 0x88b   :  { %v2835_v13 = vmul.f32 %v2834_v42, %v53_v17 }
 0x88d   :  { %v2836_v61 = vsel %vm1591_vm0, %v2835_v13, 0.0 }
 0x88e   :  { %2837 = vadd.xlane.f32.xlu0 %v2836_v61 }
 0x8eb   :  { %v1620_v20 = vpop.permute.xlu1 %1619 }
 0x8ec   :  { %v1622_v6 = vmul.f32 %v1620_v20, %v1582_v36  ;;  %v1623_v56 = vmul.f32 %v1620_v20, %v1583_v33 }
 0x8ee   :  { %v1626_v52 = vcombine.low %v1622_v6, %v1623_v56 }
 0x8f0   :  { %1628 = vst [vmem:[%s4782_s13] sm:$0xff] %v1626_v52 }
 0x91b   :  { %v2838_v14 = vpop.xlane.xlu0 %2837 }
 0x91c   :  { %v2839_v27 = vadd.f32 %v2838_v14, %v53_v17 }
 0x91e   :  { %v2840_v37 = vsub.f32 0.0, %v2839_v27 }
 0x920   :  { %v2841_v3 = vmul.f32 1.442695, %v2840_v37 }
 0x922   :  { %2979 = vpow2.f32 %v2841_v3 }
 0x92c   :  { %v2980_v7 = vpop.eup %2979 }
 0x92d   :  { %v2843_v15 = vadd.f32 1.0, %v2980_v7 }
 0x92f   :  { %2981 = vrcp.f32 %v2843_v15 }
 0x939   :  { %v2982_v53 = vpop.eup %2981 }
 0x93a   :  { %v2846_v45 = vadd.f32 1.0, %v2982_v53 }
 0x93c   :  { %2849 = vperm.xlu0 %2958, %v2846_v45  }
 0x9bb   :  { %v2850_v1 = vpop.permute.xlu0 %2849 }
 0x9bc   :  { %v2852_v36 = vmul.f32 %v2850_v1, %v2813_v38  ;;  %v2853_v55 = vmul.f32 %v2850_v1, %v2814_v23 }
 0x9be   :  { %v2856_v33 = vcombine.low %v2852_v36, %v2853_v55 }
 0x9c0   :  { %2880 = vst [vmem:[%s4782_s13 + $0x8] sm:$0xff] %v2856_v33 }

</bundles_post_ra>
